<compile_context>
chip_gen: v5e
topology: v5e:2x2
jax: 0.10.0
libtpu: 0.0.40
codegen_flags: <defaults>
</compile_context>

<pallas_src>
import functools

import jax
import jax.numpy as jnp
from jax.experimental import pallas as pl
from jax.experimental.pallas import tpu as pltpu


def _attention_kernel(x_ref, g_ref, wqkv_ref, hmask_ref, qmul_ref, kmul_ref,
                      wout_ref, o_ref, *, heads, dim_head, bb, seq):
    """One grid step handles `bb` batch elements: (bb, N, D) -> (bb, N, D)."""
    D = x_ref.shape[-1]
    hidden = heads * dim_head
    rows = bb * seq

    x = x_ref[...].astype(jnp.float32).reshape(rows, D)

    # ---- LayerNorm over channels (normalize_dim=2, unbiased=False, clamp eps) ----
    mean = jnp.mean(x, axis=-1, keepdims=True)
    var = jnp.mean((x - mean) * (x - mean), axis=-1, keepdims=True)
    xn = (x - mean) * jax.lax.rsqrt(jnp.maximum(var, 1e-5)) * g_ref[...]

    # ---- qkv projection: bf16 MXU operands, f32 accumulation ----
    qkv = jnp.dot(xn.astype(jnp.bfloat16), wqkv_ref[...],
                  preferred_element_type=jnp.float32)          # (rows, 3*hidden)
    q = qkv[:, 0 * hidden:1 * hidden]
    k = qkv[:, 1 * hidden:2 * hidden]
    v = qkv[:, 2 * hidden:3 * hidden]

    # ---- per-head l2 normalization, lane-dense ----
    # (q*q) @ block-diag-ones gives each channel its head's sum of squares,
    # so the whole normalize + learned-scale (+ folded attention scale for q)
    # is two 128-wide multiplies instead of per-head 32-wide work.
    hmask = hmask_ref[...]                                     # (hidden, hidden) f32
    q_ss = jnp.dot(q * q, hmask, preferred_element_type=jnp.float32)
    k_ss = jnp.dot(k * k, hmask, preferred_element_type=jnp.float32)
    # F.normalize eps: t / max(||t||, 1e-12) == t * rsqrt(max(||t||^2, 1e-24))
    qn = q * jax.lax.rsqrt(jnp.maximum(q_ss, 1e-24)) * qmul_ref[...]
    kn = k * jax.lax.rsqrt(jnp.maximum(k_ss, 1e-24)) * kmul_ref[...]

    q3 = qn.reshape(bb, seq, hidden).astype(jnp.bfloat16)
    k3 = kn.reshape(bb, seq, hidden).astype(jnp.bfloat16)
    v3 = v.reshape(bb, seq, hidden).astype(jnp.bfloat16)

    # ---- per-head attention, batched over the bb batch elements ----
    head_outs = []
    for h in range(heads):                                     # heads: small & static
        sl = slice(h * dim_head, (h + 1) * dim_head)
        qh = q3[:, :, sl]
        kh = k3[:, :, sl]
        vh = v3[:, :, sl]
        sim = jnp.einsum('bid,bjd->bij', qh, kh,
                         preferred_element_type=jnp.float32)    # (bb, seq, seq) f32
        sim = sim - jnp.max(sim, axis=-1, keepdims=True)
        p = jnp.exp(sim)
        attn = p * pl.reciprocal(jnp.sum(p, axis=-1, keepdims=True), approx=True)
        # attn_dropout with p = 0.0 / eval mode is the identity.
        head_outs.append(jnp.einsum('bij,bjd->bid', attn.astype(jnp.bfloat16), vh,
                                    preferred_element_type=jnp.float32))

    out = jnp.concatenate(head_outs, axis=-1).reshape(rows, hidden)

    # ---- output projection; full (bb, N, D) slab store (lane-dense for D%128==0) ----
    proj = jnp.dot(out.astype(jnp.bfloat16), wout_ref[...],
                   preferred_element_type=jnp.float32)
    o_ref[...] = proj.reshape(bb, seq, D).astype(o_ref.dtype)


def _pick_batch_block(B, N, target_rows=512):
    """Largest divisor bb of B with bb*N <= target_rows, keeping >= 2 grid steps
    (feeds both v7x TensorCores / v6e megacore)."""
    best = 1
    for bb in range(1, B + 1):
        if B % bb != 0:
            continue
        if bb * N > target_rows:
            continue
        if B > 1 and (B // bb) < 2:
            continue
        best = bb
    return best


def attention_pallas(x, g, w_qkv, q_scale, k_scale, w_out, *, heads, dim_head,
                     scale=8.0, block_b=None):
    B, N, D = x.shape
    hidden = heads * dim_head
    assert w_qkv.shape == (D, 3 * hidden)
    assert w_out.shape == (hidden, D)

    bb = block_b if block_b is not None else _pick_batch_block(B, N)
    assert B % bb == 0

    # Small operands prepared once in the wrapper (blocks are grid-invariant,
    # so they stay resident in VMEM across grid steps).
    g2 = g.reshape(1, D).astype(jnp.float32)
    q_mul = (jnp.tile(q_scale.astype(jnp.float32), heads) * scale).reshape(1, hidden)
    k_mul = jnp.tile(k_scale.astype(jnp.float32), heads).reshape(1, hidden)
    # Block-diagonal per-head ones matrix for the lane-dense l2norm.
    head_mask = jnp.kron(jnp.eye(heads, dtype=jnp.float32),
                         jnp.ones((dim_head, dim_head), jnp.float32))
    # bf16 MXU operands (halves weight DMA bytes; f32 accumulation in-kernel).
    w_qkv_bf16 = w_qkv.astype(jnp.bfloat16)
    w_out_bf16 = w_out.astype(jnp.bfloat16)

    kernel = functools.partial(_attention_kernel, heads=heads,
                               dim_head=dim_head, bb=bb, seq=N)

    return pl.pallas_call(
        kernel,
        out_shape=jax.ShapeDtypeStruct((B, N, D), x.dtype),
        grid_spec=pltpu.PrefetchScalarGridSpec(
            num_scalar_prefetch=0,
            grid=(B // bb,),
            in_specs=[
                pl.BlockSpec((bb, N, D), lambda b: (b, 0, 0)),       # x
                pl.BlockSpec((1, D), lambda b: (0, 0)),              # LayerNorm g
                pl.BlockSpec((D, 3 * hidden), lambda b: (0, 0)),     # w_qkv (bf16)
                pl.BlockSpec((hidden, hidden), lambda b: (0, 0)),    # head mask
                pl.BlockSpec((1, hidden), lambda b: (0, 0)),         # q multiplier
                pl.BlockSpec((1, hidden), lambda b: (0, 0)),         # k multiplier
                pl.BlockSpec((hidden, D), lambda b: (0, 0)),         # w_out (bf16)
            ],
            out_specs=pl.BlockSpec((bb, N, D), lambda b: (b, 0, 0)),
        ),
        compiler_params=pltpu.CompilerParams(
            dimension_semantics=("parallel",)),
    )(x, g2, w_qkv_bf16, head_mask, q_mul, k_mul, w_out_bf16)


def attention_reference(x, g, w_qkv, q_scale, k_scale, w_out, *, heads, dim_head,
                        scale=8.0, matmul_dtype=jnp.float32):
    """Pure-JAX reference mirroring the PyTorch forward.

    With matmul_dtype=jnp.bfloat16 the matmul operands are rounded the same way
    as the kernel's MXU inputs (accumulation stays f32), giving a tight check.
    """
    B, N, D = x.shape
    c = lambda t: t.astype(matmul_dtype)
    eps = 1e-5
    mean = jnp.mean(x, axis=-1, keepdims=True)
    var = jnp.mean((x - mean) ** 2, axis=-1, keepdims=True)
    xn = (x - mean) * jax.lax.rsqrt(jnp.maximum(var, eps)) * g

    qkv = jnp.einsum('bnd,de->bne', c(xn), c(w_qkv),
                     preferred_element_type=jnp.float32)
    q, k, v = jnp.split(qkv, 3, axis=-1)

    def split_heads(t):
        return t.reshape(B, N, heads, dim_head).transpose(0, 2, 1, 3)

    q, k, v = map(split_heads, (q, k, v))
    q = q / jnp.maximum(jnp.linalg.norm(q, axis=-1, keepdims=True), 1e-12)
    k = k / jnp.maximum(jnp.linalg.norm(k, axis=-1, keepdims=True), 1e-12)
    q = q * (q_scale * scale)          # scale folded into q (identical math)
    k = k * k_scale
    sim = jnp.einsum('bhid,bhjd->bhij', c(q), c(k),
                     preferred_element_type=jnp.float32)
    attn = jax.nn.softmax(sim, axis=-1)
    out = jnp.einsum('bhij,bhjd->bhid', c(attn), c(v),
                     preferred_element_type=jnp.float32)
    out = out.transpose(0, 2, 1, 3).reshape(B, N, heads * dim_head)
    return jnp.einsum('bne,ed->bnd', c(out), c(w_out),
                      preferred_element_type=jnp.float32)


if __name__ == "__main__":
    # Small shapes matching the UViT ViT bottleneck: dim=16 with dim_mults
    # ending in 8 -> mid_dim = 128 channels; an 8x8 feature map -> N = 64
    # tokens; batch 4.  heads=4, dim_head=32 => hidden = 128 (lane-dense).
    B, N, D = 4, 64, 128
    heads, dim_head, scale = 4, 32, 8.0
    hidden = heads * dim_head

    key = jax.random.PRNGKey(0)
    k_x, k_qkv, k_out, k_g, k_qs, k_ks = jax.random.split(key, 6)

    x = jax.random.normal(k_x, (B, N, D), dtype=jnp.float32)
    g = 1.0 + 0.1 * jax.random.normal(k_g, (D,), dtype=jnp.float32)
    q_scale = 1.0 + 0.1 * jax.random.normal(k_qs, (dim_head,), dtype=jnp.float32)
    k_scale = 1.0 + 0.1 * jax.random.normal(k_ks, (dim_head,), dtype=jnp.float32)
    w_qkv = jax.random.normal(k_qkv, (D, 3 * hidden), dtype=jnp.float32) * 0.05
    w_out = jax.random.normal(k_out, (hidden, D), dtype=jnp.float32) * 0.05

    out = attention_pallas(x, g, w_qkv, q_scale, k_scale, w_out,
                           heads=heads, dim_head=dim_head, scale=scale)
    out = jax.block_until_ready(out)
    assert out.shape == (B, N, D)

    # Tight check against a matched-precision (bf16 MXU operand) reference and
    # a loose sanity check against the full-f32 reference.
    ref_matched = attention_reference(x, g, w_qkv, q_scale, k_scale, w_out,
                                      heads=heads, dim_head=dim_head,
                                      scale=scale, matmul_dtype=jnp.bfloat16)
    ref_f32 = attention_reference(x, g, w_qkv, q_scale, k_scale, w_out,
                                  heads=heads, dim_head=dim_head, scale=scale)
    err_matched = float(jnp.max(jnp.abs(out - ref_matched)))
    err_f32 = float(jnp.max(jnp.abs(out - ref_f32)))
    assert err_matched < 1e-2, f"matched-precision max abs err {err_matched}"
    assert err_f32 < 1e-1, f"f32-reference max abs err {err_f32}"

    print("KERNEL_OK")
</pallas_src>

<mosaic_0001>
module attributes {stable_mosaic.version = 11 : i64} {
  func.func @_attention_kernel(%arg0: i32, %arg1: memref<2x64x128xf32, #tpu.memory_space<vmem>>, %arg2: memref<1x128xf32, #tpu.memory_space<vmem>>, %arg3: memref<128x384xbf16, #tpu.memory_space<vmem>>, %arg4: memref<128x128xf32, #tpu.memory_space<vmem>>, %arg5: memref<1x128xf32, #tpu.memory_space<vmem>>, %arg6: memref<1x128xf32, #tpu.memory_space<vmem>>, %arg7: memref<128x128xbf16, #tpu.memory_space<vmem>>, %arg8: memref<2x64x128xf32, #tpu.memory_space<vmem>>) attributes {dimension_semantics = [#tpu.dimension_semantics<parallel>], iteration_bounds = array<i64: 2>, scalar_prefetch = 0 : i64, scratch_operands = 0 : i64, tpu.core_type = #tpu.core_type<tc>, window_params = [{transform_indices = @transform_0, window_bounds = array<i64: 2, 64, 128>}, {pipeline_mode = #tpu.pipeline_mode<synchronous>, transform_indices = @transform_1, window_bounds = array<i64: 1, 128>}, {pipeline_mode = #tpu.pipeline_mode<synchronous>, transform_indices = @transform_2, window_bounds = array<i64: 128, 384>}, {pipeline_mode = #tpu.pipeline_mode<synchronous>, transform_indices = @transform_3, window_bounds = array<i64: 128, 128>}, {pipeline_mode = #tpu.pipeline_mode<synchronous>, transform_indices = @transform_4, window_bounds = array<i64: 1, 128>}, {pipeline_mode = #tpu.pipeline_mode<synchronous>, transform_indices = @transform_5, window_bounds = array<i64: 1, 128>}, {pipeline_mode = #tpu.pipeline_mode<synchronous>, transform_indices = @transform_6, window_bounds = array<i64: 128, 128>}, {transform_indices = @transform_7, window_bounds = array<i64: 2, 64, 128>}]} {
    %c0 = arith.constant 0 : index
    %c0_0 = arith.constant 0 : index
    %c0_1 = arith.constant 0 : index
    %0 = vector.load %arg1[%c0, %c0_0, %c0_1] : memref<2x64x128xf32, #tpu.memory_space<vmem>>, vector<2x64x128xf32>
    %1 = vector.shape_cast %0 : vector<2x64x128xf32> to vector<128x128xf32>
    %cst = arith.constant dense<0.000000e+00> : vector<128xf32>
    %2 = vector.multi_reduction <add>, %1, %cst [1] : vector<128x128xf32> to vector<128xf32>
    %3 = vector.shape_cast %2 : vector<128xf32> to vector<128x1xf32>
    %cst_2 = arith.constant 1.280000e+02 : f32
    %4 = vector.broadcast %cst_2 : f32 to vector<128x1xf32>
    %5 = arith.divf %3, %4 : vector<128x1xf32>
    %6 = vector.broadcast %5 : vector<128x1xf32> to vector<128x128xf32>
    %7 = arith.subf %1, %6 : vector<128x128xf32>
    %8 = vector.broadcast %5 : vector<128x1xf32> to vector<128x128xf32>
    %9 = arith.subf %1, %8 : vector<128x128xf32>
    %10 = arith.mulf %7, %9 : vector<128x128xf32>
    %cst_3 = arith.constant dense<0.000000e+00> : vector<128xf32>
    %11 = vector.multi_reduction <add>, %10, %cst_3 [1] : vector<128x128xf32> to vector<128xf32>
    %12 = vector.shape_cast %11 : vector<128xf32> to vector<128x1xf32>
    %cst_4 = arith.constant 1.280000e+02 : f32
    %13 = vector.broadcast %cst_4 : f32 to vector<128x1xf32>
    %14 = arith.divf %12, %13 : vector<128x1xf32>
    %15 = vector.broadcast %5 : vector<128x1xf32> to vector<128x128xf32>
    %16 = arith.subf %1, %15 : vector<128x128xf32>
    %cst_5 = arith.constant 9.99999974E-6 : f32
    %17 = vector.broadcast %cst_5 : f32 to vector<128x1xf32>
    %18 = arith.maximumf %14, %17 : vector<128x1xf32>
    %19 = math.rsqrt %18 : vector<128x1xf32>
    %20 = vector.broadcast %19 : vector<128x1xf32> to vector<128x128xf32>
    %21 = arith.mulf %16, %20 : vector<128x128xf32>
    %c0_6 = arith.constant 0 : index
    %c0_7 = arith.constant 0 : index
    %22 = vector.load %arg2[%c0_6, %c0_7] : memref<1x128xf32, #tpu.memory_space<vmem>>, vector<1x128xf32>
    %23 = vector.broadcast %22 : vector<1x128xf32> to vector<128x128xf32>
    %24 = arith.mulf %21, %23 : vector<128x128xf32>
    %25 = arith.truncf %24 : vector<128x128xf32> to vector<128x128xbf16>
    %c0_8 = arith.constant 0 : index
    %c0_9 = arith.constant 0 : index
    %26 = vector.load %arg3[%c0_8, %c0_9] : memref<128x384xbf16, #tpu.memory_space<vmem>>, vector<128x384xbf16>
    %cst_10 = arith.constant dense<0.000000e+00> : vector<128x384xf32>
    %27 = tpu.matmul %25, %26, %cst_10 {dimension_numbers = #tpu.dot_dimension_numbers<[1], [0], [0], [1], [0, 0, 1, 1], [], []>} : vector<128x128xbf16>, vector<128x384xbf16>, vector<128x384xf32> -> vector<128x384xf32>
    %28 = vector.extract_strided_slice %27 {offsets = [0, 0], sizes = [128, 128], strides = [1, 1]} : vector<128x384xf32> to vector<128x128xf32>
    %29 = vector.extract_strided_slice %27 {offsets = [0, 128], sizes = [128, 128], strides = [1, 1]} : vector<128x384xf32> to vector<128x128xf32>
    %30 = vector.extract_strided_slice %27 {offsets = [0, 256], sizes = [128, 128], strides = [1, 1]} : vector<128x384xf32> to vector<128x128xf32>
    %c0_11 = arith.constant 0 : index
    %c0_12 = arith.constant 0 : index
    %31 = vector.load %arg4[%c0_11, %c0_12] : memref<128x128xf32, #tpu.memory_space<vmem>>, vector<128x128xf32>
    %32 = arith.mulf %28, %28 : vector<128x128xf32>
    %cst_13 = arith.constant dense<0.000000e+00> : vector<128x128xf32>
    %33 = tpu.matmul %32, %31, %cst_13 {dimension_numbers = #tpu.dot_dimension_numbers<[1], [0], [0], [1], [0, 0, 1, 1], [], []>} : vector<128x128xf32>, vector<128x128xf32>, vector<128x128xf32> -> vector<128x128xf32>
    %34 = arith.mulf %29, %29 : vector<128x128xf32>
    %cst_14 = arith.constant dense<0.000000e+00> : vector<128x128xf32>
    %35 = tpu.matmul %34, %31, %cst_14 {dimension_numbers = #tpu.dot_dimension_numbers<[1], [0], [0], [1], [0, 0, 1, 1], [], []>} : vector<128x128xf32>, vector<128x128xf32>, vector<128x128xf32> -> vector<128x128xf32>
    %cst_15 = arith.constant 1.000000e-24 : f32
    %36 = vector.broadcast %cst_15 : f32 to vector<128x128xf32>
    %37 = arith.maximumf %33, %36 : vector<128x128xf32>
    %38 = math.rsqrt %37 : vector<128x128xf32>
    %39 = arith.mulf %28, %38 : vector<128x128xf32>
    %c0_16 = arith.constant 0 : index
    %c0_17 = arith.constant 0 : index
    %40 = vector.load %arg5[%c0_16, %c0_17] : memref<1x128xf32, #tpu.memory_space<vmem>>, vector<1x128xf32>
    %41 = vector.broadcast %40 : vector<1x128xf32> to vector<128x128xf32>
    %42 = arith.mulf %39, %41 : vector<128x128xf32>
    %cst_18 = arith.constant 1.000000e-24 : f32
    %43 = vector.broadcast %cst_18 : f32 to vector<128x128xf32>
    %44 = arith.maximumf %35, %43 : vector<128x128xf32>
    %45 = math.rsqrt %44 : vector<128x128xf32>
    %46 = arith.mulf %29, %45 : vector<128x128xf32>
    %c0_19 = arith.constant 0 : index
    %c0_20 = arith.constant 0 : index
    %47 = vector.load %arg6[%c0_19, %c0_20] : memref<1x128xf32, #tpu.memory_space<vmem>>, vector<1x128xf32>
    %48 = vector.broadcast %47 : vector<1x128xf32> to vector<128x128xf32>
    %49 = arith.mulf %46, %48 : vector<128x128xf32>
    %50 = vector.shape_cast %42 : vector<128x128xf32> to vector<2x64x128xf32>
    %51 = arith.truncf %50 : vector<2x64x128xf32> to vector<2x64x128xbf16>
    %52 = vector.shape_cast %49 : vector<128x128xf32> to vector<2x64x128xf32>
    %53 = arith.truncf %52 : vector<2x64x128xf32> to vector<2x64x128xbf16>
    %54 = vector.shape_cast %30 : vector<128x128xf32> to vector<2x64x128xf32>
    %55 = arith.truncf %54 : vector<2x64x128xf32> to vector<2x64x128xbf16>
    %56 = vector.extract_strided_slice %51 {offsets = [0, 0, 0], sizes = [2, 64, 32], strides = [1, 1, 1]} : vector<2x64x128xbf16> to vector<2x64x32xbf16>
    %57 = vector.extract_strided_slice %53 {offsets = [0, 0, 0], sizes = [2, 64, 32], strides = [1, 1, 1]} : vector<2x64x128xbf16> to vector<2x64x32xbf16>
    %58 = vector.extract_strided_slice %55 {offsets = [0, 0, 0], sizes = [2, 64, 32], strides = [1, 1, 1]} : vector<2x64x128xbf16> to vector<2x64x32xbf16>
    "tpu.trace_start"() <{level = 10 : i32, message = "bid,bjd->bij"}> : () -> ()
    %cst_21 = arith.constant dense<0.000000e+00> : vector<2x64x64xf32>
    %59 = tpu.matmul %56, %57, %cst_21 {dimension_numbers = #tpu.dot_dimension_numbers<[2], [2], [1], [1], [0, 0, 0, 1, 1, 1], [0], [0]>} : vector<2x64x32xbf16>, vector<2x64x32xbf16>, vector<2x64x64xf32> -> vector<2x64x64xf32>
    "tpu.trace_stop"() : () -> ()
    %cst_22 = arith.constant dense<0xFF800000> : vector<2x64xf32>
    %60 = vector.multi_reduction <maximumf>, %59, %cst_22 [2] : vector<2x64x64xf32> to vector<2x64xf32>
    %61 = vector.shape_cast %60 : vector<2x64xf32> to vector<2x64x1xf32>
    %62 = vector.broadcast %61 : vector<2x64x1xf32> to vector<2x64x64xf32>
    %63 = arith.subf %59, %62 : vector<2x64x64xf32>
    %64 = math.exp %63 : vector<2x64x64xf32>
    %cst_23 = arith.constant dense<0.000000e+00> : vector<2x64xf32>
    %65 = vector.multi_reduction <add>, %64, %cst_23 [2] : vector<2x64x64xf32> to vector<2x64xf32>
    %66 = vector.shape_cast %65 : vector<2x64xf32> to vector<2x64x1xf32>
    %67 = tpu.reciprocal %66 {approx = true} : vector<2x64x1xf32> -> vector<2x64x1xf32>
    %68 = vector.broadcast %67 : vector<2x64x1xf32> to vector<2x64x64xf32>
    %69 = arith.mulf %64, %68 : vector<2x64x64xf32>
    %70 = arith.truncf %69 : vector<2x64x64xf32> to vector<2x64x64xbf16>
    "tpu.trace_start"() <{level = 10 : i32, message = "bij,bjd->bid"}> : () -> ()
    %cst_24 = arith.constant dense<0.000000e+00> : vector<2x64x32xf32>
    %71 = tpu.matmul %70, %58, %cst_24 {dimension_numbers = #tpu.dot_dimension_numbers<[2], [1], [1], [2], [0, 0, 0, 1, 1, 2], [0], [0]>} : vector<2x64x64xbf16>, vector<2x64x32xbf16>, vector<2x64x32xf32> -> vector<2x64x32xf32>
    "tpu.trace_stop"() : () -> ()
    %72 = vector.extract_strided_slice %51 {offsets = [0, 0, 32], sizes = [2, 64, 32], strides = [1, 1, 1]} : vector<2x64x128xbf16> to vector<2x64x32xbf16>
    %73 = vector.extract_strided_slice %53 {offsets = [0, 0, 32], sizes = [2, 64, 32], strides = [1, 1, 1]} : vector<2x64x128xbf16> to vector<2x64x32xbf16>
    %74 = vector.extract_strided_slice %55 {offsets = [0, 0, 32], sizes = [2, 64, 32], strides = [1, 1, 1]} : vector<2x64x128xbf16> to vector<2x64x32xbf16>
    "tpu.trace_start"() <{level = 10 : i32, message = "bid,bjd->bij"}> : () -> ()
    %cst_25 = arith.constant dense<0.000000e+00> : vector<2x64x64xf32>
    %75 = tpu.matmul %72, %73, %cst_25 {dimension_numbers = #tpu.dot_dimension_numbers<[2], [2], [1], [1], [0, 0, 0, 1, 1, 1], [0], [0]>} : vector<2x64x32xbf16>, vector<2x64x32xbf16>, vector<2x64x64xf32> -> vector<2x64x64xf32>
    "tpu.trace_stop"() : () -> ()
    %cst_26 = arith.constant dense<0xFF800000> : vector<2x64xf32>
    %76 = vector.multi_reduction <maximumf>, %75, %cst_26 [2] : vector<2x64x64xf32> to vector<2x64xf32>
    %77 = vector.shape_cast %76 : vector<2x64xf32> to vector<2x64x1xf32>
    %78 = vector.broadcast %77 : vector<2x64x1xf32> to vector<2x64x64xf32>
    %79 = arith.subf %75, %78 : vector<2x64x64xf32>
    %80 = math.exp %79 : vector<2x64x64xf32>
    %cst_27 = arith.constant dense<0.000000e+00> : vector<2x64xf32>
    %81 = vector.multi_reduction <add>, %80, %cst_27 [2] : vector<2x64x64xf32> to vector<2x64xf32>
    %82 = vector.shape_cast %81 : vector<2x64xf32> to vector<2x64x1xf32>
    %83 = tpu.reciprocal %82 {approx = true} : vector<2x64x1xf32> -> vector<2x64x1xf32>
    %84 = vector.broadcast %83 : vector<2x64x1xf32> to vector<2x64x64xf32>
    %85 = arith.mulf %80, %84 : vector<2x64x64xf32>
    %86 = arith.truncf %85 : vector<2x64x64xf32> to vector<2x64x64xbf16>
    "tpu.trace_start"() <{level = 10 : i32, message = "bij,bjd->bid"}> : () -> ()
    %cst_28 = arith.constant dense<0.000000e+00> : vector<2x64x32xf32>
    %87 = tpu.matmul %86, %74, %cst_28 {dimension_numbers = #tpu.dot_dimension_numbers<[2], [1], [1], [2], [0, 0, 0, 1, 1, 2], [0], [0]>} : vector<2x64x64xbf16>, vector<2x64x32xbf16>, vector<2x64x32xf32> -> vector<2x64x32xf32>
    "tpu.trace_stop"() : () -> ()
    %88 = vector.extract_strided_slice %51 {offsets = [0, 0, 64], sizes = [2, 64, 32], strides = [1, 1, 1]} : vector<2x64x128xbf16> to vector<2x64x32xbf16>
    %89 = vector.extract_strided_slice %53 {offsets = [0, 0, 64], sizes = [2, 64, 32], strides = [1, 1, 1]} : vector<2x64x128xbf16> to vector<2x64x32xbf16>
    %90 = vector.extract_strided_slice %55 {offsets = [0, 0, 64], sizes = [2, 64, 32], strides = [1, 1, 1]} : vector<2x64x128xbf16> to vector<2x64x32xbf16>
    "tpu.trace_start"() <{level = 10 : i32, message = "bid,bjd->bij"}> : () -> ()
    %cst_29 = arith.constant dense<0.000000e+00> : vector<2x64x64xf32>
    %91 = tpu.matmul %88, %89, %cst_29 {dimension_numbers = #tpu.dot_dimension_numbers<[2], [2], [1], [1], [0, 0, 0, 1, 1, 1], [0], [0]>} : vector<2x64x32xbf16>, vector<2x64x32xbf16>, vector<2x64x64xf32> -> vector<2x64x64xf32>
    "tpu.trace_stop"() : () -> ()
    %cst_30 = arith.constant dense<0xFF800000> : vector<2x64xf32>
    %92 = vector.multi_reduction <maximumf>, %91, %cst_30 [2] : vector<2x64x64xf32> to vector<2x64xf32>
    %93 = vector.shape_cast %92 : vector<2x64xf32> to vector<2x64x1xf32>
    %94 = vector.broadcast %93 : vector<2x64x1xf32> to vector<2x64x64xf32>
    %95 = arith.subf %91, %94 : vector<2x64x64xf32>
    %96 = math.exp %95 : vector<2x64x64xf32>
    %cst_31 = arith.constant dense<0.000000e+00> : vector<2x64xf32>
    %97 = vector.multi_reduction <add>, %96, %cst_31 [2] : vector<2x64x64xf32> to vector<2x64xf32>
    %98 = vector.shape_cast %97 : vector<2x64xf32> to vector<2x64x1xf32>
    %99 = tpu.reciprocal %98 {approx = true} : vector<2x64x1xf32> -> vector<2x64x1xf32>
    %100 = vector.broadcast %99 : vector<2x64x1xf32> to vector<2x64x64xf32>
    %101 = arith.mulf %96, %100 : vector<2x64x64xf32>
    %102 = arith.truncf %101 : vector<2x64x64xf32> to vector<2x64x64xbf16>
    "tpu.trace_start"() <{level = 10 : i32, message = "bij,bjd->bid"}> : () -> ()
    %cst_32 = arith.constant dense<0.000000e+00> : vector<2x64x32xf32>
    %103 = tpu.matmul %102, %90, %cst_32 {dimension_numbers = #tpu.dot_dimension_numbers<[2], [1], [1], [2], [0, 0, 0, 1, 1, 2], [0], [0]>} : vector<2x64x64xbf16>, vector<2x64x32xbf16>, vector<2x64x32xf32> -> vector<2x64x32xf32>
    "tpu.trace_stop"() : () -> ()
    %104 = vector.extract_strided_slice %51 {offsets = [0, 0, 96], sizes = [2, 64, 32], strides = [1, 1, 1]} : vector<2x64x128xbf16> to vector<2x64x32xbf16>
    %105 = vector.extract_strided_slice %53 {offsets = [0, 0, 96], sizes = [2, 64, 32], strides = [1, 1, 1]} : vector<2x64x128xbf16> to vector<2x64x32xbf16>
    %106 = vector.extract_strided_slice %55 {offsets = [0, 0, 96], sizes = [2, 64, 32], strides = [1, 1, 1]} : vector<2x64x128xbf16> to vector<2x64x32xbf16>
    "tpu.trace_start"() <{level = 10 : i32, message = "bid,bjd->bij"}> : () -> ()
    %cst_33 = arith.constant dense<0.000000e+00> : vector<2x64x64xf32>
    %107 = tpu.matmul %104, %105, %cst_33 {dimension_numbers = #tpu.dot_dimension_numbers<[2], [2], [1], [1], [0, 0, 0, 1, 1, 1], [0], [0]>} : vector<2x64x32xbf16>, vector<2x64x32xbf16>, vector<2x64x64xf32> -> vector<2x64x64xf32>
    "tpu.trace_stop"() : () -> ()
    %cst_34 = arith.constant dense<0xFF800000> : vector<2x64xf32>
    %108 = vector.multi_reduction <maximumf>, %107, %cst_34 [2] : vector<2x64x64xf32> to vector<2x64xf32>
    %109 = vector.shape_cast %108 : vector<2x64xf32> to vector<2x64x1xf32>
    %110 = vector.broadcast %109 : vector<2x64x1xf32> to vector<2x64x64xf32>
    %111 = arith.subf %107, %110 : vector<2x64x64xf32>
    %112 = math.exp %111 : vector<2x64x64xf32>
    %cst_35 = arith.constant dense<0.000000e+00> : vector<2x64xf32>
    %113 = vector.multi_reduction <add>, %112, %cst_35 [2] : vector<2x64x64xf32> to vector<2x64xf32>
    %114 = vector.shape_cast %113 : vector<2x64xf32> to vector<2x64x1xf32>
    %115 = tpu.reciprocal %114 {approx = true} : vector<2x64x1xf32> -> vector<2x64x1xf32>
    %116 = vector.broadcast %115 : vector<2x64x1xf32> to vector<2x64x64xf32>
    %117 = arith.mulf %112, %116 : vector<2x64x64xf32>
    %118 = arith.truncf %117 : vector<2x64x64xf32> to vector<2x64x64xbf16>
    "tpu.trace_start"() <{level = 10 : i32, message = "bij,bjd->bid"}> : () -> ()
    %cst_36 = arith.constant dense<0.000000e+00> : vector<2x64x32xf32>
    %119 = tpu.matmul %118, %106, %cst_36 {dimension_numbers = #tpu.dot_dimension_numbers<[2], [1], [1], [2], [0, 0, 0, 1, 1, 2], [0], [0]>} : vector<2x64x64xbf16>, vector<2x64x32xbf16>, vector<2x64x32xf32> -> vector<2x64x32xf32>
    "tpu.trace_stop"() : () -> ()
    %120 = tpu.concatenate %71, %87, %103, %119 in 2 : vector<2x64x32xf32>, vector<2x64x32xf32>, vector<2x64x32xf32>, vector<2x64x32xf32> -> vector<2x64x128xf32>
    %121 = vector.shape_cast %120 : vector<2x64x128xf32> to vector<128x128xf32>
    %122 = arith.truncf %121 : vector<128x128xf32> to vector<128x128xbf16>
    %c0_37 = arith.constant 0 : index
    %c0_38 = arith.constant 0 : index
    %123 = vector.load %arg7[%c0_37, %c0_38] : memref<128x128xbf16, #tpu.memory_space<vmem>>, vector<128x128xbf16>
    %cst_39 = arith.constant dense<0.000000e+00> : vector<128x128xf32>
    %124 = tpu.matmul %122, %123, %cst_39 {dimension_numbers = #tpu.dot_dimension_numbers<[1], [0], [0], [1], [0, 0, 1, 1], [], []>} : vector<128x128xbf16>, vector<128x128xbf16>, vector<128x128xf32> -> vector<128x128xf32>
    %125 = vector.shape_cast %124 : vector<128x128xf32> to vector<2x64x128xf32>
    %c0_40 = arith.constant 0 : index
    %c0_41 = arith.constant 0 : index
    %c0_42 = arith.constant 0 : index
    %126 = vector.load %arg8[%c0_40, %c0_41, %c0_42] : memref<2x64x128xf32, #tpu.memory_space<vmem>>, vector<2x64x128xf32>
    tpu.vector_store %arg8[%c0_40, %c0_41, %c0_42], %125 {strides = array<i32>} : memref<2x64x128xf32, #tpu.memory_space<vmem>>, vector<2x64x128xf32>,
    return
  }
  func.func @transform_0(%arg0: i32) -> (i32, i32, i32) {
    %c0_i32 = arith.constant 0 : i32
    %c0_i32_0 = arith.constant 0 : i32
    %c0_i32_1 = arith.constant 0 : i32
    return %arg0, %c0_i32, %c0_i32_0 : i32, i32, i32
  }
  func.func @transform_1(%arg0: i32) -> (i32, i32) {
    %c0_i32 = arith.constant 0 : i32
    %c0_i32_0 = arith.constant 0 : i32
    %c0_i32_1 = arith.constant 0 : i32
    return %c0_i32, %c0_i32_0 : i32, i32
  }
  func.func @transform_2(%arg0: i32) -> (i32, i32) {
    %c0_i32 = arith.constant 0 : i32
    %c0_i32_0 = arith.constant 0 : i32
    %c0_i32_1 = arith.constant 0 : i32
    return %c0_i32, %c0_i32_0 : i32, i32
  }
  func.func @transform_3(%arg0: i32) -> (i32, i32) {
    %c0_i32 = arith.constant 0 : i32
    %c0_i32_0 = arith.constant 0 : i32
    %c0_i32_1 = arith.constant 0 : i32
    return %c0_i32, %c0_i32_0 : i32, i32
  }
  func.func @transform_4(%arg0: i32) -> (i32, i32) {
    %c0_i32 = arith.constant 0 : i32
    %c0_i32_0 = arith.constant 0 : i32
    %c0_i32_1 = arith.constant 0 : i32
    return %c0_i32, %c0_i32_0 : i32, i32
  }
  func.func @transform_5(%arg0: i32) -> (i32, i32) {
    %c0_i32 = arith.constant 0 : i32
    %c0_i32_0 = arith.constant 0 : i32
    %c0_i32_1 = arith.constant 0 : i32
    return %c0_i32, %c0_i32_0 : i32, i32
  }
  func.func @transform_6(%arg0: i32) -> (i32, i32) {
    %c0_i32 = arith.constant 0 : i32
    %c0_i32_0 = arith.constant 0 : i32
    %c0_i32_1 = arith.constant 0 : i32
    return %c0_i32, %c0_i32_0 : i32, i32
  }
  func.func @transform_7(%arg0: i32) -> (i32, i32, i32) {
    %c0_i32 = arith.constant 0 : i32
    %c0_i32_0 = arith.constant 0 : i32
    %c0_i32_1 = arith.constant 0 : i32
    return %arg0, %c0_i32, %c0_i32_0 : i32, i32, i32
  }
}

</mosaic_0001>

<bundles_post_ra>
// kernel: tpu_custom_call.1
= control target key start
LH: loop header
LB: loop body
LE: loop exit
PB: predicated region body
PF: predicated region fallthrough
CT: control target
= control target key end

     0   :  { %s7785_s0 = inlined_call_operand.hbm [shape: f32[4,64,128], index: 0, kind: input, shape index: {}]   ;;  %s7786_s1 = inlined_call_operand.hbm [shape: f32[1,128], index: 1, kind: input, shape index: {}]   ;;  %s7787_s2 = inlined_call_operand.hbm [shape: bf16[128,384], index: 2, kind: input, shape index: {}]   ;;  %s7788_s3 = inlined_call_operand.hbm [shape: f32[128,128], index: 3, kind: input, shape index: {}]   ;;  %s7789_s4 = inlined_call_operand.vmem [shape: f32[1,128], index: 4, kind: input, shape index: {}]   ;;  %s7790_s5 = inlined_call_operand.vmem [shape: f32[1,128], index: 5, kind: input, shape index: {}]   ;;  %s7791_s6 = inlined_call_operand.hbm [shape: bf16[128,128], index: 6, kind: input, shape index: {}]   ;;  %s7792_s7 = inlined_call_operand.hbm [shape: f32[4,64,128], index: 7, kind: output, shape index: {}]  }
   0x1   :  { %7811 = sst [smem:[#allocation26_spill]] %s7786_s1 }
   0x2   :  { %12 = vsyncpa [#allocation3], 0 }
   0x3   :  { %14 = vsyncpa [#allocation3 + $0x1], 0 }
   0x4   :  { %15 = vsyncpa [#allocation6], 0 }
   0x5   :  { %16 = vsyncpa [#allocation9], 0 }
   0x6   :  { %17 = vsyncpa [#allocation4], 0 }
   0x7   :  { %19 = vsyncpa [#allocation4 + $0x1], 0  ;;  %s5299_s24 = smov 0   ;;  %s5301_s25 = smov 0  }
   0x8   :  { %s5303_s26 = smov 0   ;;  %s5305_s27 = smov 0  }
   0x9 LB: > { %s5320_s28 = sadd.s32 4294967295, %s5241_s27   ;;  %s4179_s29 = sadd.s32 4294967294, %s5241_s27   ;;  %s5241_s27 = sphi %s5305_s27, %s7912_s27   ;;  %s5237_s26 = sphi %s5303_s26, %s7911_s26   ;;  %s5233_s25 = sphi %s5301_s25, %s7910_s25   ;;  %s5229_s24 = sphi %s5299_s24, %s7909_s24  }
   0xa   : > { %p45_p0 = scmp.ne.s32.totalorder %s5233_s25, %s5229_s24  ;;  %p46_p1 = scmp.eq.s32.totalorder %s5320_s28, 0 }
   0xb   : > { %p195_p2 = scmp.eq.s32.totalorder %s5320_s28, 1  ;;  %p201_p3 = scmp.eq.s32.totalorder %s4179_s29, 1 }
   0xc   : > { %p5329_p4 = por %p46_p1, %p45_p0  ;;  %p4180_p5 = scmp.ge.s32.totalorder %s5241_s27, 1 }
   0xd   : > { %p5334_p6 = por %p201_p3, %p45_p0  ;;  %p208_p7 = scmp.lt.s32.totalorder %s5241_s27, 3 }
   0xe   : > { %s7814_s1 = sld [smem:[#allocation26_spill]]  ;;  %s5243_s13 = smov [#allocation5]  }
   0xf   : > { %p5342_p8 = pnand %p4180_p5, %p208_p7  ;;  %s222_s14 = sshll.u32 %s5243_s13, 4  ;;  %s223_s14 = int_to_ptr.vmem [resolvable:$true] %s222_s14 }
  0x10   : > { %s245_s17 = sshll.u32 %s7788_s3, 4  ;;  %s5244_s19 = smov [#allocation8]   ;;  %s246_s17 = int_to_ptr.hbm [resolvable:$true] %s245_s17 }
  0x11   : > { %p4459_p10 = pneg %p5342_p8  ;;  %s247_s20 = sshll.u32 %s5244_s19, 4  ;;  %s248_s20 = int_to_ptr.vmem [resolvable:$true] %s247_s20 }
  0x12   : > { %s7793_s21 = smov 128   ;;  %s7794_s22 = smov 8  }
  0x13   : > { %p5354_p11 = pnand %p4459_p10, %p46_p1  ;;  %s231_s9 = sshll.u32 %s7787_s2, 4  ;;  %s232_s9 = int_to_ptr.hbm [resolvable:$true] %s231_s9 }
  0x14   : > { %s220_s11 = sshll.u32 %s7814_s1, 4  ;;  %s5247_s10 = smov [#allocation7]   ;;  %s221_s11 = int_to_ptr.hbm [resolvable:$true] %s220_s11 }
  0x15   : > { %4462 = dma.hbm_to_vmem [thread:$0]  (!%p5354_p11), %s221_s11, 16, %s223_s14, [#allocation6]  }
  0x16   : > { %4468 = dma.hbm_to_vmem [thread:$0]  (!%p5354_p11), %s246_s17, 2048, %s248_s20, [#allocation9], %s7793_s21, %s7793_s21, %s7794_s22  }
  0x17   : > { %s233_s13 = sshll.u32 %s5247_s10, 4  ;;  %s265_s15 = sshll.u32 %s7791_s6, 4  ;;  %s234_s13 = int_to_ptr.vmem [resolvable:$true] %s233_s13  ;;  %s266_s15 = int_to_ptr.hbm [resolvable:$true] %s265_s15 }
  0x18   : > { %s5248_s16 = smov 192   ;;  %s5249_s17 = smov 12  }
  0x19   : > { %4465 = dma.hbm_to_vmem [thread:$0]  (!%p5354_p11), %s232_s9, 3072, %s234_s13, [#allocation6], %s5248_s16, %s5248_s16, %s5249_s17  }
  0x1a   : > { %s5250_s19 = smov [#allocation10]   ;;  %s5251_s23 = smov 64  }
  0x1b   : > { %s267_s20 = sshll.u32 %s5250_s19, 4  ;;  %s5252_s29 = smov 4   ;;  %s268_s20 = int_to_ptr.vmem [resolvable:$true] %s267_s20 }
  0x1c   : > { %4471 = dma.hbm_to_vmem [thread:$0]  (!%p5354_p11), %s266_s15, 1024, %s268_s20, [#allocation9], %s5251_s23, %s5251_s23, %s5252_s29  }
  0x1d   : > { %s5376_s10 = sadd.s32 1, %s5241_s27   ;;  %s32_s14 = sadd.s32 1, %s5237_s26 }
  0x1e   : > { %s29_s11 = ssub.s32 %s5241_s27, %s5376_s10  ;;  %p39_p13 = scmp.ne.s32.totalorder %s5237_s26, %s5233_s25 }
  0x1f   : > { %p30_p12 = scmp.eq.s32.totalorder %s29_s11, 0  ;;  %p40_p0 = scmp.eq.s32.totalorder %s5241_s27, 0 }
  0x20   : > { %p5389_p5 = por %p195_p2, %p39_p13  ;;  %p4484_p7 = scmp.lt.s32.totalorder %s5241_s27, 2 }
  0x21   : > { %s5385_s9 = scalar_select %p30_p12, %s5237_s26, %s32_s14  }
  0x22   : > { %p41_p3 = por %p40_p0, %p39_p13  ;;  %s281_s16 = sand.u32 1, %s5237_s26  }
  0x23   : > { %s4186_s18 = sshll.u32 %s281_s16, 7  ;;  %s4396_s15 = sshll.u32 %s5241_s27, 7 }
  0x24   : > { %s291_s20 = scalar_lea.hbm %s7785_s0, %s4396_s15  ;;  %s285_s23 = scalar_lea.vmem [#allocation2], %s4186_s18 }
  0x25   : > { %s294_s29 = sshll.u32 %s285_s23, 4  ;;  %s292_s11 = sshll.u32 %s291_s20, 4  ;;  %s295_s29 = int_to_ptr.vmem [resolvable:$true] %s294_s29  ;;  %s293_s11 = int_to_ptr.hbm [resolvable:$true] %s292_s11 }
  0x26   : > { %p5399_p10 = pnand %p4484_p7, %p41_p3  ;;  %s282_s21 = scalar_lea.sflag [#allocation3], %s281_s16 }
  0x27   : > { %s5137_s22 = sshra.s32 %s293_s11, 4  ;;  %s5144_s17 = scalar_lea.hbm %s7785_s0, 256  ;;  %s5138_s22 = int_to_ptr.hbm [resolvable:$true] %s5137_s22 }
  0x28   : > { %s5139_s1 = scalar_lea.hbm %s5138_s22, 128  ;;  %p5141_p11 = pneg %p5399_p10 }
  0x29   : > { %p5140_p2 = scmp.ne.s32.totalorder %s5138_s22, %s5139_s1  ;;  %p5145_p0 = scmp.lt.s32.totalorder %s5138_s22, %s7785_s0 }
  0x2a   : > { %p5146_p3 = scmp.lt.s32.totalorder %s5144_s17, %s5139_s1 }
  0x2b   : > { %p5142_p12 = pnand %p5141_p11, %p5140_p2 }
  0x2c   : > { %p5147_p7 = por %p5146_p3, %p5145_p0 }
  0x2d   : > { %p5143_p13 = pneg %p5142_p12 }
  0x2f   : > { %p5148_p9 = pnand %p5147_p7, %p5143_p13 }
  0x31   : > { %5151 = shalt.err (!%p5148_p9)
}
  0x32   : > { %s7819_s16 = smov 8   ;;  %s7820_s23 = smov 128  }
  0x33   : > { %4475 = dma.hbm_to_vmem [thread:$0]  (!%p5399_p10), %s293_s11, 2048, %s295_s29, %s282_s21, %s7820_s23, %s7820_s23, %s7819_s16  }
  0x34   : > { %306 = sbr.rel (%p5342_p8) target bundleno = 2537 (0x9e9), region = 48 }
  0x39   : > { %s5419_s15 = sand.u32 1, %s5233_s25  }
  0x3a   : > { %s4191_s1 = sshll.u32 %s5419_s15, 7  ;;  %s309_s22 = scalar_lea.sflag [#allocation3], %s5419_s15 }
  0x3b   : > { %s5425_s18 = scalar_lea.vmem [#allocation2], %s4191_s1 }
  0x3c   : > { %5212 = dma.done.wait (%p5329_p4), %s309_s22, 2048  }
  0x3d   : > { %5214 = vsyncadd (%p5329_p4), %s309_s22, 4294965248 }
  0x3e   : > { %5216 = dma.done.wait (%p46_p1), [#allocation6], 3088  }
  0x3f   : > { %5218 = vsyncadd (%p46_p1), [#allocation6], 4294964208 }
  0x40   : > { %5220 = dma.done.wait (%p46_p1), [#allocation9], 3072  }
  0x41   : > { %5222 = vsyncadd (%p46_p1), [#allocation9], 4294964224  ;;  %v369_v0 = vld [vmem:[%s5425_s18 + $0x10] sm:$0xff]  ;;  %v367_v1 = vld [vmem:[%s5425_s18] sm:$0xff]  ;;  %v5253_v7 = vmov 128.0   ;;  %s5254_s11 = smov 64  }
  0x42   : > { %387 = vadd.xlane.f32.xlu1 %v369_v0  ;;  %383 = vadd.xlane.f32.xlu0 %v367_v1  ;;  %v371_v2 = vld [vmem:[%s5425_s18 + $0x20] sm:$0xff]  ;;  %v370_v3 = vld [vmem:[%s5425_s18 + $0x18] sm:$0xff]  ;;  %v368_v4 = vld [vmem:[%s5425_s18 + $0x8] sm:$0xff]  ;;  %4661 = vrcp.f32 %v5253_v7  ;;  %s5255_s14 = smov 96   ;;  %s5256_s17 = smov 32  }
  0x43   : > { %391 = vadd.xlane.f32.xlu2 %v371_v2  ;;  %v372_v5 = vld [vmem:[%s5425_s18 + $0x28] sm:$0xff]  ;;  %v373_v6 = vld [vmem:[%s5425_s18 + $0x30] sm:$0xff]  ;;  %v5462_v28 = vld [vmem:[%s5425_s18 + $0x38] sm:$0xff]  ;;  %s7701_s22 = scalar_lea.vmem [#allocation11], %s4191_s1  ;;  %s4430_s1 = sshll.u32 %s5320_s28, 7 }
  0x44   : > { %v5477_v36 = vld [vmem:[%s5425_s18 + $0x40] sm:$0xff]  ;;  %v5488_v42 = vld [vmem:[%s5425_s18 + $0x58] sm:$0xff]  ;;  %v5491_v43 = vld [vmem:[%s5425_s18 + $0x48] sm:$0xff]  ;;  %s4064_s12 = scalar_lea.hbm %s7792_s7, %s4430_s1  ;;  %s4065_s21 = sshll.u32 %s7701_s22, 4  ;;  %s4066_s21 = int_to_ptr.vmem [resolvable:$true] %s4065_s21 }
  0x45   : > { %v5500_v46 = vld [vmem:[%s5425_s18 + $0x60] sm:$0xff]  ;;  %v5503_v47 = vld [vmem:[%s5425_s18 + $0x50] sm:$0xff]  ;;  %v5508_v48 = vld [vmem:[%s5425_s18 + $0x68] sm:$0xff]  ;;  %s4067_s29 = sshll.u32 %s4064_s12, 4  ;;  %s5187_s20 = scalar_lea.hbm %s7792_s7, 256  ;;  %s4068_s29 = int_to_ptr.hbm [resolvable:$true] %s4067_s29 }
  0x46   : > { %v5512_v49 = vld [vmem:[%s5425_s18 + $0x70] sm:$0xff]  ;;  %v4283_v50 = vld [vmem:[#allocation7 + $0xa8] sm:$0xf]  ;;  %v4285_v54 = vld [vmem:[#allocation7 + $0xb4] sm:$0xf0] }
  0x47   : > { %v4419_v51 = vld [vmem:[#allocation7 + $0xb0] sm:$0xf0]  ;;  %v4418_v52 = vld [vmem:[#allocation7 + $0xac] sm:$0xf]  ;;  %v4291_v55 = vld [vmem:[#allocation7 + $0xb0] sm:$0xf] }
  0x48   : > { %v4662_v8 = vpop.eup %4661  ;;  %v4284_v53 = vor.u32 %v4419_v51, %v4283_v50  ;;  %v4420_v56 = vld [vmem:[#allocation7 + $0xb8] sm:$0xf0]  ;;  %v4288_v57 = vor.u32 %v4418_v52, %v4285_v54  ;;  %v4271_v59 = vld [vmem:[#allocation7 + $0x90] sm:$0xf]  ;;  %v4415_v61 = vld [vmem:[#allocation7 + $0x94] sm:$0xf] }
  0x49   : > { %v416_v9 = vmul.f32 128.0, %v4662_v8  ;;  %vm420_vm0 = vweird.f32 %v4662_v8  ;;  %v4292_v58 = vor.u32 %v4420_v56, %v4291_v55  ;;  %v4416_v60 = vld [vmem:[#allocation7 + $0x98] sm:$0xf0]  ;;  %v4273_v63 = vld [vmem:[#allocation7 + $0x9c] sm:$0xf0] }
  0x4a   : > { %389 = vadd.xlane.f32.xlu1 %v370_v3  ;;  %385 = vadd.xlane.f32.xlu0 %v368_v4  ;;  %v4272_v62 = vor.u32 %v4416_v60, %v4271_v59  ;;  %v4225_v51 = vld [vmem:[#allocation7 + $0x3c] sm:$0xf0]  ;;  %v4231_v52 = vld [vmem:[#allocation7 + $0x38] sm:$0xf]  ;;  %v4213_v60 = vld [vmem:[#allocation7 + $0x24] sm:$0xf0] }
  0x4b   : > { %393 = vadd.xlane.f32.xlu2 %v372_v5  ;;  %v417_v10 = vsub.f32 1.0, %v416_v9  ;;  %898 = vmatpush.bf16.msra.mxu0 %v4284_v53  ;;  %v4267_v9 = vld [vmem:[#allocation7 + $0x80] sm:$0xf]  ;;  %v4405_v53 = vld [vmem:[#allocation7 + $0x40] sm:$0xf0] }
  0x4c   : > { %947 = vmatpush.bf16.msra.mxu1 %v4288_v57  ;;  %996 = vmatpush.bf16.msra.mxu2 %v4292_v58  ;;  %v4232_v55 = vor.u32 %v4405_v53, %v4231_v52  ;;  %v4211_v56 = vld [vmem:[#allocation7 + $0x18] sm:$0xf]  ;;  %v4401_v57 = vld [vmem:[#allocation7 + $0x20] sm:$0xf0] }
  0x4d   : > { %v418_v11 = vmul.f32 %v4662_v8, %v417_v10  ;;  %4431 = vmatpush.bf16.msra.mxu3 %v4292_v58  ;;  %v4414_v10 = vld [vmem:[#allocation7 + $0x88] sm:$0xf0]  ;;  %v4400_v58 = vld [vmem:[#allocation7 + $0x1c] sm:$0xf]  ;;  %v4212_v59 = vor.u32 %v4401_v57, %v4211_v56 }
  0x4f   : > { %v419_v12 = vadd.f32 %v4662_v8, %v418_v11  ;;  %899 = vmatpush.bf16.msra.mxu0 %v4272_v62  ;;  %v4402_v62 = vld [vmem:[#allocation7 + $0x28] sm:$0xf0] }
  0x51   : > { %v5446_v13 = vsel %vm420_vm0, %v4662_v8, %v419_v12  ;;  %v4261_v8 = vld [vmem:[#allocation7 + $0x84] sm:$0xf0]  ;;  %v4268_v12 = vor.u32 %v4414_v10, %v4267_v9  ;;  %v4399_v9 = vld [vmem:[#allocation7 + $0x10] sm:$0xf0] }
  0x53   : > { %395 = vadd.xlane.f32.xlu2 %v373_v6 }
  0xb5   : > { %v388_v14 = vpop.xlane.xlu1 %387  ;;  %v384_v15 = vpop.xlane.xlu0 %383 }
  0xb6   : > { %v422_v16 = vmul.f32 %v5446_v13, %v384_v15  ;;  %v392_v18 = vpop.xlane.xlu2 %391  ;;  %v424_v27 = vmul.f32 %v5446_v13, %v388_v14  ;;  %v4247_v14 = vld [vmem:[#allocation7 + $0x60] sm:$0xf]  ;;  %v4410_v15 = vld [vmem:[#allocation7 + $0x68] sm:$0xf0] }
  0xb7   : > { %v426_v26 = vmul.f32 %v5446_v13, %v392_v18  ;;  %v4248_v18 = vor.u32 %v4410_v15, %v4247_v14 }
  0xb8   : > { %v5449_v17 = vsub.f32 %v367_v1, %v422_v16  ;;  %v5471_v33 = vsub.f32 %v369_v0, %v424_v27  ;;  %v4279_v0 = vld [vmem:[#allocation7 + $0x98] sm:$0xf]  ;;  %v4417_v1 = vld [vmem:[#allocation7 + $0xa0] sm:$0xf0]  ;;  %v4407_v27 = vld [vmem:[#allocation7 + $0x50] sm:$0xf0] }
  0xb9   : > { %v5469_v32 = vsub.f32 %v371_v2, %v426_v26  ;;  %v4276_v2 = vor.u32 %v4415_v61, %v4273_v63  ;;  %v4409_v16 = vld [vmem:[#allocation7 + $0x64] sm:$0xf]  ;;  %v4235_v26 = vld [vmem:[#allocation7 + $0x48] sm:$0xf]  ;;  %v4219_v61 = vld [vmem:[#allocation7 + $0x20] sm:$0xf]  ;;  %v4216_v63 = vor.u32 %v4400_v58, %v4213_v60 }
  0xba   : > { %v454_v19 = vmul.f32 %v5449_v17, %v5449_v17  ;;  %v456_v37 = vmul.f32 %v5471_v33, %v5471_v33 }
  0xbb   : > { %v458_v34 = vmul.f32 %v5469_v32, %v5469_v32  ;;  %948 = vmatpush.bf16.msra.mxu1 %v4276_v2 }
  0xbc   : > { %470 = vadd.xlane.f32.xlu0 %v454_v19  ;;  %v4249_v19 = vld [vmem:[#allocation7 + $0x6c] sm:$0xf0] }
  0xbd   : > { %v390_v20 = vpop.xlane.xlu1 %389  ;;  %v386_v21 = vpop.xlane.xlu0 %385 }
  0xbe   : > { %v425_v22 = vmul.f32 %v5446_v13, %v390_v20  ;;  %v423_v23 = vmul.f32 %v5446_v13, %v386_v21  ;;  %v394_v31 = vpop.xlane.xlu2 %393  ;;  %v4255_v20 = vld [vmem:[#allocation7 + $0x68] sm:$0xf]  ;;  %v4411_v21 = vld [vmem:[#allocation7 + $0x70] sm:$0xf0] }
  0xbf   : > { %v427_v35 = vmul.f32 %v5446_v13, %v394_v31  ;;  %v4237_v31 = vld [vmem:[#allocation7 + $0x54] sm:$0xf0] }
  0xc0   : > { %v5455_v24 = vsub.f32 %v370_v3, %v425_v22  ;;  %v5457_v25 = vsub.f32 %v368_v4, %v423_v23  ;;  %v4280_v3 = vor.u32 %v4417_v1, %v4279_v0  ;;  %v4259_v4 = vld [vmem:[#allocation7 + $0x78] sm:$0xf]  ;;  %v4252_v22 = vor.u32 %v4409_v16, %v4249_v19 }
  0xc1   : > { %v5482_v38 = vsub.f32 %v372_v5, %v427_v35  ;;  %v4413_v5 = vld [vmem:[#allocation7 + $0x80] sm:$0xf0]  ;;  %v4256_v23 = vor.u32 %v4411_v21, %v4255_v20  ;;  %v4408_v35 = vld [vmem:[#allocation7 + $0x58] sm:$0xf0]  ;;  %v4220_v0 = vor.u32 %v4402_v62, %v4219_v61 }
  0xc2   : > { %v457_v29 = vmul.f32 %v5455_v24, %v5455_v24  ;;  %v455_v30 = vmul.f32 %v5457_v25, %v5457_v25  ;;  %997 = vmatpush.bf16.msra.mxu2 %v4280_v3  ;;  %v4260_v7 = vor.u32 %v4413_v5, %v4259_v4  ;;  %4432 = vmatpush.bf16.msra.mxu3 %v4280_v3  ;;  %v4199_v3 = vld [vmem:[#allocation7] sm:$0xf]  ;;  %v4398_v4 = vld [vmem:[#allocation7 + $0x8] sm:$0xf0]  ;;  %v4397_v5 = vld [vmem:[#allocation7 + $0x4] sm:$0xf] }
  0xc3   : > { %v459_v40 = vmul.f32 %v5482_v38, %v5482_v38 }
  0xc4   : > { %476 = vadd.xlane.f32.xlu2 %v457_v29  ;;  %397 = vadd.xlane.f32.xlu0 %v5462_v28  ;;  %v4406_v29 = vld [vmem:[#allocation7 + $0x4c] sm:$0xf] }
  0xc5   : > { %472 = vadd.xlane.f32.xlu1 %v455_v30  ;;  %900 = vmatpush.bf16.msra.mxu0 %v4260_v7  ;;  %v4236_v30 = vor.u32 %v4407_v27, %v4235_v26  ;;  %v4201_v7 = vld [vmem:[#allocation7 + $0xc] sm:$0xf0] }
  0xc6   : > { %v396_v39 = vpop.xlane.xlu2 %395  ;;  %998 = vmatpush.bf16.msra.mxu2 %v4268_v12  ;;  %4433 = vmatpush.bf16.msra.mxu3 %v4268_v12 }
  0xc7   : > { %v428_v41 = vmul.f32 %v5446_v13, %v396_v39 }
  0xc9   : > { %v5494_v44 = vsub.f32 %v373_v6, %v428_v41  ;;  %v4412_v6 = vld [vmem:[#allocation7 + $0x7c] sm:$0xf]  ;;  %901 = vmatpush.bf16.msra.mxu0 %v4248_v18 }
  0xca   : > { %v4264_v11 = vor.u32 %v4412_v6, %v4261_v8  ;;  %999 = vmatpush.bf16.msra.mxu2 %v4256_v23  ;;  %4434 = vmatpush.bf16.msra.mxu3 %v4256_v23  ;;  %v4404_v41 = vld [vmem:[#allocation7 + $0x38] sm:$0xf0]  ;;  %v4200_v6 = vor.u32 %v4398_v4, %v4199_v3  ;;  %v4207_v8 = vld [vmem:[#allocation7 + $0x8] sm:$0xf] }
  0xcb   : > { %v460_v45 = vmul.f32 %v5494_v44, %v5494_v44  ;;  %v4208_v12 = vor.u32 %v4399_v9, %v4207_v8 }
  0xcc   : > { %478 = vadd.xlane.f32.xlu2 %v458_v34  ;;  %399 = vadd.xlane.f32.xlu0 %v5477_v36  ;;  %v4243_v34 = vld [vmem:[#allocation7 + $0x50] sm:$0xf] }
  0xcd   : > { %474 = vadd.xlane.f32.xlu1 %v456_v37  ;;  %949 = vmatpush.bf16.msra.mxu1 %v4264_v11  ;;  %v4240_v37 = vor.u32 %v4406_v29, %v4237_v31  ;;  %v4244_v39 = vor.u32 %v4408_v35, %v4243_v34  ;;  %v4204_v11 = vor.u32 %v4397_v5, %v4201_v7 }
  0xce   : > { %902 = vmatpush.bf16.msra.mxu0 %v4236_v30 }
  0xcf   : > { %1000 = vmatpush.bf16.msra.mxu2 %v4244_v39  ;;  %4435 = vmatpush.bf16.msra.mxu3 %v4244_v39 }
  0xd1   : > { %950 = vmatpush.bf16.msra.mxu1 %v4252_v22 }
  0xd3   : > { %1001 = vmatpush.bf16.msra.mxu2 %v4232_v55  ;;  %4436 = vmatpush.bf16.msra.mxu3 %v4232_v55 }
  0xd4   : > { %405 = vadd.xlane.f32.xlu2 %v5488_v42  ;;  %480 = vadd.xlane.f32.xlu0 %v459_v40  ;;  %v4223_v40 = vld [vmem:[#allocation7 + $0x30] sm:$0xf] }
  0xd5   : > { %401 = vadd.xlane.f32.xlu1 %v5491_v43  ;;  %951 = vmatpush.bf16.msra.mxu1 %v4240_v37  ;;  %v4224_v50 = vor.u32 %v4404_v41, %v4223_v40 }
  0xd7   : > { %903 = vmatpush.bf16.msra.mxu0 %v4224_v50  ;;  %1002 = vmatpush.bf16.msra.mxu2 %v4220_v0 }
  0xd8   : > { %4437 = vmatpush.bf16.msra.mxu3 %v4220_v0 }
  0xdb   : > { %904 = vmatpush.bf16.msra.mxu0 %v4212_v59  ;;  %1003 = vmatpush.bf16.msra.mxu2 %v4208_v12 }
  0xdc   : > { %407 = vadd.xlane.f32.xlu2 %v5500_v46  ;;  %482 = vadd.xlane.f32.xlu0 %v460_v45  ;;  %v4403_v45 = vld [vmem:[#allocation7 + $0x34] sm:$0xf] }
  0xdd   : > { %403 = vadd.xlane.f32.xlu1 %v5503_v47  ;;  %v4228_v54 = vor.u32 %v4403_v45, %v4225_v51  ;;  %4438 = vmatpush.bf16.msra.mxu3 %v4208_v12 }
  0xdf   : > { %952 = vmatpush.bf16.msra.mxu1 %v4228_v54  ;;  %905 = vmatpush.bf16.msra.mxu0 %v4200_v6 }
  0xe3   : > { %953 = vmatpush.bf16.msra.mxu1 %v4216_v63 }
  0xe4   : > { %409 = vadd.xlane.f32.xlu0 %v5508_v48 }
  0xe7   : > { %954 = vmatpush.bf16.msra.mxu1 %v4204_v11 }
  0xec   : > { %411 = vadd.xlane.f32.xlu0 %v5512_v49 }
 0x12f   : > { %v471_v1 = vpop.xlane.xlu0 %470 }
 0x130   : > { %v502_v2 = vmul.f32 %v471_v1, %v5446_v13 }
 0x132   : > { %v518_v10 = vmax.f32 %v502_v2, 1e-05 }
 0x134   : > { %4663 = vrsqrt.f32 %v518_v10  ;;  %vm540_vm2 = vweird.f32 %v518_v10 }
 0x137   : > { %v477_v14 = vpop.xlane.xlu2 %476  ;;  %v398_v15 = vpop.xlane.xlu0 %397 }
 0x138   : > { %v505_v16 = vmul.f32 %v477_v14, %v5446_v13  ;;  %v473_v18 = vpop.xlane.xlu1 %472  ;;  %v429_v19 = vmul.f32 %v5446_v13, %v398_v15  ;;  %v5575_v14 = vld [vmem:[%s5425_s18 + $0x78] sm:$0xff] }
 0x139   : > { %v503_v20 = vmul.f32 %v473_v18, %v5446_v13 }
 0x13a   : > { %v4664_v21 = vpop.eup %4663  ;;  %v5519_v22 = vmax.f32 %v505_v16, 1e-05  ;;  %v5522_v23 = vsub.f32 %v5462_v28, %v429_v19  ;;  %v5578_v16 = vld [vmem:[#allocation5] ss:$0 sm:$0xff] }
 0x13b   : > { %v535_v26 = vmul.f32 %v4664_v21, %v518_v10  ;;  %v519_v27 = vmax.f32 %v503_v20, 1e-05  ;;  %vm541_vm1 = vweird.f32 %v4664_v21 }
 0x13c   : > { %4665 = vrsqrt.f32 %v5519_v22  ;;  %v461_v29 = vmul.f32 %v5522_v23, %v5522_v23  ;;  %vm5544_vm5 = vmor %vm540_vm2, %vm541_vm1  ;;  %vm570_vm9 = vweird.f32 %v5519_v22 }
 0x13d   : > { %v536_v30 = vmul.f32 %v4664_v21, %v535_v26  ;;  %4667 = vrsqrt.f32 %v519_v27  ;;  %vm550_vm3 = vweird.f32 %v519_v27 }
 0x13e   : > { %484 = vadd.xlane.f32.xlu1 %v461_v29 }
 0x13f   : > { %v537_v31 = vmul.f32 0.5, %v536_v30  ;;  %v479_v34 = vpop.xlane.xlu2 %478  ;;  %v400_v35 = vpop.xlane.xlu0 %399 }
 0x140   : > { %v475_v37 = vpop.xlane.xlu1 %474  ;;  %v430_v39 = vmul.f32 %v5446_v13, %v400_v35  ;;  %v506_v54 = vmul.f32 %v479_v34, %v5446_v13 }
 0x141   : > { %v504_v40 = vmul.f32 %v475_v37, %v5446_v13  ;;  %v538_v41 = vsub.f32 1.5, %v537_v31 }
 0x142   : > { %v5529_v28 = vpop.eup %4665  ;;  %v5532_v45 = vsub.f32 %v5477_v36, %v430_v39  ;;  %v5549_v1 = vmax.f32 %v506_v54, 1e-05 }
 0x143   : > { %v4668_v50 = vpop.eup %4667  ;;  %v5534_v51 = vmax.f32 %v504_v40, 1e-05  ;;  %v565_v53 = vmul.f32 %v5529_v28, %v5519_v22  ;;  %v539_v56 = vmul.f32 %v4664_v21, %v538_v41  ;;  %vm571_vm10 = vweird.f32 %v5529_v28 }
 0x144   : > { %v545_v52 = vmul.f32 %v4668_v50, %v519_v27  ;;  %v462_v55 = vmul.f32 %v5532_v45, %v5532_v45  ;;  %vm551_vm4 = vweird.f32 %v4668_v50  ;;  %vm572_vm12 = vmor %vm570_vm9, %vm571_vm10  ;;  %vm580_vm15 = vweird.f32 %v5549_v1 }
 0x145   : > { %4669 = vrsqrt.f32 %v5534_v51  ;;  %v566_v0 = vmul.f32 %v5529_v28, %v565_v53  ;;  %v543_v6 = vsel %vm5544_vm5, %v4664_v21, %v539_v56  ;;  %vm5560_vm6 = vmor %vm550_vm3, %vm551_vm4  ;;  %vm560_vm7 = vweird.f32 %v5534_v51 }
 0x146   : > { %v546_v57 = vmul.f32 %v4668_v50, %v545_v52  ;;  %486 = vadd.xlane.f32.xlu1 %v462_v55  ;;  %v694_v15 = vmul.f32 %v543_v6, %v5449_v17 }
 0x147   : > { %v406_v36 = vpop.xlane.xlu2 %405  ;;  %v481_v58 = vpop.xlane.xlu0 %480 }
 0x148   : > { %v547_v59 = vmul.f32 0.5, %v546_v57  ;;  %v433_v60 = vmul.f32 %v5446_v13, %v406_v36  ;;  %v402_v61 = vpop.xlane.xlu1 %401  ;;  %v507_v62 = vmul.f32 %v481_v58, %v5446_v13  ;;  %v714_v31 = vmul.f32 %v5578_v16, %v694_v15 }
 0x149   : > { %v431_v2 = vmul.f32 %v5446_v13, %v402_v61 }
 0x14a   : > { %v548_v3 = vsub.f32 1.5, %v547_v59  ;;  %v5552_v4 = vmax.f32 %v507_v62, 1e-05  ;;  %v5555_v5 = vsub.f32 %v5488_v42, %v433_v60 }
 0x14b   : > { %v4670_v7 = vpop.eup %4669  ;;  %v5565_v9 = vsub.f32 %v5491_v43, %v431_v2  ;;  %v567_v43 = vmul.f32 0.5, %v566_v0 }
 0x14c   : > { %v549_v10 = vmul.f32 %v4668_v50, %v548_v3  ;;  %v555_v11 = vmul.f32 %v4670_v7, %v5534_v51  ;;  %4671 = vrsqrt.f32 %v5552_v4  ;;  %v465_v42 = vmul.f32 %v5555_v5, %v5555_v5 }
 0x14d   : > { %4673 = vrsqrt.f32 %v5549_v1  ;;  %v463_v12 = vmul.f32 %v5565_v9, %v5565_v9  ;;  %v568_v37 = vsub.f32 1.5, %v567_v43  ;;  %vm561_vm8 = vweird.f32 %v4670_v7 }
 0x14e   : > { %v556_v18 = vmul.f32 %v4670_v7, %v555_v11  ;;  %v553_v19 = vsel %vm5560_vm6, %v4668_v50, %v549_v10  ;;  %492 = vadd.xlane.f32.xlu0 %v465_v42  ;;  %413 = vadd.xlane.f32.xlu1 %v5575_v14  ;;  %vm5602_vm11 = vmor %vm560_vm7, %vm561_vm8  ;;  %vm590_vm13 = vweird.f32 %v5552_v4 }
 0x14f   : > { %488 = vadd.xlane.f32.xlu2 %v463_v12  ;;  %v408_v20 = vpop.xlane.xlu2 %407  ;;  %v5582_v21 = vpop.xlane.xlu0 %482  ;;  %v695_v26 = vmul.f32 %v553_v19, %v5457_v25  ;;  %v569_v22 = vmul.f32 %v5529_v28, %v568_v37 }
 0x150   : > { %v557_v27 = vmul.f32 0.5, %v556_v18  ;;  %v434_v29 = vmul.f32 %v5446_v13, %v408_v20  ;;  %v404_v17 = vpop.xlane.xlu1 %403  ;;  %v508_v19 = vmul.f32 %v5582_v21, %v5446_v13 }
 0x151   : > { %v432_v30 = vmul.f32 %v5446_v13, %v404_v17  ;;  %v715_v34 = vmul.f32 %v5578_v16, %v695_v26  ;;  %v573_v60 = vsel %vm572_vm12, %v5529_v28, %v569_v22 }
 0x152   : > { %v4672_v35 = vpop.eup %4671  ;;  %v558_v39 = vsub.f32 1.5, %v557_v27  ;;  %v5592_v25 = vsub.f32 %v5500_v46, %v434_v29  ;;  %v697_v0 = vmul.f32 %v573_v60, %v5455_v24  ;;  %v524_v20 = vmax.f32 %v508_v19, 1e-05 }
 0x153   : > { %v4674_v40 = vpop.eup %4673  ;;  %v730_v41 = vpack.c.bf16 %v715_v34, %v714_v31  ;;  %v585_v52 = vmul.f32 %v4672_v35, %v5552_v4  ;;  %v5598_v53 = vsub.f32 %v5503_v47, %v432_v30  ;;  %vm591_vm14 = vweird.f32 %v4672_v35 }
 0x154   : > { %v559_v50 = vmul.f32 %v4670_v7, %v558_v39  ;;  %v466_v46 = vmul.f32 %v5592_v25, %v5592_v25  ;;  %v575_v55 = vmul.f32 %v4674_v40, %v5549_v1  ;;  %vm581_vm0 = vweird.f32 %v4674_v40  ;;  %vm592_vm1 = vmor %vm590_vm13, %vm591_vm14 }
 0x155   : > { %906 = vmatmul.bf16.vlgmr.msra.gmra.mxu0 %v730_v41  ;;  %955 = vmatmul.bf16.vlgmr.msra.gmra.mxu1 %v730_v41  ;;  %v464_v47 = vmul.f32 %v5598_v53, %v5598_v53  ;;  %v586_v51 = vmul.f32 %v4672_v35, %v585_v52  ;;  %vm582_vm2 = vmor %vm580_vm15, %vm581_vm0  ;;  %4675 = vrsqrt.f32 %v524_v20  ;;  %vm600_vm3 = vweird.f32 %v524_v20 }
 0x156   : > { %1004 = vmatmul.bf16.vlgmr.msra.gmra.mxu2 %v730_v41  ;;  %494 = vadd.xlane.f32.xlu1 %v466_v46  ;;  %v563_v36 = vsel %vm5602_vm11, %v4670_v7, %v559_v50  ;;  %v576_v58 = vmul.f32 %v4674_v40, %v575_v55 }
 0x157   : > { %v410_v56 = vpop.xlane.xlu0 %409  ;;  %490 = vadd.xlane.f32.xlu2 %v464_v47  ;;  %v696_v61 = vmul.f32 %v563_v36, %v5471_v33  ;;  %v587_v62 = vmul.f32 0.5, %v586_v51 }
 0x158   : > { %v435_v57 = vmul.f32 %v5446_v13, %v410_v56  ;;  %v577_v2 = vmul.f32 0.5, %v576_v58 }
 0x159   : > { %v716_v6 = vmul.f32 %v5578_v16, %v696_v61  ;;  %v588_v8 = vsub.f32 1.5, %v587_v62 }
 0x15a   : > { %v5616_v59 = vsub.f32 %v5508_v48, %v435_v57  ;;  %v717_v48 = vmul.f32 %v5578_v16, %v697_v0  ;;  %v578_v10 = vsub.f32 1.5, %v577_v2 }
 0x15b   : > { %v589_v24 = vmul.f32 %v4672_v35, %v588_v8  ;;  %v4676_v26 = vpop.eup %4675 }
 0x15c   : > { %v467_v63 = vmul.f32 %v5616_v59, %v5616_v59  ;;  %v731_v28 = vpack.c.bf16 %v717_v48, %v716_v6  ;;  %v579_v42 = vmul.f32 %v4674_v40, %v578_v10  ;;  %v595_v27 = vmul.f32 %v4676_v26, %v524_v20 }
 0x15d   : > { %v593_v4 = vsel %vm592_vm1, %v4672_v35, %v589_v24  ;;  %vm601_vm4 = vweird.f32 %v4676_v26 }
 0x15e   : > { %v583_v12 = vsel %vm582_vm2, %v4674_v40, %v579_v42  ;;  %v596_v17 = vmul.f32 %v4676_v26, %v595_v27  ;;  %vm5641_vm5 = vmor %vm600_vm3, %vm601_vm4 }
 0x15f   : > { %v412_v3 = vpop.xlane.xlu0 %411  ;;  %496 = vadd.xlane.f32.xlu2 %v467_v63  ;;  %v698_v15 = vmul.f32 %v583_v12, %v5469_v32 }
 0x160   : > { %v436_v7 = vmul.f32 %v5446_v13, %v412_v3  ;;  %v597_v30 = vmul.f32 0.5, %v596_v17 }
 0x161   : > { %v718_v43 = vmul.f32 %v5578_v16, %v698_v15 }
 0x162   : > { %v5628_v33 = vsub.f32 %v5512_v49, %v436_v7  ;;  %v699_v49 = vmul.f32 %v593_v4, %v5482_v38  ;;  %v598_v31 = vsub.f32 1.5, %v597_v30 }
 0x164   : > { %v468_v11 = vmul.f32 %v5628_v33, %v5628_v33  ;;  %v719_v1 = vmul.f32 %v5578_v16, %v699_v49  ;;  %v599_v40 = vmul.f32 %v4676_v26, %v598_v31 }
 0x165   : > { %911 = vmatmul.bf16.gmra.mxu0 %v731_v28  ;;  %960 = vmatmul.bf16.gmra.mxu1 %v731_v28 }
 0x166   : > { %1009 = vmatmul.bf16.gmra.mxu2 %v731_v28  ;;  %498 = vadd.xlane.f32.xlu0 %v468_v11  ;;  %v732_v18 = vpack.c.bf16 %v719_v1, %v718_v43  ;;  %v603_v22 = vsel %vm5641_vm5, %v4676_v26, %v599_v40 }
 0x167   : > { %v700_v0 = vmul.f32 %v603_v22, %v5494_v44 }
 0x169   : > { %v720_v48 = vmul.f32 %v5578_v16, %v700_v0 }
 0x175   : > { %916 = vmatmul.bf16.gmra.mxu0 %v732_v18  ;;  %965 = vmatmul.bf16.gmra.mxu1 %v732_v18 }
 0x176   : > { %1014 = vmatmul.bf16.gmra.mxu2 %v732_v18 }
 0x1b1   : > { %v485_v29 = vpop.xlane.xlu1 %484 }
 0x1b2   : > { %v509_v38 = vmul.f32 %v485_v29, %v5446_v13 }
 0x1b4   : > { %v525_v32 = vmax.f32 %v509_v38, 1e-05 }
 0x1b6   : > { %4677 = vrsqrt.f32 %v525_v32  ;;  %vm610_vm7 = vweird.f32 %v525_v32 }
 0x1b9   : > { %v487_v34 = vpop.xlane.xlu1 %486 }
 0x1ba   : > { %v510_v35 = vmul.f32 %v487_v34, %v5446_v13 }
 0x1bc   : > { %v4678_v37 = vpop.eup %4677  ;;  %v526_v21 = vmax.f32 %v510_v35, 1e-05 }
 0x1bd   : > { %v605_v39 = vmul.f32 %v4678_v37, %v525_v32  ;;  %vm611_vm6 = vweird.f32 %v4678_v37 }
 0x1be   : > { %4679 = vrsqrt.f32 %v526_v21  ;;  %vm612_vm8 = vmor %vm610_vm7, %vm611_vm6  ;;  %vm620_vm10 = vweird.f32 %v526_v21 }
 0x1bf   : > { %v606_v50 = vmul.f32 %v4678_v37, %v605_v39 }
 0x1c1   : > { %v607_v52 = vmul.f32 0.5, %v606_v50  ;;  %v493_v46 = vpop.xlane.xlu0 %492  ;;  %v414_v56 = vpop.xlane.xlu1 %413 }
 0x1c2   : > { %v489_v54 = vpop.xlane.xlu2 %488  ;;  %v513_v51 = vmul.f32 %v493_v46, %v5446_v13  ;;  %v437_v57 = vmul.f32 %v5446_v13, %v414_v56 }
 0x1c3   : > { %v608_v55 = vsub.f32 1.5, %v607_v52  ;;  %v511_v47 = vmul.f32 %v489_v54, %v5446_v13 }
 0x1c4   : > { %v4680_v36 = vpop.eup %4679  ;;  %v5650_v61 = vmax.f32 %v513_v51, 1e-05  ;;  %v5653_v63 = vsub.f32 %v5575_v14, %v437_v57 }
 0x1c5   : > { %v609_v58 = vmul.f32 %v4678_v37, %v608_v55  ;;  %v527_v60 = vmax.f32 %v511_v47, 1e-05  ;;  %v615_v62 = vmul.f32 %v4680_v36, %v526_v21  ;;  %vm621_vm9 = vweird.f32 %v4680_v36 }
 0x1c6   : > { %v469_v6 = vmul.f32 %v5653_v63, %v5653_v63  ;;  %vm622_vm13 = vmor %vm620_vm10, %vm621_vm9  ;;  %vm650_vm1 = vweird.f32 %v5650_v61 }
 0x1c7   : > { %4681 = vrsqrt.f32 %v527_v60  ;;  %v613_v2 = vsel %vm612_vm8, %v4678_v37, %v609_v58  ;;  %v616_v3 = vmul.f32 %v4680_v36, %v615_v62  ;;  %vm630_vm11 = vweird.f32 %v527_v60 }
 0x1c8   : > { %4683 = vrsqrt.f32 %v5650_v61  ;;  %v701_v8 = vmul.f32 %v613_v2, %v5522_v23  ;;  %500 = vadd.xlane.f32.xlu1 %v469_v6 }
 0x1c9   : > { %v617_v7 = vmul.f32 0.5, %v616_v3  ;;  %v495_v44 = vpop.xlane.xlu1 %494 }
 0x1ca   : > { %v721_v10 = vmul.f32 %v5578_v16, %v701_v8  ;;  %v491_v14 = vpop.xlane.xlu2 %490  ;;  %v514_v23 = vmul.f32 %v495_v44, %v5446_v13 }
 0x1cb   : > { %v512_v28 = vmul.f32 %v491_v14, %v5446_v13  ;;  %v618_v42 = vsub.f32 1.5, %v617_v7 }
 0x1cc   : > { %v733_v24 = vpack.c.bf16 %v721_v10, %v720_v48  ;;  %v5668_v19 = vmax.f32 %v514_v23, 1e-05  ;;  %v1057_v23 = vld [vmem:[#allocation8 + $0x60] sm:$0xff] }
 0x1cd   : > { %v4682_v11 = vpop.eup %4681  ;;  %v528_v49 = vmax.f32 %v512_v28, 1e-05  ;;  %v619_v1 = vmul.f32 %v4680_v36, %v618_v42 }
 0x1ce   : > { %v5663_v4 = vpop.eup %4683  ;;  %v625_v12 = vmul.f32 %v4682_v11, %v527_v60  ;;  %921 = vmatmul.bf16.gmra.mxu0 %v733_v24  ;;  %970 = vmatmul.bf16.gmra.mxu1 %v733_v24  ;;  %vm631_vm12 = vweird.f32 %v4682_v11  ;;  %vm660_vm7 = vweird.f32 %v5668_v19 }
 0x1cf   : > { %1019 = vmatmul.bf16.gmra.mxu2 %v733_v24  ;;  %4685 = vrsqrt.f32 %v528_v49  ;;  %v645_v43 = vmul.f32 %v5663_v4, %v5650_v61  ;;  %v623_v17 = vsel %vm622_vm13, %v4680_v36, %v619_v1  ;;  %vm632_vm14 = vmor %vm630_vm11, %vm631_vm12  ;;  %vm640_vm15 = vweird.f32 %v528_v49  ;;  %v1056_v1 = vld [vmem:[#allocation8 + $0x58] sm:$0xff] }
 0x1d0   : > { %v626_v15 = vmul.f32 %v4682_v11, %v625_v12  ;;  %4687 = vrsqrt.f32 %v5668_v19  ;;  %v702_v34 = vmul.f32 %v623_v17, %v5532_v45  ;;  %vm651_vm2 = vweird.f32 %v5663_v4  ;;  %v1060_v12 = vld [vmem:[#allocation8 + $0x78] sm:$0xff]  ;;  %v1050_v17 = vld [vmem:[#allocation8 + $0x28] sm:$0xff] }
 0x1d1   : > { %v646_v29 = vmul.f32 %v5663_v4, %v645_v43  ;;  %vm652_vm4 = vmor %vm650_vm1, %vm651_vm2  ;;  %1077 = vmatpush.msrb.mxu3 %v1060_v12  ;;  %1158 = vmatpush.msrb.mxu0 %v1060_v12 }
 0x1d2   : > { %v627_v18 = vmul.f32 0.5, %v626_v15  ;;  %v497_v20 = vpop.xlane.xlu2 %496  ;;  %v722_v41 = vmul.f32 %v5578_v16, %v702_v34  ;;  %v1048_v34 = vld [vmem:[#allocation8 + $0x18] sm:$0xff] }
 0x1d3   : > { %v515_v27 = vmul.f32 %v497_v20, %v5446_v13  ;;  %v647_v35 = vmul.f32 0.5, %v646_v29  ;;  %v1054_v20 = vld [vmem:[#allocation8 + $0x48] sm:$0xff]  ;;  %v1051_v29 = vld [vmem:[#allocation8 + $0x30] sm:$0xff] }
 0x1d4   : > { %v628_v26 = vsub.f32 1.5, %v627_v18  ;;  %v1055_v18 = vld [vmem:[#allocation8 + $0x50] sm:$0xff] }
 0x1d5   : > { %v4686_v38 = vpop.eup %4685  ;;  %v531_v30 = vmax.f32 %v515_v27, 1e-05  ;;  %v648_v54 = vsub.f32 1.5, %v647_v35  ;;  %v1052_v27 = vld [vmem:[#allocation8 + $0x38] sm:$0xff] }
 0x1d6   : > { %v629_v32 = vmul.f32 %v4682_v11, %v628_v26  ;;  %v635_v31 = vmul.f32 %v4686_v38, %v528_v49  ;;  %v4688_v52 = vpop.eup %4687  ;;  %vm641_vm0 = vweird.f32 %v4686_v38  ;;  %v1059_v49 = vld [vmem:[#allocation8 + $0x70] sm:$0xff]  ;;  %v1053_v26 = vld [vmem:[#allocation8 + $0x40] sm:$0xff] }
 0x1d7   : > { %4689 = vrsqrt.f32 %v531_v30  ;;  %vm642_vm3 = vmor %vm640_vm15, %vm641_vm0  ;;  %v655_v56 = vmul.f32 %v4688_v52, %v5668_v19  ;;  %vm670_vm5 = vweird.f32 %v531_v30  ;;  %vm661_vm8 = vweird.f32 %v4688_v52  ;;  %1078 = vmatpush.msrb.mxu3 %v1059_v49  ;;  %1159 = vmatpush.msrb.mxu0 %v1059_v49 }
 0x1d8   : > { %v636_v37 = vmul.f32 %v4686_v38, %v635_v31  ;;  %v633_v39 = vsel %vm632_vm14, %v4682_v11, %v629_v32  ;;  %vm662_vm10 = vmor %vm660_vm7, %vm661_vm8  ;;  %v1049_v32 = vld [vmem:[#allocation8 + $0x20] sm:$0xff] }
 0x1d9   : > { %v703_v21 = vmul.f32 %v633_v39, %v5565_v9  ;;  %v649_v9 = vmul.f32 %v5663_v4, %v648_v54  ;;  %v656_v36 = vmul.f32 %v4688_v52, %v655_v56  ;;  %v5691_v42 = vpop.f32.mrf.mxu2 }
 0x1da   : > { %v637_v40 = vmul.f32 0.5, %v636_v37  ;;  %v1047_v37 = vld [vmem:[#allocation8 + $0x10] sm:$0xff] }
 0x1db   : > { %v723_v50 = vmul.f32 %v5578_v16, %v703_v21  ;;  %v653_v58 = vsel %vm652_vm4, %v5663_v4, %v649_v9  ;;  %v657_v0 = vmul.f32 0.5, %v656_v36  ;;  %v5701_v9 = vpop.f32.mrf.mxu1 }
 0x1dc   : > { %v638_v46 = vsub.f32 1.5, %v637_v40  ;;  %v705_v62 = vmul.f32 %v653_v58, %v5555_v5  ;;  %v1046_v40 = vld [vmem:[#allocation8 + $0x8] sm:$0xff] }
 0x1dd   : > { %v4690_v22 = vpop.eup %4689  ;;  %v734_v55 = vpack.c.bf16 %v723_v50, %v722_v41  ;;  %v658_v8 = vsub.f32 1.5, %v657_v0  ;;  %v1045_v41 = vld [vmem:[#allocation8] sm:$0xff] }
 0x1de   : > { %v639_v45 = vmul.f32 %v4686_v38, %v638_v46  ;;  %v665_v47 = vmul.f32 %v4690_v22, %v531_v30  ;;  %v725_v6 = vmul.f32 %v5578_v16, %v705_v62  ;;  %vm671_vm6 = vweird.f32 %v4690_v22 }
 0x1df   : > { %926 = vmatmul.bf16.gmra.mxu0 %v734_v55  ;;  %975 = vmatmul.bf16.gmra.mxu1 %v734_v55  ;;  %vm672_vm9 = vmor %vm670_vm5, %vm671_vm6 }
 0x1e0   : > { %1024 = vmatmul.bf16.vlgmr.msra.gmra.mxu3 %v734_v55  ;;  %v666_v51 = vmul.f32 %v4690_v22, %v665_v47  ;;  %v643_v57 = vsel %vm642_vm3, %v4686_v38, %v639_v45 }
 0x1e1   : > { %v704_v60 = vmul.f32 %v643_v57, %v5598_v53  ;;  %v659_v53 = vmul.f32 %v4688_v52, %v658_v8  ;;  %v5693_v4 = vpop.f32.mrf.mxu2 }
 0x1e2   : > { %v667_v61 = vmul.f32 0.5, %v666_v51  ;;  %v5703_v51 = vpop.f32.mrf.mxu0 }
 0x1e3   : > { %v724_v2 = vmul.f32 %v5578_v16, %v704_v60  ;;  %v663_v10 = vsel %vm662_vm10, %v4688_v52, %v659_v53 }
 0x1e4   : > { %v668_v3 = vsub.f32 1.5, %v667_v61  ;;  %v706_v28 = vmul.f32 %v663_v10, %v5592_v25  ;;  %v1058_v25 = vld [vmem:[#allocation8 + $0x68] sm:$0xff] }
 0x1e5   : > { %v735_v7 = vpack.c.bf16 %v725_v6, %v724_v2  ;;  %1079 = vmatpush.msrb.mxu3 %v1058_v25  ;;  %1160 = vmatpush.msrb.mxu0 %v1058_v25  ;;  %v5709_v6 = vpop.f32.mrf.mxu1 }
 0x1e6   : > { %v669_v48 = vmul.f32 %v4690_v22, %v668_v3  ;;  %v726_v24 = vmul.f32 %v5578_v16, %v706_v28 }
 0x1e7   : > { %1080 = vmatpush.msrb.mxu3 %v1057_v23  ;;  %1161 = vmatpush.msrb.mxu0 %v1057_v23 }
 0x1e8   : > { %v673_v5 = vsel %vm672_vm9, %v4690_v22, %v669_v48 }
 0x1e9   : > { %v707_v14 = vmul.f32 %v673_v5, %v5616_v59  ;;  %v499_v59 = vpop.xlane.xlu0 %498  ;;  %v5696_v43 = vpop.f32.mrf.mxu2  ;;  %1081 = vmatpush.msrb.mxu3 %v1056_v1  ;;  %1162 = vmatpush.msrb.mxu0 %v1056_v1 }
 0x1ea   : > { %v516_v15 = vmul.f32 %v499_v59, %v5446_v13  ;;  %v5711_v8 = vpop.f32.mrf.mxu0  ;;  %v1680_v59 = vpack.c.bf16 %v5693_v4, %v5693_v4 }
 0x1eb   : > { %v727_v44 = vmul.f32 %v5578_v16, %v707_v14  ;;  %1082 = vmatpush.msrb.mxu3 %v1055_v18  ;;  %1163 = vmatpush.msrb.mxu0 %v1055_v18 }
 0x1ec   : > { %v532_v19 = vmax.f32 %v516_v15, 1e-05  ;;  %v1679_v15 = vpack.c.bf16 %v5691_v42, %v5691_v42  ;;  %v2104_v18 = vunpack.c.l.b16 %v1680_v59 }
 0x1ed   : > { %v736_v11 = vpack.c.bf16 %v727_v44, %v726_v24  ;;  %1083 = vmatpush.msrb.mxu3 %v1054_v20  ;;  %1164 = vmatpush.msrb.mxu0 %v1054_v20  ;;  %v5717_v24 = vpop.f32.mrf.mxu1  ;;  %v1061_v20 = vmul.f32 %v5703_v51, %v5703_v51 }
 0x1ee   : > { %4691 = vrsqrt.f32 %v532_v19  ;;  %vm680_vm11 = vweird.f32 %v532_v19 }
 0x1ef   : > { %931 = vmatmul.bf16.gmra.mxu0 %v735_v7  ;;  %980 = vmatmul.bf16.gmra.mxu1 %v735_v7 }
 0x1f0   : > { %1029 = vmatmul.bf16.gmra.mxu3 %v735_v7  ;;  %1165 = vmatpush.msrb.mxu0 %v1053_v26 }
 0x1f1   : > { %1084 = vmatpush.msrb.mxu3 %v1053_v26  ;;  %v5698_v38 = vpop.f32.mrf.mxu2  ;;  %v2103_v26 = vunpack.c.l.b16 %v1679_v15 }
 0x1f2   : > { %1166 = vmatpush.msrb.mxu0 %v1052_v27  ;;  %v5722_v49 = vpop.f32.mrf.mxu0 }
 0x1f3   : > { %1085 = vmatpush.msrb.mxu3 %v1052_v27  ;;  %v5738_v4 = vpack.c.b16 %v2104_v18, %v2103_v26 }
 0x1f4   : > { %1167 = vmatpush.msrb.mxu0 %v1051_v29  ;;  %v4692_v30 = vpop.eup %4691 }
 0x1f5   : > { %1086 = vmatpush.msrb.mxu3 %v1051_v29  ;;  %v675_v31 = vmul.f32 %v4692_v30, %v532_v19  ;;  %vm681_vm12 = vweird.f32 %v4692_v30  ;;  %7832 = vst [vmem:[#allocation19_spill] sm:$0xff] %v5738_v4  ;;  %v5740_v27 = vpop.f32.mrf.mxu1  ;;  %v1143_v29 = vmul.f32 %v5709_v6, %v5709_v6 }
 0x1f6   : > { %1168 = vmatpush.msrb.mxu0 %v1050_v17  ;;  %vm682_vm13 = vmor %vm680_vm11, %vm681_vm12 }
 0x1f7   : > { %1087 = vmatpush.msrb.mxu3 %v1050_v17  ;;  %v676_v21 = vmul.f32 %v4692_v30, %v675_v31  ;;  %v1062_v17 = vmul.f32 %v5711_v8, %v5711_v8  ;;  %v1063_v31 = vmul.f32 %v5722_v49, %v5722_v49 }
 0x1f8   : > { %1169 = vmatpush.msrb.mxu0 %v1049_v32 }
 0x1f9   : > { %1088 = vmatpush.msrb.mxu3 %v1049_v32  ;;  %v1015_v50 = vpop.f32.mrf.mxu2  ;;  %v677_v54 = vmul.f32 0.5, %v676_v21 }
 0x1fa   : > { %1170 = vmatpush.msrb.mxu0 %v1048_v34  ;;  %v5742_v42 = vpop.f32.mrf.mxu0 }
 0x1fb   : > { %1089 = vmatpush.msrb.mxu3 %v1048_v34  ;;  %v678_v46 = vsub.f32 1.5, %v677_v54 }
 0x1fc   : > { %1171 = vmatpush.msrb.mxu0 %v1047_v37 }
 0x1fd   : > { %1090 = vmatpush.msrb.mxu3 %v1047_v37  ;;  %v1145_v37 = vmul.f32 %v5740_v27, %v5740_v27 }
 0x1fe   : > { %1172 = vmatpush.msrb.mxu0 %v1046_v40 }
 0x1ff   : > { %936 = vmatmul.bf16.gmra.mxu0 %v736_v11  ;;  %985 = vmatmul.bf16.gmra.mxu1 %v736_v11 }
 0x200   : > { %1034 = vmatmul.bf16.gmra.mxu3 %v736_v11  ;;  %1173 = vmatpush.msrb.mxu0 %v1045_v41  ;;  %v1681_v11 = vpack.c.bf16 %v5696_v43, %v5696_v43  ;;  %v1142_v43 = vmul.f32 %v5701_v9, %v5701_v9 }
 0x201   : > { %1091 = vmatpush.msrb.mxu3 %v1046_v40  ;;  %v1017_v45 = vpop.f32.mrf.mxu2 }
 0x202   : > { %v1684_v5 = vpack.c.bf16 %v1017_v45, %v1017_v45  ;;  %v2105_v1 = vunpack.c.l.b16 %v1681_v11  ;;  %v5751_v32 = vpop.f32.mrf.mxu0 }
 0x203   : > { %1092 = vmatpush.msrb.mxu3 %v1045_v41 }
 0x204   : > { %v2108_v44 = vunpack.c.l.b16 %v1684_v5 }
 0x23b   : > { %v501_v35 = vpop.xlane.xlu1 %500 }
 0x23c   : > { %v517_v39 = vmul.f32 %v501_v35, %v5446_v13  ;;  %v679_v13 = vmul.f32 %v4692_v30, %v678_v46  ;;  %v5759_v35 = vpop.f32.mrf.mxu0 }
 0x23d   : > { %v1066_v46 = vmul.f32 %v5759_v35, %v5759_v35 }
 0x23e   : > { %v533_v52 = vmax.f32 %v517_v39, 1e-05  ;;  %v683_v36 = vsel %vm682_vm13, %v4692_v30, %v679_v13  ;;  %v1144_v30 = vmul.f32 %v5717_v24, %v5717_v24  ;;  %v1064_v39 = vmul.f32 %v5742_v42, %v5742_v42 }
 0x23f   : > { %v708_v61 = vmul.f32 %v683_v36, %v5628_v33  ;;  %v1683_v33 = vpack.c.bf16 %v1015_v50, %v1015_v50  ;;  %v1065_v50 = vmul.f32 %v5751_v32, %v5751_v32 }
 0x240   : > { %4693 = vrsqrt.f32 %v533_v52  ;;  %vm690_vm15 = vweird.f32 %v533_v52 }
 0x241   : > { %v728_v2 = vmul.f32 %v5578_v16, %v708_v61  ;;  %v2107_v12 = vunpack.c.l.b16 %v1683_v33 }
 0x243   : > { %v5726_v23 = vpack.c.b16 %v2108_v44, %v2107_v12 }
 0x245   : > { %7830 = vst [vmem:[#allocation17_spill] sm:$0xff] %v5726_v23 }
 0x246   : > { %v4694_v22 = vpop.eup %4693 }
 0x247   : > { %v685_v55 = vmul.f32 %v4694_v22, %v533_v52  ;;  %vm691_vm14 = vweird.f32 %v4694_v22 }
 0x248   : > { %vm692_vm0 = vmor %vm690_vm15, %vm691_vm14 }
 0x249   : > { %v686_v47 = vmul.f32 %v4694_v22, %v685_v55 }
 0x24b   : > { %v687_v56 = vmul.f32 0.5, %v686_v47  ;;  %v5767_v40 = vpop.f32.mrf.mxu0 }
 0x24c   : > { %v1067_v45 = vmul.f32 %v5767_v40, %v5767_v40 }
 0x24d   : > { %v688_v57 = vsub.f32 1.5, %v687_v56 }
 0x24f   : > { %v689_v58 = vmul.f32 %v4694_v22, %v688_v57 }
 0x251   : > { %v693_v62 = vsel %vm692_vm0, %v4694_v22, %v689_v58 }
 0x252   : > { %v1020_v60 = vpop.f32.mrf.mxu2  ;;  %v709_v0 = vmul.f32 %v693_v62, %v5653_v63  ;;  %v1682_v63 = vpack.c.bf16 %v5698_v38, %v5698_v38  ;;  %v5749_v38 = vpop.f32.mrf.mxu1 }
 0x253   : > { %v1685_v48 = vpack.c.bf16 %v1020_v60, %v1020_v60  ;;  %v1146_v41 = vmul.f32 %v5749_v38, %v5749_v38  ;;  %v5779_v22 = vpop.f32.mrf.mxu0 }
 0x254   : > { %v729_v3 = vmul.f32 %v5578_v16, %v709_v0  ;;  %v2106_v25 = vunpack.c.l.b16 %v1682_v63  ;;  %v1068_v57 = vmul.f32 %v5779_v22, %v5779_v22 }
 0x255   : > { %v2109_v14 = vunpack.c.l.b16 %v1685_v48 }
 0x256   : > { %v737_v7 = vpack.c.bf16 %v729_v3, %v728_v2  ;;  %v5731_v19 = vpack.c.b16 %v2106_v25, %v2105_v1 }
 0x258   : > { %941 = vmatmul.bf16.gmra.mxu0 %v737_v7  ;;  %990 = vmatmul.bf16.gmra.mxu1 %v737_v7  ;;  %7831 = vst [vmem:[#allocation18_spill] sm:$0xff] %v5731_v19 }
 0x259   : > { %1039 = vmatmul.bf16.gmra.mxu3 %v737_v7 }
 0x25a   : > { %v1022_v53 = vpop.f32.mrf.mxu2  ;;  %v5757_v34 = vpop.f32.mrf.mxu1 }
 0x25b   : > { %v1686_v10 = vpack.c.bf16 %v1022_v53, %v1022_v53  ;;  %v1147_v52 = vmul.f32 %v5757_v34, %v5757_v34 }
 0x25c   : > { %v5787_v47 = vpop.f32.mrf.mxu0 }
 0x25d   : > { %v2110_v28 = vunpack.c.l.b16 %v1686_v10  ;;  %v1069_v62 = vmul.f32 %v5787_v47, %v5787_v47 }
 0x25f   : > { %v5715_v16 = vpack.c.b16 %v2110_v28, %v2109_v14 }
 0x261   : > { %7829 = vst [vmem:[#allocation16_spill] sm:$0xff] %v5715_v16  ;;  %2135 = vmatpush.bf16.msra.mxu3 %v5715_v16 }
 0x262   : > { %v5765_v21 = vpop.f32.mrf.mxu1 }
 0x263   : > { %v1148_v55 = vmul.f32 %v5765_v21, %v5765_v21  ;;  %v5793_v36 = vpop.f32.mrf.mxu3 }
 0x264   : > { %v5797_v60 = vpop.f32.mrf.mxu0 }
 0x265   : > { %2136 = vmatpush.bf16.msra.mxu3 %v5726_v23  ;;  %v1070_v48 = vmul.f32 %v5797_v60, %v5797_v60 }
 0x268   : > { %1174 = vmatmul.f32.vlgmr.msrb.gmra.mxu0 %v1142_v43 }
 0x269   : > { %2137 = vmatpush.bf16.msra.mxu3 %v5731_v19 }
 0x26a   : > { %1093 = vmatmul.f32.vlgmr.msrb.gmra.mxu3 %v1061_v20  ;;  %v5775_v54 = vpop.f32.mrf.mxu1 }
 0x26b   : > { %v1149_v56 = vmul.f32 %v5775_v54, %v5775_v54  ;;  %v5803_v0 = vpop.f32.mrf.mxu3 }
 0x26c   : > { %v5809_v7 = vpop.f32.mrf.mxu0 }
 0x26d   : > { %2138 = vmatpush.bf16.msra.mxu3 %v5738_v4  ;;  %v1071_v33 = vmul.f32 %v5809_v7, %v5809_v7 }
 0x270   : > { %1177 = vmatmul.f32.gmra.mxu0 %v1143_v29 }
 0x272   : > { %1096 = vmatmul.f32.gmra.mxu3 %v1062_v17  ;;  %v5785_v13 = vpop.f32.mrf.mxu1 }
 0x273   : > { %v1150_v61 = vmul.f32 %v5785_v13, %v5785_v13  ;;  %v5815_v5 = vpop.f32.mrf.mxu3 }
 0x274   : > { %v5821_v14 = vpop.f32.mrf.mxu0 }
 0x275   : > { %v1072_v63 = vmul.f32 %v5821_v14, %v5821_v14 }
 0x278   : > { %1180 = vmatmul.f32.gmra.mxu0 %v1144_v30 }
 0x27a   : > { %1099 = vmatmul.f32.gmra.mxu3 %v1063_v31  ;;  %v5795_v58 = vpop.f32.mrf.mxu1 }
 0x27b   : > { %v1151_v3 = vmul.f32 %v5795_v58, %v5795_v58  ;;  %v5827_v44 = vpop.f32.mrf.mxu3 }
 0x27c   : > { %v5831_v12 = vpop.f32.mrf.mxu0 }
 0x27d   : > { %v1073_v25 = vmul.f32 %v5831_v12, %v5831_v12 }
 0x280   : > { %1183 = vmatmul.f32.gmra.mxu0 %v1145_v37 }
 0x282   : > { %1102 = vmatmul.f32.gmra.mxu3 %v1064_v39  ;;  %v5805_v2 = vpop.f32.mrf.mxu1 }
 0x283   : > { %v1152_v53 = vmul.f32 %v5805_v2, %v5805_v2  ;;  %v5837_v15 = vpop.f32.mrf.mxu3 }
 0x284   : > { %v5841_v18 = vpop.f32.mrf.mxu0 }
 0x285   : > { %v1074_v20 = vmul.f32 %v5841_v18, %v5841_v18 }
 0x288   : > { %1186 = vmatmul.f32.gmra.mxu0 %v1146_v41 }
 0x28a   : > { %1105 = vmatmul.f32.gmra.mxu3 %v1065_v50  ;;  %v5817_v10 = vpop.f32.mrf.mxu1 }
 0x28b   : > { %v1153_v28 = vmul.f32 %v5817_v10, %v5817_v10  ;;  %v5847_v26 = vpop.f32.mrf.mxu3 }
 0x290   : > { %1189 = vmatmul.f32.gmra.mxu0 %v1147_v52 }
 0x292   : > { %1108 = vmatmul.f32.gmra.mxu3 %v1066_v46  ;;  %v5829_v11 = vpop.f32.mrf.mxu1 }
 0x293   : > { %v1154_v59 = vmul.f32 %v5829_v11, %v5829_v11 }
 0x298   : > { %1192 = vmatmul.f32.gmra.mxu0 %v1148_v55 }
 0x29a   : > { %1111 = vmatmul.f32.gmra.mxu3 %v1067_v45  ;;  %v5839_v1 = vpop.f32.mrf.mxu1 }
 0x29b   : > { %v1155_v43 = vmul.f32 %v5839_v1, %v5839_v1 }
 0x2a0   : > { %1195 = vmatmul.f32.gmra.mxu0 %v1149_v56 }
 0x2a2   : > { %1114 = vmatmul.f32.gmra.mxu3 %v1068_v57 }
 0x2a8   : > { %1198 = vmatmul.f32.gmra.mxu0 %v1150_v61 }
 0x2aa   : > { %1117 = vmatmul.f32.gmra.mxu3 %v1069_v62 }
 0x2b0   : > { %1201 = vmatmul.f32.gmra.mxu0 %v1151_v3 }
 0x2b2   : > { %1120 = vmatmul.f32.gmra.mxu3 %v1070_v48 }
 0x2b8   : > { %1204 = vmatmul.f32.gmra.mxu0 %v1152_v53 }
 0x2ba   : > { %1123 = vmatmul.f32.gmra.mxu3 %v1071_v33 }
 0x2c0   : > { %1207 = vmatmul.f32.gmra.mxu0 %v1153_v28 }
 0x2c2   : > { %1126 = vmatmul.f32.gmra.mxu3 %v1072_v63 }
 0x2c8   : > { %1210 = vmatmul.f32.gmra.mxu0 %v1154_v59 }
 0x2ca   : > { %1129 = vmatmul.f32.gmra.mxu3 %v1073_v25 }
 0x2d0   : > { %1213 = vmatmul.f32.gmra.mxu0 %v1155_v43 }
 0x2d2   : > { %1132 = vmatmul.f32.gmra.mxu3 %v1074_v20 }
 0x2d5   : > { %v5849_v29 = vpop.f32.mrf.mxu0  ;;  %v5851_v17 = vpop.f32.mrf.mxu1 }
 0x2d6   : > { %7833 = vst [vmem:[#allocation20_spill] sm:$0xff] %v5849_v29  ;;  %v1156_v30 = vmul.f32 %v5851_v17, %v5851_v17  ;;  %v1075_v31 = vmul.f32 %v5849_v29, %v5849_v29 }
 0x2d8   : > { %1216 = vmatmul.f32.gmra.mxu0 %v1156_v30 }
 0x2da   : > { %1135 = vmatmul.f32.gmra.mxu3 %v1075_v31 }
 0x2dc   : > { %v5857_v37 = vpop.f32.mrf.mxu3 }
 0x2dd   : > { %v5859_v39 = vpop.f32.mrf.mxu0  ;;  %v5861_v41 = vpop.f32.mrf.mxu1 }
 0x2de   : > { %7834 = vst [vmem:[#allocation21_spill] sm:$0xff] %v5859_v39  ;;  %v1157_v50 = vmul.f32 %v5861_v41, %v5861_v41  ;;  %v1076_v52 = vmul.f32 %v5859_v39, %v5859_v39  ;;  %v5907_v39 = vld [vmem:[%s7789_s4] ss:$0 sm:$0xff] }
 0x2df   : > { %7835 = vst [vmem:[#allocation22_spill] sm:$0xff] %v5861_v41 }
 0x2e0   : > { %1219 = vmatmul.f32.gmra.mxu0 %v1157_v50 }
 0x2e2   : > { %1138 = vmatmul.f32.gmra.mxu3 %v1076_v52 }
 0x2e4   : > { %v5867_v46 = vpop.f32.mrf.mxu3 }
 0x2e5   : > { %v1175_v55 = vpop.f32.mrf.mxu0 }
 0x2e6   : > { %v1435_v45 = vmax.f32 %v1175_v55, 1e-24 }
 0x2e8   : > { %4695 = vrsqrt.f32 %v1435_v45  ;;  %vm1457_vm2 = vweird.f32 %v1435_v45 }
 0x2ed   : > { %v1094_v56 = vpop.f32.mrf.mxu3  ;;  %v1178_v61 = vpop.f32.mrf.mxu0 }
 0x2ee   : > { %v1223_v57 = vmax.f32 %v1094_v56, 1e-24  ;;  %v4696_v62 = vpop.eup %4695  ;;  %v1436_v3 = vmax.f32 %v1178_v61, 1e-24 }
 0x2ef   : > { %v1452_v48 = vmul.f32 %v4696_v62, %v1435_v45  ;;  %vm1458_vm1 = vweird.f32 %v4696_v62 }
 0x2f0   : > { %4697 = vrsqrt.f32 %v1223_v57  ;;  %vm5872_vm3 = vmor %vm1457_vm2, %vm1458_vm1  ;;  %vm1245_vm6 = vweird.f32 %v1223_v57  ;;  %vm1467_vm8 = vweird.f32 %v1436_v3 }
 0x2f1   : > { %4699 = vrsqrt.f32 %v1436_v3  ;;  %v1453_v53 = vmul.f32 %v4696_v62, %v1452_v48 }
 0x2f3   : > { %v1454_v33 = vmul.f32 0.5, %v1453_v53 }
 0x2f5   : > { %v1097_v28 = vpop.f32.mrf.mxu3  ;;  %v1455_v59 = vsub.f32 1.5, %v1454_v33  ;;  %v1181_v43 = vpop.f32.mrf.mxu0 }
 0x2f6   : > { %v4698_v63 = vpop.eup %4697  ;;  %v1224_v25 = vmax.f32 %v1097_v28, 1e-24  ;;  %v5869_v31 = vmax.f32 %v1181_v43, 1e-24 }
 0x2f7   : > { %v4700_v20 = vpop.eup %4699  ;;  %v1240_v30 = vmul.f32 %v4698_v63, %v1223_v57  ;;  %v1456_v55 = vmul.f32 %v4696_v62, %v1455_v59  ;;  %vm1246_vm4 = vweird.f32 %v4698_v63  ;;  %v5896_v57 = vld [vmem:[%s7790_s5] ss:$0 sm:$0xff] }
 0x2f8   : > { %v1462_v50 = vmul.f32 %v4700_v20, %v1436_v3  ;;  %4701 = vrsqrt.f32 %v1224_v25  ;;  %vm1468_vm5 = vweird.f32 %v4700_v20  ;;  %vm5884_vm7 = vmor %vm1245_vm6, %vm1246_vm4  ;;  %vm1255_vm11 = vweird.f32 %v1224_v25 }
 0x2f9   : > { %v1241_v52 = vmul.f32 %v4698_v63, %v1240_v30  ;;  %4703 = vrsqrt.f32 %v5869_v31  ;;  %v1460_v4 = vsel %vm5872_vm3, %v4696_v62, %v1456_v55  ;;  %vm1469_vm9 = vmor %vm1467_vm8, %vm1468_vm5  ;;  %vm1477_vm14 = vweird.f32 %v5869_v31 }
 0x2fa   : > { %v1463_v56 = vmul.f32 %v4700_v20, %v1462_v50  ;;  %v1611_v55 = vmul.f32 %v1460_v4, %v5701_v9 }
 0x2fb   : > { %v1242_v61 = vmul.f32 0.5, %v1241_v52 }
 0x2fc   : > { %v1464_v48 = vmul.f32 0.5, %v1463_v56  ;;  %v1631_v19 = vmul.f32 %v5896_v57, %v1611_v55 }
 0x2fd   : > { %v1243_v33 = vsub.f32 1.5, %v1242_v61  ;;  %v1100_v28 = vpop.f32.mrf.mxu3  ;;  %v1184_v59 = vpop.f32.mrf.mxu0 }
 0x2fe   : > { %v4702_v43 = vpop.eup %4701  ;;  %v1465_v30 = vsub.f32 1.5, %v1464_v48  ;;  %v5878_v23 = vmax.f32 %v1100_v28, 1e-24  ;;  %v5882_v56 = vmax.f32 %v1184_v59, 1e-24 }
 0x2ff   : > { %v5880_v50 = vpop.eup %4703  ;;  %v1244_v45 = vmul.f32 %v4698_v63, %v1243_v33  ;;  %v1250_v52 = vmul.f32 %v4702_v43, %v1224_v25  ;;  %vm1256_vm10 = vweird.f32 %v4702_v43 }
 0x300   : > { %v1466_v16 = vmul.f32 %v4700_v20, %v1465_v30  ;;  %v1472_v62 = vmul.f32 %v5880_v50, %v5869_v31  ;;  %4705 = vrsqrt.f32 %v5878_v23  ;;  %vm1257_vm12 = vmor %vm1255_vm11, %vm1256_vm10  ;;  %vm1478_vm13 = vweird.f32 %v5880_v50 }
 0x301   : > { %v1251_v48 = vmul.f32 %v4702_v43, %v1250_v52  ;;  %4707 = vrsqrt.f32 %v5882_v56  ;;  %v1248_v53 = vsel %vm5884_vm7, %v4698_v63, %v1244_v45  ;;  %vm5927_vm15 = vmor %vm1477_vm14, %vm1478_vm13  ;;  %vm1487_vm1 = vweird.f32 %v5882_v56 }
 0x302   : > { %v1470_v3 = vsel %vm1469_vm9, %v4700_v20, %v1466_v16  ;;  %v1473_v33 = vmul.f32 %v5880_v50, %v1472_v62  ;;  %v1399_v9 = vmul.f32 %v1248_v53, %v5703_v51  ;;  %vm1265_vm6 = vweird.f32 %v5878_v23 }
 0x303   : > { %v1612_v28 = vmul.f32 %v1470_v3, %v5709_v6  ;;  %v1252_v30 = vmul.f32 0.5, %v1251_v48  ;;  %v1663_v3 = vpack.c.bf16 %v1631_v19, %v1631_v19 }
 0x304   : > { %v1474_v59 = vmul.f32 0.5, %v1473_v33  ;;  %v1419_v33 = vmul.f32 %v5907_v39, %v1399_v9 }
 0x305   : > { %v1253_v4 = vsub.f32 1.5, %v1252_v30  ;;  %v1103_v52 = vpop.f32.mrf.mxu3  ;;  %v1187_v6 = vpop.f32.mrf.mxu0  ;;  %v1632_v55 = vmul.f32 %v5896_v57, %v1612_v28 }
 0x306   : > { %v5909_v63 = vpop.eup %4705  ;;  %v1475_v16 = vsub.f32 1.5, %v1474_v59  ;;  %v5911_v20 = vmax.f32 %v1103_v52, 1e-24  ;;  %v5915_v62 = vmax.f32 %v1187_v6, 1e-24  ;;  %v1647_v31 = vpack.c.bf16 %v1419_v33, %v1419_v33 }
 0x307   : > { %v4708_v45 = vpop.eup %4707  ;;  %v1254_v61 = vmul.f32 %v4702_v43, %v1253_v4  ;;  %v1260_v51 = vmul.f32 %v5909_v63, %v5878_v23  ;;  %v1664_v52 = vpack.c.bf16 %v1632_v55, %v1632_v55  ;;  %vm1266_vm3 = vweird.f32 %v5909_v63 }
 0x308   : > { %v1476_v48 = vmul.f32 %v5880_v50, %v1475_v16  ;;  %v1482_v25 = vmul.f32 %v4708_v45, %v5882_v56  ;;  %4709 = vrsqrt.f32 %v5911_v20  ;;  %vm1488_vm0 = vweird.f32 %v4708_v45  ;;  %vm5992_vm8 = vmor %vm1265_vm6, %vm1266_vm3 }
 0x309   : > { %v1258_v53 = vsel %vm1257_vm12, %v4702_v43, %v1254_v61  ;;  %4711 = vrsqrt.f32 %v5915_v62  ;;  %v1261_v28 = vmul.f32 %v5909_v63, %v1260_v51  ;;  %v1724_v6 = vunpack.c.l.b16 %v1664_v52  ;;  %vm1489_vm2 = vmor %vm1487_vm1, %vm1488_vm0 }
 0x30a   : > { %v1400_v30 = vmul.f32 %v1258_v53, %v5711_v8  ;;  %v1483_v59 = vmul.f32 %v4708_v45, %v1482_v25  ;;  %v1480_v43 = vsel %vm5927_vm15, %v5880_v50, %v1476_v48  ;;  %v1723_v8 = vunpack.c.l.b16 %v1663_v3 }
 0x30b   : > { %v1262_v51 = vmul.f32 0.5, %v1261_v28  ;;  %v1613_v50 = vmul.f32 %v1480_v43, %v5717_v24  ;;  %v1703_v56 = vunpack.c.l.b16 %v1647_v31  ;;  %vm1275_vm5 = vweird.f32 %v5911_v20 }
 0x30c   : > { %v1484_v16 = vmul.f32 0.5, %v1483_v59  ;;  %v1420_v19 = vmul.f32 %v5907_v39, %v1400_v30  ;;  %v5944_v30 = vpack.c.b16 %v1724_v6, %v1723_v8  ;;  %vm1497_vm10 = vweird.f32 %v5915_v62 }
 0x30d   : > { %v1106_v9 = vpop.f32.mrf.mxu3  ;;  %v1190_v29 = vpop.f32.mrf.mxu0  ;;  %v1263_v59 = vsub.f32 1.5, %v1262_v51 }
 0x30e   : > { %v5935_v61 = vpop.eup %4709  ;;  %v1485_v25 = vsub.f32 1.5, %v1484_v16  ;;  %v5937_v53 = vmax.f32 %v1106_v9, 1e-24  ;;  %v1648_v55 = vpack.c.bf16 %v1420_v19, %v1420_v19  ;;  %2729 = vrot.lane.b32.xlu0 %v5944_v30, %s5254_s11  ;;  %2253 = vrot.lane.b32.xlu1 %v5944_v30, %s5255_s14  ;;  %v5956_v24 = vmax.f32 %v1190_v29, 1e-24 }
 0x30f   : > { %v5939_v41 = vpop.eup %4711  ;;  %v1270_v48 = vmul.f32 %v5935_v61, %v5911_v20  ;;  %v1633_v9 = vmul.f32 %v5896_v57, %v1613_v50  ;;  %vm1276_vm4 = vweird.f32 %v5935_v61 }
 0x310   : > { %v1486_v3 = vmul.f32 %v4708_v45, %v1485_v25  ;;  %v1492_v33 = vmul.f32 %v5939_v41, %v5915_v62  ;;  %4713 = vrsqrt.f32 %v5937_v53  ;;  %v1704_v43 = vunpack.c.l.b16 %v1648_v55  ;;  %vm5983_vm7 = vmor %vm1275_vm5, %vm1276_vm4 }
 0x311   : > { %v1271_v28 = vmul.f32 %v5935_v61, %v1270_v48  ;;  %4715 = vrsqrt.f32 %v5956_v24  ;;  %vm1498_vm9 = vweird.f32 %v5939_v41  ;;  %vm1285_vm14 = vweird.f32 %v5937_v53 }
 0x312   : > { %v1490_v4 = vsel %vm1489_vm2, %v4708_v45, %v1486_v3  ;;  %v1493_v52 = vmul.f32 %v5939_v41, %v1492_v33  ;;  %v5962_v6 = vpack.c.b16 %v1704_v43, %v1703_v56  ;;  %vm6016_vm11 = vmor %vm1497_vm10, %vm1498_vm9  ;;  %vm1507_vm0 = vweird.f32 %v5956_v24 }
 0x313   : > { %v1614_v16 = vmul.f32 %v1490_v4, %v5740_v27  ;;  %v1272_v19 = vmul.f32 0.5, %v1271_v28  ;;  %v1264_v27 = vmul.f32 %v5909_v63, %v1263_v59  ;;  %v1665_v28 = vpack.c.bf16 %v1633_v9, %v1633_v9 }
 0x314   : > { %v1494_v8 = vmul.f32 0.5, %v1493_v52  ;;  %2245 = vrot.lane.b32.xlu2 %v5962_v6, %s5255_s14 }
 0x315   : > { %v1273_v29 = vsub.f32 1.5, %v1272_v19  ;;  %v1109_v31 = vpop.f32.mrf.mxu3  ;;  %v1634_v45 = vmul.f32 %v5896_v57, %v1614_v16  ;;  %v1193_v50 = vpop.f32.mrf.mxu0  ;;  %v1268_v43 = vsel %vm5992_vm8, %v5909_v63, %v1264_v27  ;;  %v1725_v9 = vunpack.c.l.b16 %v1665_v28 }
 0x316   : > { %v5967_v51 = vpop.eup %4713  ;;  %v1495_v25 = vsub.f32 1.5, %v1494_v8  ;;  %v5973_v55 = vmax.f32 %v1109_v31, 1e-24  ;;  %v5978_v33 = vmax.f32 %v1193_v50, 1e-24  ;;  %3205 = vrot.lane.b32.xlu0 %v5944_v30, %s5256_s17  ;;  %3197 = vrot.lane.b32.xlu1 %v5962_v6, %s5256_s17 }
 0x317   : > { %v1274_v48 = vmul.f32 %v5935_v61, %v1273_v29  ;;  %v1280_v3 = vmul.f32 %v5967_v51, %v5937_v53  ;;  %v1666_v56 = vpack.c.bf16 %v1634_v45, %v1634_v45  ;;  %v5988_v59 = vpop.eup %4715  ;;  %v1401_v45 = vmul.f32 %v1268_v43, %v5722_v49 }
 0x318   : > { %4717 = vrsqrt.f32 %v5973_v55  ;;  %v1496_v16 = vmul.f32 %v5939_v41, %v1495_v25  ;;  %vm1286_vm12 = vweird.f32 %v5967_v51  ;;  %vm1508_vm13 = vweird.f32 %v5988_v59 }
 0x319   : > { %v1278_v23 = vsel %vm5983_vm7, %v5935_v61, %v1274_v48  ;;  %v1281_v52 = vmul.f32 %v5967_v51, %v1280_v3  ;;  %4719 = vrsqrt.f32 %v5978_v33  ;;  %v1502_v61 = vmul.f32 %v5988_v59, %v5956_v24  ;;  %vm6049_vm15 = vmor %vm1285_vm14, %vm1286_vm12 }
 0x31a   : > { %v1726_v8 = vunpack.c.l.b16 %v1666_v56  ;;  %v1402_v29 = vmul.f32 %v1278_v23, %v5742_v42  ;;  %v1500_v3 = vsel %vm6016_vm11, %v5939_v41, %v1496_v16  ;;  %v1421_v16 = vmul.f32 %v5907_v39, %v1401_v45  ;;  %vm6061_vm1 = vmor %vm1507_vm0, %vm1508_vm13 }
 0x31b   : > { %v1282_v19 = vmul.f32 0.5, %v1281_v52  ;;  %v1503_v31 = vmul.f32 %v5988_v59, %v1502_v61  ;;  %v1615_v61 = vmul.f32 %v1500_v3, %v5749_v38  ;;  %vm1295_vm2 = vweird.f32 %v5973_v55 }
 0x31c   : > { %v6020_v50 = vpack.c.b16 %v1726_v8, %v1725_v9  ;;  %v1422_v52 = vmul.f32 %v5907_v39, %v1402_v29  ;;  %vm1517_vm6 = vweird.f32 %v5978_v33 }
 0x31d   : > { %v1283_v27 = vsub.f32 1.5, %v1282_v19  ;;  %v1112_v25 = vpop.f32.mrf.mxu3  ;;  %v1504_v42 = vmul.f32 0.5, %v1503_v31  ;;  %v1196_v28 = vpop.f32.mrf.mxu0 }
 0x31e   : > { %v4718_v48 = vpop.eup %4717  ;;  %v6026_v62 = vmax.f32 %v1112_v25, 1e-24  ;;  %2731 = vrot.lane.b32.xlu2 %v6020_v50, %s5254_s11  ;;  %v6035_v4 = vmax.f32 %v1196_v28, 1e-24  ;;  %2721 = vrot.lane.b32.xlu0 %v5962_v6, %s5254_s11  ;;  %v1650_v63 = vpack.c.bf16 %v1422_v52, %v1422_v52  ;;  %v1649_v25 = vpack.c.bf16 %v1421_v16, %v1421_v16 }
 0x31f   : > { %v6028_v49 = vpop.eup %4719  ;;  %v1284_v20 = vmul.f32 %v5967_v51, %v1283_v27  ;;  %v1290_v56 = vmul.f32 %v4718_v48, %v5973_v55  ;;  %v1505_v41 = vsub.f32 1.5, %v1504_v42  ;;  %vm1296_vm3 = vweird.f32 %v4718_v48 }
 0x320   : > { %v1512_v23 = vmul.f32 %v6028_v49, %v5978_v33  ;;  %4721 = vrsqrt.f32 %v6026_v62  ;;  %vm1297_vm4 = vmor %vm1295_vm2, %vm1296_vm3  ;;  %vm1518_vm5 = vweird.f32 %v6028_v49  ;;  %v1705_v38 = vunpack.c.l.b16 %v1649_v25 }
 0x321   : > { %v1291_v43 = vmul.f32 %v4718_v48, %v1290_v56  ;;  %4723 = vrsqrt.f32 %v6035_v4  ;;  %v1506_v9 = vmul.f32 %v5988_v59, %v1505_v41  ;;  %v1288_v8 = vsel %vm6049_vm15, %v5967_v51, %v1284_v20  ;;  %vm6101_vm7 = vmor %vm1517_vm6, %vm1518_vm5 }
 0x322   : > { %v1513_v53 = vmul.f32 %v6028_v49, %v1512_v23  ;;  %v1403_v3 = vmul.f32 %v1288_v8, %v5751_v32  ;;  %v6075_v56 = vmul.f32 %v5896_v57, %v1615_v61  ;;  %vm1527_vm8 = vweird.f32 %v6035_v4 }
 0x323   : > { %v1292_v29 = vmul.f32 0.5, %v1291_v43  ;;  %v1510_v31 = vsel %vm6061_vm1, %v5988_v59, %v1506_v9  ;;  %vm1305_vm12 = vweird.f32 %v6026_v62  ;;  %vm1735_vm1 = vcmask 261120  }
 0x324   : > { %v1514_v45 = vmul.f32 0.5, %v1513_v53  ;;  %v1616_v41 = vmul.f32 %v1510_v31, %v5757_v34  ;;  %v1706_v34 = vunpack.c.l.b16 %v1650_v63  ;;  %v1423_v53 = vmul.f32 %v5907_v39, %v1403_v3 }
 0x325   : > { %v1293_v24 = vsub.f32 1.5, %v1292_v29  ;;  %v1115_v27 = vpop.f32.mrf.mxu3  ;;  %v1199_v20 = vpop.f32.mrf.mxu0 }
 0x326   : > { %v6069_v51 = vpop.eup %4721  ;;  %v1515_v42 = vsub.f32 1.5, %v1514_v45  ;;  %v6072_v28 = vmax.f32 %v1115_v27, 1e-24  ;;  %3207 = vrot.lane.b32.xlu2 %v6020_v50, %s5256_s17  ;;  %v6082_v43 = vmax.f32 %v1199_v20, 1e-24  ;;  %2255 = vrot.lane.b32.xlu0 %v6020_v50, %s5255_s14  ;;  %v1667_v27 = vpack.c.bf16 %v6075_v56, %v6075_v56 }
 0x327   : > { %v4724_v59 = vpop.eup %4723  ;;  %v1294_v23 = vmul.f32 %v4718_v48, %v1293_v24  ;;  %v1300_v52 = vmul.f32 %v6069_v51, %v6026_v62  ;;  %v6110_v24 = vpack.c.b16 %v1706_v34, %v1705_v38  ;;  %vm1306_vm10 = vweird.f32 %v6069_v51 }
 0x328   : > { %v1522_v32 = vmul.f32 %v4724_v59, %v6035_v4  ;;  %4725 = vrsqrt.f32 %v6072_v28  ;;  %v1516_v61 = vmul.f32 %v6028_v49, %v1515_v42  ;;  %vm1528_vm9 = vweird.f32 %v4724_v59  ;;  %vm6137_vm13 = vmor %vm1305_vm12, %vm1306_vm10 }
 0x329   : > { %v1298_v16 = vsel %vm1297_vm4, %v4718_v48, %v1294_v23  ;;  %v1301_v19 = vmul.f32 %v6069_v51, %v1300_v52  ;;  %4727 = vrsqrt.f32 %v6082_v43  ;;  %v1636_v48 = vmul.f32 %v5896_v57, %v1616_v41  ;;  %vm1529_vm11 = vmor %vm1527_vm8, %vm1528_vm9 }
 0x32a   : > { %v1404_v55 = vmul.f32 %v1298_v16, %v5759_v35  ;;  %v1523_v9 = vmul.f32 %v4724_v59, %v1522_v32  ;;  %v1520_v45 = vsel %vm6101_vm7, %v6028_v49, %v1516_v61  ;;  %v1651_v41 = vpack.c.bf16 %v1423_v53, %v1423_v53 }
 0x32b   : > { %v1302_v8 = vmul.f32 0.5, %v1301_v19  ;;  %v1668_v34 = vpack.c.bf16 %v1636_v48, %v1636_v48  ;;  %v1617_v56 = vmul.f32 %v1520_v45, %v5765_v21  ;;  %vm1315_vm15 = vweird.f32 %v6072_v28 }
 0x32c   : > { %v1524_v31 = vmul.f32 0.5, %v1523_v9  ;;  %v1424_v35 = vmul.f32 %v5907_v39, %v1404_v55  ;;  %v1707_v9 = vunpack.c.l.b16 %v1651_v41  ;;  %vm1537_vm7 = vweird.f32 %v6082_v43 }
 0x32d   : > { %v1303_v33 = vsub.f32 1.5, %v1302_v8  ;;  %v1118_v63 = vpop.f32.mrf.mxu3  ;;  %v1202_v20 = vpop.f32.mrf.mxu0  ;;  %v1728_v48 = vunpack.c.l.b16 %v1668_v34 }
 0x32e   : > { %v4726_v25 = vpop.eup %4725  ;;  %v1525_v3 = vsub.f32 1.5, %v1524_v31  ;;  %v6114_v42 = vmax.f32 %v1118_v63, 1e-24  ;;  %2247 = vrot.lane.b32.xlu2 %v6110_v24, %s5255_s14  ;;  %v6121_v49 = vmax.f32 %v1202_v20, 1e-24  ;;  %v1652_v32 = vpack.c.bf16 %v1424_v35, %v1424_v35  ;;  %2723 = vrot.lane.b32.xlu0 %v6110_v24, %s5254_s11 }
 0x32f   : > { %v6116_v23 = vpop.eup %4727  ;;  %v1310_v52 = vmul.f32 %v4726_v25, %v6072_v28  ;;  %v1304_v19 = vmul.f32 %v6069_v51, %v1303_v33  ;;  %v1727_v31 = vunpack.c.l.b16 %v1667_v27  ;;  %v1637_v35 = vmul.f32 %v5896_v57, %v1617_v56 }
 0x330   : > { %v1526_v16 = vmul.f32 %v4724_v59, %v1525_v3  ;;  %v1532_v61 = vmul.f32 %v6116_v23, %v6082_v43  ;;  %4729 = vrsqrt.f32 %v6114_v42  ;;  %v1708_v38 = vunpack.c.l.b16 %v1652_v32 }
 0x331   : > { %v1311_v55 = vmul.f32 %v4726_v25, %v1310_v52  ;;  %4731 = vrsqrt.f32 %v6121_v49  ;;  %v1308_v62 = vsel %vm6137_vm13, %v6069_v51, %v1304_v19  ;;  %vm1316_vm14 = vweird.f32 %v4726_v25 }
 0x332   : > { %v1530_v21 = vsel %vm1529_vm11, %v4724_v59, %v1526_v16  ;;  %v1533_v4 = vmul.f32 %v6116_v23, %v1532_v61  ;;  %v6146_v45 = vpack.c.b16 %v1708_v38, %v1707_v9  ;;  %v6153_v3 = vpack.c.b16 %v1728_v48, %v1727_v31  ;;  %vm1317_vm0 = vmor %vm1315_vm15, %vm1316_vm14 }
 0x333   : > { %v1618_v53 = vmul.f32 %v1530_v21, %v5775_v54  ;;  %v1312_v8 = vmul.f32 0.5, %v1311_v55  ;;  %v1405_v32 = vmul.f32 %v1308_v62, %v5767_v40  ;;  %v1669_v19 = vpack.c.bf16 %v1637_v35, %v1637_v35 }
 0x334   : > { %2249 = vrot.lane.b32.xlu1 %v6146_v45, %s5255_s14  ;;  %v1534_v34 = vmul.f32 0.5, %v1533_v4  ;;  %v1687_v21 = vpack.c.bf16 %v5793_v36, %v5793_v36  ;;  %vm1538_vm2 = vweird.f32 %v6116_v23  ;;  %vm1547_vm3 = vweird.f32 %v6121_v49 }
 0x335   : > { %v1313_v59 = vsub.f32 1.5, %v1312_v8  ;;  %v1121_v54 = vpop.f32.mrf.mxu3  ;;  %v1205_v27 = vpop.f32.mrf.mxu0  ;;  %v1638_v28 = vmul.f32 %v5896_v57, %v1618_v53  ;;  %v1425_v38 = vmul.f32 %v5907_v39, %v1405_v32  ;;  %v1729_v31 = vunpack.c.l.b16 %v1669_v19  ;;  %vm6231_vm8 = vmor %vm1537_vm7, %vm1538_vm2 }
 0x336   : > { %v6148_v33 = vpop.eup %4729  ;;  %v6151_v63 = vmax.f32 %v1121_v54, 1e-24  ;;  %3199 = vrot.lane.b32.xlu2 %v6110_v24, %s5256_s17  ;;  %v6163_v52 = vmax.f32 %v1205_v27, 1e-24  ;;  %2257 = vrot.lane.b32.xlu0 %v6153_v3, %s5255_s14  ;;  %v1535_v29 = vsub.f32 1.5, %v1534_v34  ;;  %vm1325_vm9 = vweird.f32 %v6114_v42 }
 0x337   : > { %v6155_v20 = vpop.eup %4731  ;;  %v1314_v41 = vmul.f32 %v4726_v25, %v1313_v59  ;;  %v1320_v51 = vmul.f32 %v6148_v33, %v6114_v42  ;;  %v1670_v53 = vpack.c.bf16 %v1638_v28, %v1638_v28  ;;  %v1653_v32 = vpack.c.bf16 %v1425_v38, %v1425_v38 }
 0x338   : > { %v1542_v56 = vmul.f32 %v6155_v20, %v6121_v49  ;;  %4733 = vrsqrt.f32 %v6151_v63  ;;  %vm1548_vm4 = vweird.f32 %v6155_v20  ;;  %vm1326_vm5 = vweird.f32 %v6148_v33 }
 0x339   : > { %v1318_v16 = vsel %vm1317_vm0, %v4726_v25, %v1314_v41  ;;  %v1321_v61 = vmul.f32 %v6148_v33, %v1320_v51  ;;  %4735 = vrsqrt.f32 %v6163_v52  ;;  %v1688_v25 = vpack.c.bf16 %v5803_v0, %v5803_v0  ;;  %vm6216_vm6 = vmor %vm1547_vm3, %vm1548_vm4 }
 0x33a   : > { %v1406_v55 = vmul.f32 %v1318_v16, %v5779_v22  ;;  %v1543_v40 = vmul.f32 %v6155_v20, %v1542_v56  ;;  %v1730_v35 = vunpack.c.l.b16 %v1670_v53  ;;  %v1536_v56 = vmul.f32 %v6116_v23, %v1535_v29  ;;  %vm6239_vm10 = vmor %vm1325_vm9, %vm1326_vm5 }
 0x33b   : > { %v1322_v9 = vmul.f32 0.5, %v1321_v61  ;;  %v1689_v49 = vpack.c.bf16 %v5815_v5, %v5815_v5  ;;  %v1709_v43 = vunpack.c.l.b16 %v1653_v32  ;;  %vm1335_vm12 = vweird.f32 %v6151_v63 }
 0x33c   : > { %v1544_v8 = vmul.f32 0.5, %v1543_v40  ;;  %v1426_v48 = vmul.f32 %v5907_v39, %v1406_v55  ;;  %2725 = vrot.lane.b32.xlu1 %v6146_v45, %s5254_s11  ;;  %v6196_v51 = vpack.c.b16 %v1730_v35, %v1729_v31  ;;  %v2189_v55 = vunpack.c.l.b16 %v1688_v25 }
 0x33d   : > { %v1124_v4 = vpop.f32.mrf.mxu3  ;;  %v1323_v62 = vsub.f32 1.5, %v1322_v9  ;;  %v1208_v27 = vpop.f32.mrf.mxu0  ;;  %v1690_v9 = vpack.c.bf16 %v5827_v44, %v5827_v44  ;;  %v1752_v38 = vsel %vm1735_vm1, %v6020_v50, 0  ;;  %vm1557_vm2 = vweird.f32 %v6163_v52 }
 0x33e   : > { %v6183_v22 = vpop.eup %4733  ;;  %v1545_v59 = vsub.f32 1.5, %v1544_v8  ;;  %v6186_v54 = vmax.f32 %v1124_v4, 1e-24  ;;  %v1654_v34 = vpack.c.bf16 %v1426_v48, %v1426_v48  ;;  %2733 = vrot.lane.b32.xlu0 %v6153_v3, %s5254_s11  ;;  %2259 = vrot.lane.b32.xlu2 %v6196_v51, %s5255_s14  ;;  %v6208_v19 = vmax.f32 %v1208_v27, 1e-24 }
 0x33f   : > { %v6188_v0 = vpop.eup %4735  ;;  %v1330_v41 = vmul.f32 %v6183_v22, %v6151_v63  ;;  %v1324_v40 = vmul.f32 %v6148_v33, %v1323_v62  ;;  %v1758_v53 = vsel %vm1735_vm1, %v6196_v51, 0  ;;  %vm1336_vm11 = vweird.f32 %v6183_v22 }
 0x340   : > { %v1546_v28 = vmul.f32 %v6155_v20, %v1545_v59  ;;  %4737 = vrsqrt.f32 %v6186_v54  ;;  %v1552_v61 = vmul.f32 %v6188_v0, %v6163_v52  ;;  %1764 = vmatpush.bf16.xpose.msrb.mxu1 %v1758_v53  ;;  %v1710_v48 = vunpack.c.l.b16 %v1654_v34  ;;  %vm1337_vm13 = vmor %vm1335_vm12, %vm1336_vm11 }
 0x341   : > { %v1331_v16 = vmul.f32 %v6183_v22, %v1330_v41  ;;  %4739 = vrsqrt.f32 %v6208_v19  ;;  %v1328_v42 = vsel %vm6239_vm10, %v6148_v33, %v1324_v40  ;;  %v2188_v33 = vunpack.c.l.b16 %v1687_v21 }
 0x342   : > { %v1550_v25 = vsel %vm6216_vm6, %v6155_v20, %v1546_v28  ;;  %v1540_v20 = vsel %vm6231_vm8, %v6116_v23, %v1536_v56  ;;  %v1553_v5 = vmul.f32 %v6188_v0, %v1552_v61  ;;  %v6251_v59 = vpack.c.b16 %v1710_v48, %v1709_v43 }
 0x343   : > { %v1332_v8 = vmul.f32 0.5, %v1331_v16  ;;  %v1620_v62 = vmul.f32 %v1550_v25, %v5795_v58  ;;  %v1619_v58 = vmul.f32 %v1540_v20, %v5785_v13  ;;  %v1407_v34 = vmul.f32 %v1328_v42, %v5787_v47 }
 0x344   : > { %2251 = vrot.lane.b32.xlu1 %v6251_v59, %s5255_s14  ;;  %v1554_v16 = vmul.f32 0.5, %v1553_v5  ;;  %v1755_v13 = vsel %vm1735_vm1, %v6153_v3, 0  ;;  %v6287_v40 = vunpack.c.l.b16 %v1689_v49  ;;  %vm1558_vm14 = vweird.f32 %v6188_v0 }
 0x345   : > { %v1333_v4 = vsub.f32 1.5, %v1332_v8  ;;  %v1127_v31 = vpop.f32.mrf.mxu3  ;;  %v1211_v27 = vpop.f32.mrf.mxu0  ;;  %v1640_v47 = vmul.f32 %v5896_v57, %v1620_v62  ;;  %v1639_v53 = vmul.f32 %v5896_v57, %v1619_v58  ;;  %v1427_v43 = vmul.f32 %v5907_v39, %v1407_v34  ;;  %vm6339_vm4 = vmor %vm1557_vm2, %vm1558_vm14 }
 0x346   : > { %v6245_v35 = vpop.eup %4737  ;;  %v6253_v23 = vmax.f32 %v1127_v31, 1e-24  ;;  %v6259_v32 = vmax.f32 %v1211_v27, 1e-24  ;;  %3209 = vrot.lane.b32.xlu0 %v6153_v3, %s5256_s17  ;;  %3211 = vrot.lane.b32.xlu2 %v6196_v51, %s5256_s17  ;;  %v1555_v8 = vsub.f32 1.5, %v1554_v16  ;;  %vm1567_vm0 = vweird.f32 %v6208_v19 }
 0x347   : > { %v1334_v41 = vmul.f32 %v6183_v22, %v1333_v4  ;;  %v1340_v28 = vmul.f32 %v6245_v35, %v6186_v54  ;;  %v6270_v63 = vpop.eup %4739  ;;  %v1672_v5 = vpack.c.bf16 %v1640_v47, %v1640_v47  ;;  %v1671_v50 = vpack.c.bf16 %v1639_v53, %v1639_v53 }
 0x348   : > { %4741 = vrsqrt.f32 %v6253_v23  ;;  %v1562_v61 = vmul.f32 %v6270_v63, %v6208_v19  ;;  %1765 = vmatpush.bf16.xpose.msrb.mxu1 %v1755_v13  ;;  %vm1568_vm15 = vweird.f32 %v6270_v63  ;;  %v1691_v16 = vpack.c.bf16 %v5837_v15, %v5837_v15 }
 0x349   : > { %v1338_v56 = vsel %vm1337_vm13, %v6183_v22, %v1334_v41  ;;  %v1341_v21 = vmul.f32 %v6245_v35, %v1340_v28  ;;  %v6285_v22 = vpack.c.b16 %v2189_v55, %v2188_v33  ;;  %4743 = vrsqrt.f32 %v6259_v32  ;;  %vm6331_vm3 = vmor %vm1567_vm0, %vm1568_vm15 }
 0x34a   : > { %v1408_v36 = vmul.f32 %v1338_v56, %v5797_v60  ;;  %v1692_v60 = vpack.c.bf16 %v5847_v26, %v5847_v26  ;;  %v1563_v3 = vmul.f32 %v6270_v63, %v1562_v61  ;;  %v1694_v55 = vpack.c.bf16 %v5867_v46, %v5867_v46 }
 0x34b   : > { %v1342_v20 = vmul.f32 0.5, %v1341_v21  ;;  %v1556_v41 = vmul.f32 %v6188_v0, %v1555_v8  ;;  %v1655_v28 = vpack.c.bf16 %v1427_v43, %v1427_v43  ;;  %v1818_v56 = vunpack.c.l.b16 %v1672_v5 }
 0x34c   : > { %v1428_v25 = vmul.f32 %v5907_v39, %v1408_v36  ;;  %v1564_v26 = vmul.f32 0.5, %v1563_v3  ;;  %2727 = vrot.lane.b32.xlu1 %v6251_v59, %s5254_s11  ;;  %v2193_v13 = vunpack.c.l.b16 %v1692_v60  ;;  %v1693_v21 = vpack.c.bf16 %v5857_v37, %v5857_v37 }
 0x34d   : > { %v1130_v49 = vpop.f32.mrf.mxu3  ;;  %v1214_v4 = vpop.f32.mrf.mxu0  ;;  %v1343_v33 = vsub.f32 1.5, %v1342_v20  ;;  %v1817_v47 = vunpack.c.l.b16 %v1671_v50  ;;  %v2195_v60 = vunpack.c.l.b16 %v1694_v55  ;;  %v1560_v3 = vsel %vm6339_vm4, %v6188_v0, %v1556_v41 }
 0x34e   : > { %v6302_v48 = vpop.eup %4741  ;;  %v6304_v29 = vmax.f32 %v1130_v49, 1e-24  ;;  %v6309_v31 = vmax.f32 %v1214_v4, 1e-24  ;;  %v1656_v42 = vpack.c.bf16 %v1428_v25, %v1428_v25  ;;  %v1565_v62 = vsub.f32 1.5, %v1564_v26  ;;  %3201 = vrot.lane.b32.xlu0 %v6146_v45, %s5256_s17  ;;  %3203 = vrot.lane.b32.xlu2 %v6251_v59, %s5256_s17 }
 0x34f   : > { %v1350_v46 = vmul.f32 %v6302_v48, %v6253_v23  ;;  %v6315_v27 = vpop.eup %4743  ;;  %vm1346_vm5 = vweird.f32 %v6245_v35  ;;  %v1797_v53 = vunpack.c.l.b16 %v1655_v28  ;;  %v1344_v8 = vmul.f32 %v6245_v35, %v1343_v33 }
 0x350   : > { %4745 = vrsqrt.f32 %v6304_v29  ;;  %v1566_v58 = vmul.f32 %v6270_v63, %v1565_v62  ;;  %1766 = vmatpush.bf16.xpose.msrb.mxu1 %v1752_v38  ;;  %v1798_v36 = vunpack.c.l.b16 %v1656_v42  ;;  %v1572_v52 = vmul.f32 %v6315_v27, %v6259_v32 }
 0x351   : > { %4747 = vrsqrt.f32 %v6309_v31  ;;  %v1351_v34 = vmul.f32 %v6302_v48, %v1350_v46  ;;  %v6355_v38 = vpack.c.b16 %v1818_v56, %v1817_v47  ;;  %v2194_v5 = vunpack.c.l.b16 %v1693_v21 }
 0x352   : > { %v1570_v15 = vsel %vm6331_vm3, %v6270_v63, %v1566_v58  ;;  %v6364_v26 = vpack.c.b16 %v1798_v36, %v1797_v53  ;;  %v1621_v46 = vmul.f32 %v1560_v3, %v5805_v2  ;;  %v1573_v42 = vmul.f32 %v6315_v27, %v1572_v52 }
 0x353   : > { %v1352_v49 = vmul.f32 0.5, %v1351_v34  ;;  %v1622_v55 = vmul.f32 %v1570_v15, %v5817_v10  ;;  %vm1345_vm6 = vweird.f32 %v6186_v54  ;;  %v2192_v2 = vunpack.c.l.b16 %v1691_v16 }
 0x354   : > { %2322 = vrot.lane.b32.xlu1 %v6355_v38, %s5255_s14  ;;  %v6382_v50 = vpack.c.b16 %v2195_v60, %v2194_v5  ;;  %vm6386_vm7 = vmor %vm1345_vm6, %vm1346_vm5  ;;  %v1749_v28 = vsel %vm1735_vm1, %v5944_v30, 0  ;;  %vm1355_vm8 = vweird.f32 %v6253_v23  ;;  %v1574_v16 = vmul.f32 0.5, %v1573_v42 }
 0x355   : > { %v1133_v37 = vpop.f32.mrf.mxu3  ;;  %v1217_v43 = vpop.f32.mrf.mxu0  ;;  %v1353_v41 = vsub.f32 1.5, %v1352_v49  ;;  %v1348_v33 = vsel %vm6386_vm7, %v6245_v35, %v1344_v8  ;;  %v1642_v34 = vmul.f32 %v5896_v57, %v1622_v55  ;;  %v6399_v56 = vpack.c.b16 %v2193_v13, %v2192_v2 }
 0x356   : > { %v6352_v25 = vpop.eup %4745  ;;  %v6357_v63 = vmax.f32 %v1133_v37, 1e-24  ;;  %v6366_v4 = vmax.f32 %v1217_v43, 1e-24  ;;  %2735 = vrot.lane.b32.xlu0 %v6196_v51, %s5254_s11  ;;  %2790 = vrot.lane.b32.xlu2 %v6364_v26, %s5254_s11  ;;  %7866 = vst [vmem:[#allocation23_spill] sm:$0xff] %v6382_v50  ;;  %v2191_v51 = vunpack.c.l.b16 %v1690_v9  ;;  %v1641_v30 = vmul.f32 %v5896_v57, %v1621_v46 }
 0x357   : > { %v6359_v20 = vpop.eup %4747  ;;  %v1360_v0 = vmul.f32 %v6352_v25, %v6304_v29  ;;  %7869 = vst [vmem:[#allocation24_spill] sm:$0xff] %v6399_v56  ;;  %vm1356_vm9 = vweird.f32 %v6302_v48  ;;  %vm1366_vm10 = vweird.f32 %v6352_v25  ;;  %v1409_v13 = vmul.f32 %v1348_v33, %v5809_v7 }
 0x358   : > { %4749 = vrsqrt.f32 %v6357_v63  ;;  %v1582_v62 = vmul.f32 %v6359_v20, %v6309_v31  ;;  %1767 = vmatpush.bf16.xpose.msrb.mxu1 %v1749_v28  ;;  %v1354_v36 = vmul.f32 %v6302_v48, %v1353_v41  ;;  %vm1365_vm11 = vweird.f32 %v6304_v29  ;;  %vm6447_vm13 = vmor %vm1355_vm8, %vm1356_vm9 }
 0x359   : > { %v1361_v10 = vmul.f32 %v6352_v25, %v1360_v0  ;;  %4751 = vrsqrt.f32 %v6366_v4  ;;  %v1674_v60 = vpack.c.bf16 %v1642_v34, %v1642_v34  ;;  %v1575_v3 = vsub.f32 1.5, %v1574_v16  ;;  %vm6423_vm12 = vmor %vm1365_vm11, %vm1366_vm10 }
 0x35a   : > { %v1583_v35 = vmul.f32 %v6359_v20, %v1582_v62  ;;  %v1673_v37 = vpack.c.bf16 %v1641_v30, %v1641_v30  ;;  %v6441_v43 = vpack.c.b16 %v2191_v51, %v6287_v40  ;;  %vm1577_vm14 = vweird.f32 %v6259_v32 }
 0x35b   : > { %v1362_v58 = vmul.f32 0.5, %v1361_v10  ;;  %vm1578_vm15 = vweird.f32 %v6315_v27  ;;  %v1358_v40 = vsel %vm6447_vm13, %v6302_v48, %v1354_v36  ;;  %v1820_v5 = vunpack.c.l.b16 %v1674_v60 }
 0x35c   : > { %2798 = vrot.lane.b32.xlu1 %v6355_v38, %s5254_s11  ;;  %v1584_v8 = vmul.f32 0.5, %v1583_v35  ;;  %v6460_v23 = vmul.f32 %v5907_v39, %v1409_v13  ;;  %v6463_v46 = vmul.f32 %v6315_v27, %v1575_v3  ;;  %v1819_v62 = vunpack.c.l.b16 %v1673_v37  ;;  %vm6509_vm8 = vmor %vm1577_vm14, %vm1578_vm15 }
 0x35d   : > { %v1363_v44 = vsub.f32 1.5, %v1362_v58  ;;  %v1136_v9 = vpop.f32.mrf.mxu3  ;;  %v1220_v61 = vpop.f32.mrf.mxu0  ;;  %vm1375_vm0 = vweird.f32 %v6357_v63  ;;  %v1410_v41 = vmul.f32 %v1358_v40, %v5821_v14  ;;  %vm1597_vm4 = vweird.f32 %v6366_v4 }
 0x35e   : > { %v6407_v19 = vpop.eup %4749  ;;  %v6412_v21 = vmax.f32 %v1136_v9, 1e-24  ;;  %v6419_v47 = vmax.f32 %v1220_v61, 1e-24  ;;  %3274 = vrot.lane.b32.xlu0 %v6355_v38, %s5256_s17  ;;  %v1585_v2 = vsub.f32 1.5, %v1584_v8  ;;  %v6479_v58 = vpack.c.b16 %v1820_v5, %v1819_v62 }
 0x35f   : > { %v6414_v57 = vpop.eup %4751  ;;  %v1364_v15 = vmul.f32 %v6352_v25, %v1363_v44  ;;  %v1370_v52 = vmul.f32 %v6407_v19, %v6357_v63  ;;  %4293 = vmatmul.msk.bf16.vlgmr.msrb.gmra.mxu1 %vm1735_vm1, %v5962_v6  ;;  %vm1376_vm2 = vweird.f32 %v6407_v19  ;;  %vm1588_vm6 = vweird.f32 %v6359_v20 }
 0x360   : > { %2220 = vmatpush.bf16.msra.mxu1 %v6382_v50  ;;  %v1592_v29 = vmul.f32 %v6414_v57, %v6366_v4  ;;  %4753 = vrsqrt.f32 %v6412_v21  ;;  %vm1598_vm3 = vweird.f32 %v6414_v57  ;;  %vm1377_vm5 = vmor %vm1375_vm0, %vm1376_vm2  ;;  %v1586_v4 = vmul.f32 %v6359_v20, %v1585_v2 }
 0x361   : > { %v1368_v53 = vsel %vm6423_vm12, %v6352_v25, %v1364_v15  ;;  %v1371_v49 = vmul.f32 %v6407_v19, %v1370_v52  ;;  %4755 = vrsqrt.f32 %v6419_v47  ;;  %vm6493_vm7 = vmor %vm1597_vm4, %vm1598_vm3  ;;  %vm1587_vm9 = vweird.f32 %v6309_v31 }
 0x362   : > { %v1593_v25 = vmul.f32 %v6414_v57, %v1592_v29  ;;  %v1411_v42 = vmul.f32 %v1368_v53, %v5831_v12  ;;  %vm6520_vm10 = vmor %vm1587_vm9, %vm1588_vm6  ;;  %vm1385_vm13 = vweird.f32 %v6412_v21  ;;  %vm1607_vm14 = vweird.f32 %v6419_v47 }
 0x363   : > { %v1372_v0 = vmul.f32 0.5, %v1371_v49  ;;  %v1590_v31 = vsel %vm6520_vm10, %v6359_v20, %v1586_v4  ;;  %vm3897_vm6 = vcmask 785408  }
 0x364   : > { %2221 = vmatpush.bf16.msra.mxu1 %v6399_v56  ;;  %v1594_v10 = vmul.f32 0.5, %v1593_v25  ;;  %2314 = vrot.lane.b32.xlu1 %v6364_v26, %s5255_s14  ;;  %v1431_v16 = vmul.f32 %v5907_v39, %v1411_v42  ;;  %v1624_v20 = vmul.f32 %v1590_v31, %v5839_v1  ;;  %v5015_v1 = vld [vmem:[%s7790_s5] ss:$0 sm:$0xff] }
 0x365   : > { %v1373_v6 = vsub.f32 1.5, %v1372_v0  ;;  %v1139_v48 = vpop.f32.mrf.mxu3 }
 0x366   : > { %v6469_v54 = vpop.eup %4753  ;;  %v1595_v28 = vsub.f32 1.5, %v1594_v10  ;;  %v6473_v51 = vmax.f32 %v1139_v48, 1e-24  ;;  %2324 = vrot.lane.b32.xlu0 %v6479_v58, %s5255_s14  ;;  %v1659_v3 = vpack.c.bf16 %v1431_v16, %v1431_v16  ;;  %v7882_v10 = vld [vmem:[#allocation22_spill] sm:$0xff] }
 0x367   : > { %v4756_v12 = vpop.eup %4755  ;;  %v1374_v33 = vmul.f32 %v6407_v19, %v1373_v6  ;;  %v1380_v63 = vmul.f32 %v6469_v54, %v6412_v21  ;;  %vm1386_vm11 = vweird.f32 %v6469_v54 }
 0x368   : > { %2222 = vmatpush.bf16.msra.mxu1 %v6441_v43  ;;  %v1596_v34 = vmul.f32 %v6414_v57, %v1595_v28  ;;  %v1602_v14 = vmul.f32 %v4756_v12, %v6419_v47  ;;  %4757 = vrsqrt.f32 %v6473_v51  ;;  %vm1608_vm12 = vweird.f32 %v4756_v12  ;;  %vm6535_vm15 = vmor %vm1385_vm13, %vm1386_vm11 }
 0x369   : > { %v1378_v30 = vsel %vm1377_vm5, %v6407_v19, %v1374_v33  ;;  %v1381_v35 = vmul.f32 %v6469_v54, %v1380_v63  ;;  %v1430_v19 = vmul.f32 %v5907_v39, %v1410_v41  ;;  %v1801_v25 = vunpack.c.l.b16 %v1659_v3  ;;  %vm1609_vm0 = vmor %vm1607_vm14, %vm1608_vm12  ;;  %v7883_v41 = vld [vmem:[#allocation20_spill] sm:$0xff] }
 0x36a   : > { %v1412_v9 = vmul.f32 %v1378_v30, %v5841_v18  ;;  %v1600_v13 = vsel %vm6493_vm7, %v6414_v57, %v1596_v34  ;;  %v1603_v36 = vmul.f32 %v4756_v12, %v1602_v14  ;;  %v1657_v18 = vpack.c.bf16 %v6460_v23, %v6460_v23 }
 0x36b   : > { %v1382_v15 = vmul.f32 0.5, %v1381_v35  ;;  %v1580_v57 = vsel %vm6509_vm8, %v6315_v27, %v6463_v46  ;;  %v1625_v7 = vmul.f32 %v1600_v13, %v5851_v17  ;;  %v1658_v8 = vpack.c.bf16 %v1430_v19, %v1430_v19  ;;  %v7884_v13 = vld [vmem:[#allocation21_spill] sm:$0xff] }
 0x36c   : > { %2223 = vmatpush.bf16.msra.mxu1 %v6285_v22  ;;  %v1604_v32 = vmul.f32 0.5, %v1603_v36  ;;  %v1432_v60 = vmul.f32 %v5907_v39, %v1412_v9  ;;  %3266 = vrot.lane.b32.xlu1 %v6364_v26, %s5256_s17  ;;  %v1623_v47 = vmul.f32 %v1580_v57, %v5829_v11  ;;  %v1799_v48 = vunpack.c.l.b16 %v1657_v18 }
 0x36d   : > { %v1383_v29 = vsub.f32 1.5, %v1382_v15  ;;  %v1645_v21 = vmul.f32 %v5015_v1, %v1625_v7  ;;  %v1800_v6 = vunpack.c.l.b16 %v1658_v8  ;;  %v1644_v11 = vmul.f32 %v5015_v1, %v1624_v20 }
 0x36e   : > { %v4758_v37 = vpop.eup %4757  ;;  %v1605_v53 = vsub.f32 1.5, %v1604_v32  ;;  %v1660_v27 = vpack.c.bf16 %v1432_v60, %v1432_v60  ;;  %v6541_v5 = vpop.permute.xlu2 %2245  ;;  %2800 = vrot.lane.b32.xlu0 %v6479_v58, %s5254_s11  ;;  %v1643_v63 = vmul.f32 %v5015_v1, %v1623_v47  ;;  %vm1395_vm3 = vweird.f32 %v6473_v51 }
 0x36f   : > { %v1384_v49 = vmul.f32 %v6469_v54, %v1383_v29  ;;  %v1390_v39 = vmul.f32 %v4758_v37, %v6473_v51  ;;  %4294 = vmatmul.msk.bf16.gmra.mxu1 %vm1735_vm1, %v6110_v24  ;;  %vm1396_vm2 = vweird.f32 %v4758_v37  ;;  %v6561_v24 = vpack.c.b16 %v1800_v6, %v1799_v48  ;;  %v5016_v51 = vld [vmem:[%s7789_s4] ss:$0 sm:$0xff] }
 0x370   : > { %v1606_v55 = vmul.f32 %v4756_v12, %v1605_v53  ;;  %v1802_v40 = vunpack.c.l.b16 %v1660_v27  ;;  %vm1397_vm4 = vmor %vm1395_vm3, %vm1396_vm2  ;;  %v1676_v16 = vpack.c.bf16 %v1644_v11, %v1644_v11  ;;  %v1675_v61 = vpack.c.bf16 %v1643_v63, %v1643_v63 }
 0x371   : > { %v1391_v0 = vmul.f32 %v4758_v37, %v1390_v39  ;;  %v1388_v23 = vsel %vm6535_vm15, %v6469_v54, %v1384_v49  ;;  %v1842_v17 = vsel %vm1735_vm1, %v6355_v38, 0  ;;  %vm1882_vm5 = vcmask 523264  }
 0x372   : > { %v1610_v46 = vsel %vm1609_vm0, %v4756_v12, %v1606_v55  ;;  %v6554_v42 = vpack.c.b16 %v1802_v40, %v1801_v25  ;;  %v1413_v28 = vmul.f32 %v1388_v23, %v7883_v41  ;;  %v1677_v12 = vpack.c.bf16 %v1645_v21, %v1645_v21 }
 0x373   : > { %v1626_v62 = vmul.f32 %v1610_v46, %v7882_v10  ;;  %v1392_v2 = vmul.f32 0.5, %v1391_v0  ;;  %v1822_v57 = vunpack.c.l.b16 %v1676_v16  ;;  %v1821_v60 = vunpack.c.l.b16 %v1675_v61 }
 0x374   : > { %2318 = vrot.lane.b32.xlu2 %v6554_v42, %s5255_s14  ;;  %3276 = vrot.lane.b32.xlu1 %v6479_v58, %s5256_s17  ;;  %v1823_v44 = vunpack.c.l.b16 %v1677_v12  ;;  %v1433_v9 = vmul.f32 %v5016_v51, %v1413_v28 }
 0x375   : > { %v1393_v33 = vsub.f32 1.5, %v1392_v2  ;;  %v1646_v54 = vmul.f32 %v5015_v1, %v1626_v62  ;;  %v1827_v7 = vpack.c.b16 %v1822_v57, %v1821_v60 }
 0x376   : > { %2792 = vrot.lane.b32.xlu0 %v6561_v24, %s5254_s11  ;;  %v1661_v52 = vpack.c.bf16 %v1433_v9, %v1433_v9 }
 0x377   : > { %v1394_v34 = vmul.f32 %v4758_v37, %v1393_v33  ;;  %v1678_v14 = vpack.c.bf16 %v1646_v54, %v1646_v54  ;;  %v1848_v27 = vsel %vm1735_vm1, %v1827_v7, 0 }
 0x378   : > { %v6567_v30 = vpop.permute.xlu2 %2731  ;;  %v1803_v29 = vunpack.c.l.b16 %v1661_v52 }
 0x379   : > { %v1398_v4 = vsel %vm1397_vm4, %v4758_v37, %v1394_v34  ;;  %v1824_v35 = vunpack.c.l.b16 %v1678_v14  ;;  %v2753_v34 = vsel %vm1735_vm1, %v6567_v30, 0 }
 0x37a   : > { %v1414_v36 = vmul.f32 %v1398_v4, %v7884_v13 }
 0x37b   : > { %v1828_v19 = vpack.c.b16 %v1824_v35, %v1823_v44 }
 0x37c   : > { %v1434_v15 = vmul.f32 %v5016_v51, %v1414_v36  ;;  %2316 = vrot.lane.b32.xlu1 %v6561_v24, %s5255_s14 }
 0x37d   : > { %3280 = vrot.lane.b32.xlu2 %v1828_v19, %s5256_s17  ;;  %v1851_v18 = vsel %vm1735_vm1, %v1828_v19, 0 }
 0x37e   : > { %1857 = vmatpush.bf16.xpose.msrb.mxu2 %v1851_v18  ;;  %v1662_v32 = vpack.c.bf16 %v1434_v15, %v1434_v15  ;;  %2328 = vrot.lane.b32.xlu0 %v1828_v19, %s5255_s14 }
 0x37f   : > { %4295 = vmatmul.msk.bf16.gmra.mxu1 %vm1735_vm1, %v6146_v45  ;;  %v1845_v45 = vsel %vm1735_vm1, %v6479_v58, 0 }
 0x380   : > { %v1804_v3 = vunpack.c.l.b16 %v1662_v32  ;;  %v6578_v31 = vpop.permute.xlu2 %3207  ;;  %v6582_v37 = vpop.permute.xlu0 %2729 }
 0x381   : > { %v2254_v55 = vpop.permute.xlu1 %2253  ;;  %v2750_v51 = vsel %vm1735_vm1, %v6582_v37, 0  ;;  %v3229_v32 = vsel %vm1735_vm1, %v6578_v31, 0 }
 0x382   : > { %v6584_v53 = vpack.c.b16 %v1804_v3, %v1803_v29  ;;  %v2274_v62 = vsel %vm1735_vm1, %v2254_v55, 0 }
 0x384   : > { %2326 = vrot.lane.b32.xlu1 %v1827_v7, %s5255_s14 }
 0x385   : > { %2320 = vrot.lane.b32.xlu2 %v6584_v53, %s5255_s14 }
 0x386   : > { %1858 = vmatpush.bf16.xpose.msrb.mxu2 %v1848_v27  ;;  %2804 = vrot.lane.b32.xlu0 %v1828_v19, %s5254_s11 }
 0x388   : > { %v6591_v8 = vpop.permute.xlu2 %2247  ;;  %v6593_v49 = vpop.permute.xlu0 %3205 }
 0x389   : > { %v3226_v37 = vsel %vm1735_vm1, %v6593_v49, 0 }
 0x38c   : > { %2802 = vrot.lane.b32.xlu1 %v1827_v7, %s5254_s11 }
 0x38e   : > { %1859 = vmatpush.bf16.xpose.msrb.mxu2 %v1845_v45  ;;  %2796 = vrot.lane.b32.xlu0 %v6584_v53, %s5254_s11 }
 0x38f   : > { %4296 = vmatmul.msk.bf16.gmra.mxu1 %vm1735_vm1, %v6251_v59  ;;  %v6614_v59 = vpop.permute.xlu1 %3197 }
 0x390   : > { %v6600_v39 = vpop.permute.xlu2 %3199  ;;  %v6604_v20 = vpop.permute.xlu0 %2721 }
 0x394   : > { %3278 = vrot.lane.b32.xlu1 %v1827_v7, %s5256_s17 }
 0x396   : > { %1860 = vmatpush.bf16.xpose.msrb.mxu2 %v1842_v17 }
 0x398   : > { %v2256_v58 = vpop.permute.xlu0 %2255  ;;  %v2260_v25 = vpop.permute.xlu2 %2259 }
 0x399   : > { %v2283_v40 = vsel %vm1735_vm1, %v2260_v25, 0 }
 0x39c   : > { %2794 = vrot.lane.b32.xlu1 %v6554_v42, %s5254_s11 }
 0x39d   : > { %4297 = vmatmul.msk.bf16.vlgmr.msrb.gmra.mxu2 %vm1735_vm1, %v6364_v26  ;;  %v2277_v26 = vsel %vm1735_vm1, %v2256_v58, 0 }
 0x39e   : > { %2289 = vmatpush.bf16.xpose.msra.mxu2 %v2283_v40 }
 0x3a0   : > { %v6616_v0 = vpop.permute.xlu0 %2723  ;;  %v3212_v4 = vpop.permute.xlu2 %3211 }
 0x3a1   : > { %v3235_v30 = vsel %vm1735_vm1, %v3212_v4, 0 }
 0x3a6   : > { %v6618_v38 = vpop.permute.xlu1 %2249 }
 0x3a8   : > { %v2258_v1 = vpop.permute.xlu0 %2257 }
 0x3a9   : > { %v2280_v21 = vsel %vm1735_vm1, %v2258_v1, 0 }
 0x3aa   : > { %2290 = vmatpush.bf16.xpose.msra.mxu2 %v2280_v21  ;;  %v6715_v21 = vpop.permute.xlu2 %3203 }
 0x3ad   : > { %4298 = vmatmul.msk.bf16.gmra.mxu2 %vm1735_vm1, %v6561_v24 }
 0x3ae   : > { %v6623_v47 = vpop.permute.xlu1 %2725 }
 0x3b0   : > { %v2734_v23 = vpop.permute.xlu0 %2733 }
 0x3b1   : > { %v2756_v54 = vsel %vm1735_vm1, %v2734_v23, 0 }
 0x3b2   : > { %2291 = vmatpush.bf16.xpose.msra.mxu2 %v2277_v26 }
 0x3b6   : > { %v6626_v46 = vpop.permute.xlu1 %2251 }
 0x3b8   : > { %v3210_v10 = vpop.permute.xlu0 %3209 }
 0x3b9   : > { %v3232_v19 = vsel %vm1735_vm1, %v3210_v10, 0 }
 0x3ba   : > { %2292 = vmatpush.bf16.xpose.msra.mxu2 %v2274_v62 }
 0x3bd   : > { %4299 = vmatmul.msk.bf16.gmra.mxu2 %vm1735_vm1, %v6554_v42 }
 0x3be   : > { %v6631_v2 = vpop.permute.xlu1 %2727 }
 0x3c0   : > { %v6633_v6 = vpop.permute.xlu0 %3201 }
 0x3c6   : > { %v2323_v48 = vpop.permute.xlu1 %2322 }
 0x3c7   : > { %v2343_v49 = vsel %vm1735_vm1, %v2323_v48, 0 }
 0x3c8   : > { %v2736_v11 = vpop.permute.xlu0 %2735 }
 0x3c9   : > { %v2759_v41 = vsel %vm1735_vm1, %v2736_v11, 0 }
 0x3ca   : > { %2765 = vmatpush.bf16.xpose.msrb.mxu2 %v2759_v41 }
 0x3cd   : > { %4300 = vmatmul.msk.bf16.gmra.mxu2 %vm1735_vm1, %v6584_v53 }
 0x3ce   : > { %v6638_v28 = vpop.permute.xlu1 %2798 }
 0x3d0   : > { %v6640_v33 = vpop.permute.xlu0 %3274 }
 0x3d2   : > { %2766 = vmatpush.bf16.xpose.msrb.mxu2 %v2756_v54 }
 0x3d6   : > { %v6643_v12 = vpop.permute.xlu1 %2314 }
 0x3d8   : > { %v2325_v63 = vpop.permute.xlu0 %2324 }
 0x3da   : > { %2767 = vmatpush.bf16.xpose.msrb.mxu2 %v2753_v34 }
 0x3dc   : > { %v6649_v14 = vpop.f32.mrf.mxu1 }
 0x3dd   : > { %4309 = vmatmul.msk.bf16.vlgmr.msra.gmra.mxu2 %vm1735_vm1, %v6541_v5  ;;  %v1883_v16 = vsel %vm1882_vm5, %v6649_v14, -inf }
 0x3de   : > { %1884 = vmax.xlane.f32.xlu2 %v1883_v16  ;;  %v6653_v44 = vpop.permute.xlu1 %3266 }
 0x3df   : > { %7885 = vst [vmem:[#allocation22_spill] sm:$0xff] %v6653_v44 }
 0x3e0   : > { %v6655_v35 = vpop.permute.xlu0 %2800 }
 0x3e2   : > { %2768 = vmatpush.bf16.xpose.msrb.mxu2 %v2750_v51 }
 0x3e4   : > { %v6660_v9 = vpop.f32.mrf.mxu1 }
 0x3e5   : > { %v1886_v5 = vsel %vm1882_vm5, %v6660_v9, -inf }
 0x3e6   : > { %1887 = vmax.xlane.f32.xlu0 %v1886_v5  ;;  %v6664_v13 = vpop.permute.xlu1 %3276 }
 0x3e8   : > { %v6666_v36 = vpop.permute.xlu0 %2792 }
 0x3e9   : > { %7886 = vst [vmem:[#allocation20_spill] sm:$0xff] %v6666_v36 }
 0x3ea   : > { %3241 = vmatpush.bf16.xpose.msra.mxu2 %v3235_v30 }
 0x3ec   : > { %v6669_v61 = vpop.f32.mrf.mxu1 }
 0x3ed   : > { %4310 = vmatmul.msk.bf16.gmra.mxu2 %vm1735_vm1, %v6591_v8  ;;  %v1889_v15 = vsel %vm1882_vm5, %v6669_v61, -inf  ;;  %v2346_v8 = vsel %vm1735_vm1, %v2325_v63, 0 }
 0x3ee   : > { %1890 = vmax.xlane.f32.xlu1 %v1889_v15  ;;  %v6675_v18 = vpop.permute.xlu1 %2316 }
 0x3f0   : > { %v2329_v57 = vpop.permute.xlu0 %2328 }
 0x3f1   : > { %v2352_v52 = vsel %vm1735_vm1, %v2329_v57, 0 }
 0x3f2   : > { %3242 = vmatpush.bf16.xpose.msra.mxu2 %v3232_v19  ;;  %2358 = vmatpush.bf16.xpose.msrb.mxu3 %v2352_v52 }
 0x3f4   : > { %v6680_v60 = vpop.f32.mrf.mxu1 }
 0x3f5   : > { %v1892_v3 = vsel %vm1882_vm5, %v6680_v60, -inf }
 0x3f6   : > { %1893 = vmax.xlane.f32.xlu2 %v1892_v3  ;;  %v2327_v7 = vpop.permute.xlu1 %2326 }
 0x3f7   : > { %v2349_v29 = vsel %vm1735_vm1, %v2327_v7, 0 }
 0x3f8   : > { %v6745_v34 = vpop.permute.xlu0 %2804 }
 0x3fa   : > { %3243 = vmatpush.bf16.xpose.msra.mxu2 %v3229_v32  ;;  %2359 = vmatpush.bf16.xpose.msrb.mxu3 %v2349_v29 }
 0x3fc   : > { %v6687_v27 = vpop.f32.mrf.mxu1 }
 0x3fd   : > { %4311 = vmatmul.msk.bf16.gmra.mxu2 %vm1735_vm1, %v6618_v38  ;;  %v1895_v31 = vsel %vm1882_vm5, %v6687_v27, -inf }
 0x3fe   : > { %1896 = vmax.xlane.f32.xlu0 %v1895_v31  ;;  %v6741_v54 = vpop.permute.xlu1 %2802 }
 0x402   : > { %3244 = vmatpush.bf16.xpose.msra.mxu2 %v3226_v37  ;;  %2360 = vmatpush.bf16.xpose.msrb.mxu3 %v2346_v8 }
 0x404   : > { %v6694_v45 = vpop.f32.mrf.mxu1 }
 0x405   : > { %v1898_v17 = vsel %vm1882_vm5, %v6694_v45, -inf }
 0x406   : > { %1899 = vmax.xlane.f32.xlu1 %v1898_v17  ;;  %v6753_v51 = vpop.permute.xlu1 %3278 }
 0x40a   : > { %2361 = vmatpush.bf16.xpose.msrb.mxu3 %v2343_v49 }
 0x40c   : > { %v6699_v55 = vpop.f32.mrf.mxu1 }
 0x40d   : > { %4312 = vmatmul.msk.bf16.gmra.mxu2 %vm1735_vm1, %v6626_v46  ;;  %v1901_v58 = vsel %vm1882_vm5, %v6699_v55, -inf }
 0x40e   : > { %1902 = vmax.xlane.f32.xlu1 %v1901_v58  ;;  %v6760_v57 = vpop.permute.xlu1 %2794 }
 0x40f   : > { %7888 = vst [vmem:[#allocation25_spill] sm:$0xff] %v6760_v57 }
 0x414   : > { %v6705_v25 = vpop.f32.mrf.mxu1 }
 0x415   : > { %v1904_v40 = vsel %vm1882_vm5, %v6705_v25, -inf }
 0x416   : > { %1905 = vmax.xlane.f32.xlu1 %v1904_v40 }
 0x41d   : > { %4325 = vmatmul.msk.bf16.vlgmr.msrb.gmra.mxu2 %vm1735_vm1, %v6604_v20  ;;  %v6725_v20 = vpop.permute.xlu2 %2790 }
 0x420   : > { %v6711_v38 = vpop.f32.mrf.mxu2 }
 0x421   : > { %v1907_v1 = vsel %vm1882_vm5, %v6711_v38, -inf }
 0x422   : > { %1908 = vmax.xlane.f32.xlu0 %v1907_v1 }
 0x425   : > { %v6731_v48 = vpop.permute.xlu2 %2318 }
 0x428   : > { %v6717_v23 = vpop.f32.mrf.mxu2 }
 0x429   : > { %v1910_v26 = vsel %vm1882_vm5, %v6717_v23, -inf }
 0x42a   : > { %1911 = vmax.xlane.f32.xlu2 %v1910_v26 }
 0x42d   : > { %4326 = vmatmul.msk.bf16.gmra.mxu2 %vm1735_vm1, %v6616_v0  ;;  %v6739_v41 = vpop.permute.xlu2 %3280 }
 0x430   : > { %v6723_v46 = vpop.f32.mrf.mxu2 }
 0x431   : > { %v1913_v10 = vsel %vm1882_vm5, %v6723_v46, -inf }
 0x432   : > { %1914 = vmax.xlane.f32.xlu2 %v1913_v10 }
 0x435   : > { %v6747_v16 = vpop.permute.xlu2 %2320 }
 0x438   : > { %v6729_v62 = vpop.f32.mrf.mxu2 }
 0x439   : > { %v1916_v11 = vsel %vm1882_vm5, %v6729_v62, -inf }
 0x43a   : > { %1917 = vmax.xlane.f32.xlu2 %v1916_v11 }
 0x43d   : > { %4327 = vmatmul.msk.bf16.gmra.mxu2 %vm1735_vm1, %v6623_v47  ;;  %v6755_v47 = vpop.permute.xlu0 %2796 }
 0x43e   : > { %7887 = vst [vmem:[#allocation21_spill] sm:$0xff] %v6755_v47 }
 0x440   : > { %v6737_v0 = vpop.f32.mrf.mxu2 }
 0x448   : > { %v6743_v63 = vpop.f32.mrf.mxu2 }
 0x44d   : > { %4328 = vmatmul.msk.bf16.gmra.mxu2 %vm1735_vm1, %v6631_v2 }
 0x450   : > { %v6751_v4 = vpop.f32.mrf.mxu2 }
 0x451   : > { %v1885_v30 = vpop.xlane.xlu2 %1884 }
 0x452   : > { %v1931_v5 = vsub.f32 %v6649_v14, %v1885_v30  ;;  %v1919_v30 = vsel %vm1882_vm5, %v6737_v0, -inf }
 0x454   : > { %v1947_v19 = vmul.f32 1.442695, %v1931_v5  ;;  %v1925_v5 = vsel %vm1882_vm5, %v6751_v4, -inf }
 0x456   : > { %4759 = vpow2.f32 %v1947_v19 }
 0x458   : > { %v6758_v15 = vpop.f32.mrf.mxu2 }
 0x459   : > { %v1888_v52 = vpop.xlane.xlu0 %1887  ;;  %v1928_v19 = vsel %vm1882_vm5, %v6758_v15, -inf }
 0x45a   : > { %v1932_v32 = vsub.f32 %v6660_v9, %v1888_v52  ;;  %v7889_v52 = vld [vmem:[#allocation18_spill] sm:$0xff] }
 0x45c   : > { %v6763_v3 = vpop.eup %4759  ;;  %v1949_v2 = vmul.f32 1.442695, %v1932_v32 }
 0x45d   : > { %4341 = vmatmul.msk.bf16.vlgmr.msra.gmra.mxu2 %vm1735_vm1, %v6614_v59  ;;  %v1979_v7 = vsel %vm1882_vm5, %v6763_v3, 0.0 }
 0x45e   : > { %4761 = vpow2.f32 %v1949_v2  ;;  %1980 = vadd.xlane.f32.xlu1 %v1979_v7  ;;  %v1922_v7 = vsel %vm1882_vm5, %v6743_v63, -inf }
 0x460   : > { %v6769_v14 = vpop.f32.mrf.mxu2 }
 0x461   : > { %v1891_v29 = vpop.xlane.xlu1 %1890  ;;  %v2383_v17 = vsel %vm1882_vm5, %v6769_v14, -inf }
 0x462   : > { %v1933_v37 = vsub.f32 %v6669_v61, %v1891_v29 }
 0x464   : > { %v6772_v31 = vpop.eup %4761  ;;  %v1951_v8 = vmul.f32 1.442695, %v1933_v37 }
 0x465   : > { %v1982_v9 = vsel %vm1882_vm5, %v6772_v31, 0.0 }
 0x466   : > { %4763 = vpow2.f32 %v1951_v8  ;;  %1983 = vadd.xlane.f32.xlu2 %v1982_v9  ;;  %2384 = vmax.xlane.f32.xlu1 %v2383_v17  ;;  %v7892_v8 = vld [vmem:[#allocation19_spill] sm:$0xff] }
 0x468   : > { %v6778_v49 = vpop.f32.mrf.mxu2 }
 0x469   : > { %v1894_v59 = vpop.xlane.xlu2 %1893  ;;  %v2386_v26 = vsel %vm1882_vm5, %v6778_v49, -inf }
 0x46a   : > { %v1934_v58 = vsub.f32 %v6680_v60, %v1894_v59 }
 0x46c   : > { %v6781_v40 = vpop.eup %4763  ;;  %v1953_v61 = vmul.f32 1.442695, %v1934_v58 }
 0x46d   : > { %4342 = vmatmul.msk.bf16.gmra.mxu2 %vm1735_vm1, %v6600_v39  ;;  %v1985_v1 = vsel %vm1882_vm5, %v6781_v40, 0.0 }
 0x46e   : > { %4765 = vpow2.f32 %v1953_v61  ;;  %1986 = vadd.xlane.f32.xlu0 %v1985_v1  ;;  %2387 = vmax.xlane.f32.xlu2 %v2386_v26 }
 0x470   : > { %v6789_v10 = vpop.f32.mrf.mxu2 }
 0x471   : > { %v2389_v39 = vsel %vm1882_vm5, %v6789_v10, -inf  ;;  %v1897_v1 = vpop.xlane.xlu0 %1896 }
 0x474   : > { %v6791_v11 = vpop.eup %4765 }
 0x475   : > { %v1988_v60 = vsel %vm1882_vm5, %v6791_v11, 0.0 }
 0x476   : > { %1989 = vadd.xlane.f32.xlu1 %v1988_v60  ;;  %1920 = vmax.xlane.f32.xlu2 %v1919_v30 }
 0x477   : > { %2390 = vmax.xlane.f32.xlu0 %v2389_v39 }
 0x478   : > { %v6815_v32 = vpop.f32.mrf.mxu2 }
 0x479   : > { %v1900_v2 = vpop.xlane.xlu1 %1899  ;;  %v2392_v17 = vsel %vm1882_vm5, %v6815_v32, -inf }
 0x47d   : > { %4343 = vmatmul.msk.bf16.gmra.mxu2 %vm1735_vm1, %v6633_v6  ;;  %v7890_v6 = vld [vmem:[#allocation16_spill] sm:$0xff] }
 0x47f   : > { %1926 = vmax.xlane.f32.xlu0 %v1925_v5 }
 0x481   : > { %v1903_v37 = vpop.xlane.xlu1 %1902 }
 0x487   : > { %1929 = vmax.xlane.f32.xlu0 %v1928_v19 }
 0x489   : > { %v6845_v58 = vpop.xlane.xlu1 %1905 }
 0x48d   : > { %4344 = vmatmul.msk.bf16.gmra.mxu2 %vm1735_vm1, %v6715_v21  ;;  %v6821_v21 = vpop.f32.mrf.mxu2 }
 0x48e   : > { %3270 = vrot.lane.b32.xlu2 %v6554_v42, %s5256_s17  ;;  %v2395_v61 = vsel %vm1882_vm5, %v6821_v21, -inf }
 0x48f   : > { %3268 = vrot.lane.b32.xlu1 %v6561_v24, %s5256_s17  ;;  %v7891_v24 = vld [vmem:[#allocation17_spill] sm:$0xff] }
 0x495   : > { %v6825_v42 = vpop.f32.mrf.mxu2  ;;  %v6857_v5 = vpop.xlane.xlu0 %1908 }
 0x496   : > { %2597 = vrot.lane.b32.xlu2 %v7889_v52, %s5255_s14  ;;  %v2398_v39 = vsel %vm1882_vm5, %v6825_v42, -inf }
 0x49b   : > { %2601 = vrot.lane.b32.xlu0 %v7890_v6, %s5255_s14 }
 0x49d   : > { %v6833_v29 = vpop.f32.mrf.mxu2 }
 0x49e   : > { %2672 = vrot.lane.b32.xlu2 %v6399_v56, %s5255_s14 }
 0x4a3   : > { %3272 = vrot.lane.b32.xlu0 %v6584_v53, %s5256_s17  ;;  %v6835_v53 = vpop.xlane.xlu2 %1911 }
 0x4a5   : > { %v6839_v9 = vpop.f32.mrf.mxu2 }
 0x4ab   : > { %3077 = vrot.lane.b32.xlu0 %v7890_v6, %s5254_s11  ;;  %v6843_v59 = vpop.xlane.xlu2 %1914 }
 0x4ad   : > { %v6849_v26 = vpop.f32.mrf.mxu2 }
 0x4b3   : > { %3075 = vrot.lane.b32.xlu0 %v7891_v24, %s5254_s11  ;;  %v6851_v60 = vpop.xlane.xlu2 %1917 }
 0x4b9   : > { %1923 = vmax.xlane.f32.xlu1 %v1922_v7 }
 0x4bb   : > { %3073 = vrot.lane.b32.xlu0 %v7889_v52, %s5254_s11 }
 0x4c3   : > { %3071 = vrot.lane.b32.xlu0 %v7892_v8, %s5254_s11 }
 0x4c7   : > { %2393 = vmax.xlane.f32.xlu2 %v2392_v17  ;;  %v6859_v17 = vpop.f32.mrf.mxu2 }
 0x4cf   : > { %2396 = vmax.xlane.f32.xlu2 %v2395_v61  ;;  %v1935_v61 = vsub.f32 %v6687_v27, %v1897_v1 }
 0x4d1   : > { %v1981_v30 = vpop.xlane.xlu1 %1980 }
 0x4d2   : > { %2599 = vrot.lane.b32.xlu1 %v7891_v24, %s5255_s14  ;;  %4767 = vrcp.f32 %v1981_v30  ;;  %v1955_v24 = vmul.f32 1.442695, %v1935_v61 }
 0x4d7   : > { %2399 = vmax.xlane.f32.xlu2 %v2398_v39 }
 0x4d8   : > { %v4768_v7 = vpop.eup %4767 }
 0x4d9   : > { %v1984_v19 = vpop.xlane.xlu2 %1983  ;;  %v2043_v52 = vmul.f32 %v4768_v7, %v6763_v3  ;;  %v6866_v39 = vpop.xlane.xlu1 %2384 }
 0x4da   : > { %4769 = vrcp.f32 %v1984_v19  ;;  %2595 = vrot.lane.b32.xlu1 %v7892_v8, %s5255_s14  ;;  %v1936_v19 = vsub.f32 %v6694_v45, %v1900_v2  ;;  %v6871_v8 = vpop.f32.mrf.mxu2 }
 0x4db   : > { %v2059_v44 = vpack.c.bf16 %v2043_v52, %v2043_v52  ;;  %4771 = vpow2.f32 %v1955_v24 }
 0x4dc   : > { %v1957_v1 = vmul.f32 1.442695, %v1936_v19 }
 0x4dd   : > { %v2083_v27 = vunpack.c.l.b16 %v2059_v44  ;;  %v1937_v44 = vsub.f32 %v6699_v55, %v1903_v37  ;;  %v2825_v55 = vsel %vm1735_vm1, %v6741_v54, 0  ;;  %v2822_v54 = vsel %vm1735_vm1, %v6655_v35, 0 }
 0x4de   : > { %v1938_v35 = vsub.f32 %v6705_v25, %v6845_v58  ;;  %v1940_v58 = vsub.f32 %v6717_v23, %v6835_v53 }
 0x4e0   : > { %v4770_v30 = vpop.eup %4769 }
 0x4e1   : > { %v2044_v47 = vmul.f32 %v4770_v30, %v6772_v31  ;;  %v1987_v57 = vpop.xlane.xlu0 %1986  ;;  %v6873_v52 = vpop.eup %4771  ;;  %v2828_v31 = vsel %vm1735_vm1, %v6745_v34, 0  ;;  %v1959_v34 = vmul.f32 1.442695, %v1937_v44  ;;  %v2819_v44 = vsel %vm1735_vm1, %v6638_v28, 0 }
 0x4e2   : > { %2674 = vrot.lane.b32.xlu1 %v6382_v50, %s5255_s14  ;;  %4773 = vrcp.f32 %v1987_v57 }
 0x4e3   : > { %v2060_v36 = vpack.c.bf16 %v2044_v47, %v2044_v47  ;;  %v6884_v47 = vpop.f32.mrf.mxu2 }
 0x4e5   : > { %v2084_v3 = vunpack.c.l.b16 %v2060_v36  ;;  %v1991_v36 = vsel %vm1882_vm5, %v6873_v52, 0.0 }
 0x4e7   : > { %v2091_v7 = vpack.c.b16 %v2084_v3, %v2083_v27 }
 0x4e8   : > { %v4774_v30 = vpop.eup %4773 }
 0x4e9   : > { %4301 = vmatmul.msk.bf16.vlgmr.msra.gmra.mxu3 %vm1882_vm5, %v2091_v7  ;;  %v1990_v61 = vpop.xlane.xlu1 %1989  ;;  %v2045_v45 = vmul.f32 %v4774_v30, %v6781_v40 }
 0x4ea   : > { %2834 = vmatpush.bf16.xpose.msra.mxu3 %v2828_v31  ;;  %4775 = vrcp.f32 %v1990_v61  ;;  %2670 = vrot.lane.b32.xlu1 %v6441_v43, %s5255_s14  ;;  %v6891_v27 = vpop.xlane.xlu0 %2390 }
 0x4eb   : > { %4777 = vpow2.f32 %v1957_v1  ;;  %v2061_v2 = vpack.c.bf16 %v2045_v45, %v2045_v45  ;;  %v6899_v31 = vpop.f32.mrf.mxu2 }
 0x4ec   : > { %4779 = vpow2.f32 %v1959_v34  ;;  %v1961_v34 = vmul.f32 1.442695, %v1938_v35 }
 0x4ed   : > { %1992 = vadd.xlane.f32.xlu0 %v1991_v36  ;;  %v2085_v1 = vunpack.c.l.b16 %v2061_v2  ;;  %v1939_v2 = vsub.f32 %v6711_v38, %v6857_v5  ;;  %v1965_v5 = vmul.f32 1.442695, %v1940_v58 }
 0x4ee   : > { %4781 = vpow2.f32 %v1961_v34 }
 0x4ef   : > { %3148 = vrot.lane.b32.xlu2 %v6399_v56, %s5254_s11  ;;  %v1963_v28 = vmul.f32 1.442695, %v1939_v2 }
 0x4f0   : > { %v4776_v57 = vpop.eup %4775 }
 0x4f1   : > { %v6888_v24 = vpop.eup %4777  ;;  %v2046_v19 = vmul.f32 %v4776_v57, %v6791_v11  ;;  %4783 = vpow2.f32 %v1963_v28 }
 0x4f2   : > { %2835 = vmatpush.bf16.xpose.msra.mxu3 %v2825_v55  ;;  %2668 = vrot.lane.b32.xlu1 %v6285_v22, %s5255_s14  ;;  %v1994_v37 = vsel %vm1882_vm5, %v6888_v24, 0.0  ;;  %v6901_v11 = vpop.eup %4779  ;;  %v1927_v61 = vpop.xlane.xlu0 %1926  ;;  %4785 = vpow2.f32 %v1965_v5 }
 0x4f3   : > { %v2062_v40 = vpack.c.bf16 %v2046_v19, %v2046_v19  ;;  %v1997_v30 = vsel %vm1882_vm5, %v6901_v11, 0.0  ;;  %v6912_v36 = vpop.f32.mrf.mxu2  ;;  %v2388_v19 = vpop.xlane.xlu2 %2387 }
 0x4f4   : > { %v6924_v55 = vpop.eup %4781 }
 0x4f5   : > { %v2086_v3 = vunpack.c.l.b16 %v2062_v40  ;;  %1995 = vadd.xlane.f32.xlu0 %v1994_v37  ;;  %v2000_v25 = vsel %vm1882_vm5, %v6924_v55, 0.0 }
 0x4f7   : > { %v2092_v7 = vpack.c.b16 %v2086_v3, %v2085_v1  ;;  %v6934_v38 = vpop.eup %4783 }
 0x4f8   : > { %v2003_v3 = vsel %vm1882_vm5, %v6934_v38, 0.0  ;;  %v6949_v35 = vpop.eup %4785 }
 0x4f9   : > { %4302 = vmatmul.msk.bf16.gmra.mxu3 %vm1882_vm5, %v2092_v7  ;;  %v1945_v7 = vsub.f32 %v6751_v4, %v1927_v61  ;;  %v2006_v4 = vsel %vm1882_vm5, %v6949_v35, 0.0 }
 0x4fa   : > { %2836 = vmatpush.bf16.xpose.msra.mxu3 %v2822_v54  ;;  %3553 = vrot.lane.b32.xlu1 %v7890_v6, %s5256_s17  ;;  %v6914_v45 = vpop.xlane.xlu0 %1929  ;;  %v2401_v54 = vsel %vm1882_vm5, %v6833_v29, -inf }
 0x4fb   : > { %v6918_v57 = vpop.f32.mrf.mxu2  ;;  %v6932_v37 = vpop.xlane.xlu2 %1920  ;;  %v1975_v53 = vmul.f32 1.442695, %v1945_v7 }
 0x4fd   : > { %1998 = vadd.xlane.f32.xlu0 %v1997_v30  ;;  %4787 = vpow2.f32 %v1975_v53 }
 0x501   : > { %v6945_v23 = vpop.permute.xlu1 %3268 }
 0x502   : > { %2837 = vmatpush.bf16.xpose.msra.mxu3 %v2819_v44  ;;  %v2859_v44 = vsel %vm1882_vm5, %v6849_v26, -inf }
 0x503   : > { %v6926_v40 = vpop.f32.mrf.mxu2  ;;  %v6943_v30 = vpop.permute.xlu2 %3270 }
 0x504   : > { %v6958_v58 = vpop.eup %4787 }
 0x505   : > { %v2021_v7 = vsel %vm1882_vm5, %v6958_v58, 0.0 }
 0x50b   : > { %v6938_v1 = vpop.f32.mrf.mxu2  ;;  %v2598_v2 = vpop.permute.xlu2 %2597 }
 0x50d   : > { %v2602_v6 = vpop.permute.xlu0 %2601 }
 0x50e   : > { %2623 = vmatpush.bf16.msra.mxu0 %v2602_v6 }
 0x511   : > { %3150 = vrot.lane.b32.xlu0 %v6382_v50, %s5254_s11 }
 0x513   : > { %v6951_v34 = vpop.f32.mrf.mxu2 }
 0x515   : > { %v6960_v5 = vpop.permute.xlu0 %3272 }
 0x518   : > { %2001 = vadd.xlane.f32.xlu2 %v2000_v25  ;;  %v2868_v25 = vsel %vm1882_vm5, %v6884_v47, -inf }
 0x520   : > { %2004 = vadd.xlane.f32.xlu2 %v2003_v3  ;;  %v2432_v3 = vsub.f32 %v6778_v49, %v2388_v19  ;;  %v2404_v49 = vsel %vm1882_vm5, %v6839_v9, -inf  ;;  %v2877_v19 = vsel %vm1882_vm5, %v6918_v57, -inf }
 0x524   : > { %2402 = vmax.xlane.f32.xlu1 %v2401_v54  ;;  %v6965_v54 = vpop.f32.mrf.mxu2 }
 0x528   : > { %2860 = vmax.xlane.f32.xlu2 %v2859_v44  ;;  %v2673_v44 = vpop.permute.xlu2 %2672 }
 0x52c   : > { %v1924_v61 = vpop.xlane.xlu1 %1923  ;;  %2007 = vadd.xlane.f32.xlu1 %v2006_v4 }
 0x52d   : > { %v1944_v6 = vsub.f32 %v6743_v63, %v1924_v61  ;;  %v2449_v63 = vmul.f32 1.442695, %v2432_v3  ;;  %v1941_v61 = vsub.f32 %v6723_v46, %v6843_v59  ;;  %v2433_v3 = vsub.f32 %v6789_v10, %v6891_v27 }
 0x52e   : > { %v2874_v59 = vsel %vm1882_vm5, %v6912_v36, -inf }
 0x52f   : > { %v1973_v28 = vmul.f32 1.442695, %v1944_v6  ;;  %v3078_v6 = vpop.permute.xlu0 %3077 }
 0x530   : > { %2869 = vmax.xlane.f32.xlu2 %v2868_v25  ;;  %v6977_v25 = vpop.f32.mrf.mxu2 }
 0x531   : > { %4789 = vpow2.f32 %v1973_v28  ;;  %v1967_v28 = vmul.f32 1.442695, %v1941_v61 }
 0x532   : > { %4791 = vpow2.f32 %v2449_v63  ;;  %v2862_v63 = vsel %vm1882_vm5, %v6859_v17, -inf }
 0x533   : > { %4793 = vpow2.f32 %v1967_v28  ;;  %v3338_v28 = vsel %vm1882_vm5, %v6951_v34, -inf }
 0x534   : > { %2022 = vadd.xlane.f32.xlu1 %v2021_v7 }
 0x537   : > { %v6967_v53 = vpop.eup %4789 }
 0x538   : > { %v2018_v4 = vsel %vm1882_vm5, %v6967_v53, 0.0  ;;  %v6981_v7 = vpop.eup %4791  ;;  %v6993_v27 = vpop.f32.mrf.mxu2 }
 0x539   : > { %2019 = vadd.xlane.f32.xlu2 %v2018_v4  ;;  %v2451_v4 = vmul.f32 1.442695, %v2433_v3  ;;  %v2482_v61 = vsel %vm1882_vm5, %v6981_v7, 0.0  ;;  %v6991_v10 = vpop.eup %4793 }
 0x53a   : > { %v6983_v46 = vpop.xlane.xlu2 %2393 }
 0x53b   : > { %2405 = vmax.xlane.f32.xlu0 %v2404_v49  ;;  %v3076_v49 = vpop.permute.xlu0 %3075  ;;  %4795 = vpow2.f32 %v2451_v4 }
 0x53c   : > { %2878 = vmax.xlane.f32.xlu1 %v2877_v19 }
 0x541   : > { %2875 = vmax.xlane.f32.xlu2 %v2874_v59  ;;  %v1942_v59 = vsub.f32 %v6729_v62, %v6851_v60  ;;  %v1943_v60 = vsub.f32 %v6737_v0, %v6932_v37 }
 0x542   : > { %v6999_v3 = vpop.xlane.xlu2 %2396 }
 0x543   : > { %2863 = vmax.xlane.f32.xlu0 %v2862_v63  ;;  %v2009_v63 = vsel %vm1882_vm5, %v6991_v10, 0.0  ;;  %v1969_v56 = vmul.f32 1.442695, %v1942_v59  ;;  %v3074_v50 = vpop.permute.xlu0 %3073 }
 0x544   : > { %v2600_v19 = vpop.permute.xlu1 %2599  ;;  %2483 = vadd.xlane.f32.xlu1 %v2482_v61  ;;  %v3347_v61 = vsel %vm1882_vm5, %v6993_v27, -inf }
 0x545   : > { %2624 = vmatpush.bf16.msra.mxu0 %v2600_v19  ;;  %v7005_v19 = vpop.eup %4795  ;;  %4797 = vpow2.f32 %v1969_v56  ;;  %v3341_v56 = vsel %vm1882_vm5, %v6965_v54, -inf }
 0x546   : > { %v2485_v62 = vsel %vm1882_vm5, %v7005_v19, 0.0 }
 0x549   : > { %3339 = vmax.xlane.f32.xlu2 %v3338_v28  ;;  %2625 = vmatpush.bf16.msra.mxu0 %v2598_v2  ;;  %v2865_v2 = vsel %vm1882_vm5, %v6871_v8, -inf }
 0x54a   : > { %v2400_v28 = vpop.xlane.xlu2 %2399 }
 0x54b   : > { %2010 = vadd.xlane.f32.xlu0 %v2009_v63  ;;  %v7013_v59 = vpop.eup %4797 }
 0x54c   : > { %v2596_v4 = vpop.permute.xlu1 %2595  ;;  %3348 = vmax.xlane.f32.xlu1 %v3347_v61  ;;  %v1971_v61 = vmul.f32 1.442695, %v1943_v60  ;;  %v2012_v0 = vsel %vm1882_vm5, %v7013_v59, 0.0  ;;  %v3344_v60 = vsel %vm1882_vm5, %v6977_v25, -inf }
 0x54d   : > { %2626 = vmatpush.bf16.msra.mxu0 %v2596_v4  ;;  %v3072_v4 = vpop.permute.xlu0 %3071 }
 0x54e   : > { %4799 = vpow2.f32 %v1971_v61 }
 0x551   : > { %3099 = vmatpush.bf16.msrb.mxu0 %v3078_v6  ;;  %2486 = vadd.xlane.f32.xlu2 %v2485_v62  ;;  %v2436_v6 = vsub.f32 %v6825_v42, %v2400_v28  ;;  %v1946_v42 = vsub.f32 %v6758_v15, %v6914_v45 }
 0x553   : > { %2866 = vmax.xlane.f32.xlu0 %v2865_v2  ;;  %v2457_v37 = vmul.f32 1.442695, %v2436_v6  ;;  %v1977_v2 = vmul.f32 1.442695, %v1946_v42  ;;  %v2871_v6 = vsel %vm1882_vm5, %v6899_v31, -inf }
 0x554   : > { %v2675_v63 = vpop.permute.xlu1 %2674 }
 0x555   : > { %3100 = vmatpush.bf16.msrb.mxu0 %v3076_v49  ;;  %2696 = vmatpush.bf16.msrb.mxu1 %v2675_v63  ;;  %4801 = vpow2.f32 %v2457_v37 }
 0x559   : > { %3101 = vmatpush.bf16.msrb.mxu0 %v3074_v50  ;;  %2697 = vmatpush.bf16.msrb.mxu1 %v2673_v44  ;;  %v7020_v50 = vpop.eup %4799 }
 0x55a   : > { %3342 = vmax.xlane.f32.xlu2 %v3341_v56  ;;  %v2015_v44 = vsel %vm1882_vm5, %v7020_v50, 0.0  ;;  %v7035_v56 = vpop.f32.mrf.mxu2 }
 0x55b   : > { %2013 = vadd.xlane.f32.xlu0 %v2012_v0  ;;  %v7028_v63 = vpop.eup %4801 }
 0x55c   : > { %v2671_v49 = vpop.permute.xlu1 %2670  ;;  %v2494_v15 = vsel %vm1882_vm5, %v7028_v63, 0.0 }
 0x55d   : > { %3102 = vmatpush.bf16.msrb.mxu0 %v3072_v4  ;;  %2698 = vmatpush.bf16.msrb.mxu1 %v2671_v49 }
 0x560   : > { %v1993_v62 = vpop.xlane.xlu0 %1992 }
 0x561   : > { %4803 = vrcp.f32 %v1993_v62  ;;  %v3350_v62 = vsel %vm1882_vm5, %v7035_v56, -inf }
 0x562   : > { %3345 = vmax.xlane.f32.xlu2 %v3344_v60  ;;  %4805 = vpow2.f32 %v1977_v2  ;;  %v2431_v60 = vsub.f32 %v6769_v14, %v6866_v39  ;;  %v2434_v14 = vsub.f32 %v6815_v32, %v6983_v46 }
 0x563   : > { %2016 = vadd.xlane.f32.xlu0 %v2015_v44 }
 0x564   : > { %v2669_v28 = vpop.permute.xlu1 %2668 }
 0x565   : > { %2699 = vmatpush.bf16.msrb.mxu1 %v2669_v28 }
 0x567   : > { %v4804_v45 = vpop.eup %4803 }
 0x568   : > { %v1996_v61 = vpop.xlane.xlu0 %1995  ;;  %v2047_v4 = vmul.f32 %v4804_v45, %v6873_v52  ;;  %v7037_v0 = vpop.eup %4805 }
 0x569   : > { %4807 = vrcp.f32 %v1996_v61  ;;  %v2024_v2 = vsel %vm1882_vm5, %v7037_v0, 0.0  ;;  %v2447_v61 = vmul.f32 1.442695, %v2431_v60 }
 0x56a   : > { %2495 = vadd.xlane.f32.xlu2 %v2494_v15  ;;  %v2063_v49 = vpack.c.bf16 %v2047_v4, %v2047_v4 }
 0x56b   : > { %2872 = vmax.xlane.f32.xlu0 %v2871_v6  ;;  %4809 = vpow2.f32 %v2447_v61  ;;  %v7055_v6 = vpop.permute.xlu2 %3148 }
 0x56c   : > { %v2087_v28 = vunpack.c.l.b16 %v2063_v49  ;;  %v2435_v49 = vsub.f32 %v6821_v21, %v6999_v3 }
 0x56e   : > { %v2455_v32 = vmul.f32 1.442695, %v2435_v49 }
 0x56f   : > { %v4808_v37 = vpop.eup %4807 }
 0x570   : > { %v2048_v42 = vmul.f32 %v4808_v37, %v6888_v24  ;;  %v2880_v24 = vsel %vm1882_vm5, %v6926_v40, -inf  ;;  %v1999_v4 = vpop.xlane.xlu0 %1998  ;;  %v2453_v37 = vmul.f32 1.442695, %v2434_v14 }
 0x571   : > { %v7049_v45 = vpop.eup %4809  ;;  %4811 = vrcp.f32 %v1999_v4 }
 0x572   : > { %3351 = vmax.xlane.f32.xlu2 %v3350_v62  ;;  %v2064_v44 = vpack.c.bf16 %v2048_v42, %v2048_v42  ;;  %v2479_v39 = vsel %vm1882_vm5, %v7049_v45, 0.0  ;;  %4813 = vpow2.f32 %v2453_v37  ;;  %v3335_v42 = vsel %vm1882_vm5, %v6938_v1, -inf }
 0x573   : > { %2025 = vadd.xlane.f32.xlu0 %v2024_v2 }
 0x574   : > { %v2088_v52 = vunpack.c.l.b16 %v2064_v44  ;;  %v7063_v44 = vpop.permute.xlu1 %3553 }
 0x576   : > { %v2093_v15 = vpack.c.b16 %v2088_v52, %v2087_v28 }
 0x577   : > { %v4812_v60 = vpop.eup %4811 }
 0x578   : > { %4303 = vmatmul.msk.bf16.gmra.mxu3 %vm1882_vm5, %v2093_v15  ;;  %v7061_v46 = vpop.eup %4813  ;;  %v2049_v2 = vmul.f32 %v4812_v60, %v6901_v11 }
 0x579   : > { %v2488_v28 = vsel %vm1882_vm5, %v7061_v46, 0.0 }
 0x57a   : > { %v2065_v21 = vpack.c.bf16 %v2049_v2, %v2049_v2 }
 0x57b   : > { %2881 = vmax.xlane.f32.xlu0 %v2880_v24 }
 0x57c   : > { %v2089_v14 = vunpack.c.l.b16 %v2065_v21 }
 0x583   : > { %2480 = vadd.xlane.f32.xlu0 %v2479_v39 }
 0x58b   : > { %3336 = vmax.xlane.f32.xlu0 %v3335_v42  ;;  %v2002_v62 = vpop.xlane.xlu2 %2001 }
 0x58c   : > { %4815 = vrcp.f32 %v2002_v62 }
 0x58d   : > { %4817 = vpow2.f32 %v2455_v32  ;;  %v7076_v32 = vpop.f32.mrf.mxu2 }
 0x592   : > { %v4816_v52 = vpop.eup %4815 }
 0x593   : > { %v2050_v3 = vmul.f32 %v4816_v52, %v6924_v55  ;;  %2489 = vadd.xlane.f32.xlu0 %v2488_v28  ;;  %v2005_v61 = vpop.xlane.xlu2 %2004  ;;  %v7069_v24 = vpop.eup %4817  ;;  %v3353_v28 = vsel %vm1882_vm5, %v7076_v32, -inf }
 0x594   : > { %v2491_v42 = vsel %vm1882_vm5, %v7069_v24, 0.0  ;;  %4819 = vrcp.f32 %v2005_v61 }
 0x595   : > { %v2066_v15 = vpack.c.bf16 %v2050_v3, %v2050_v3 }
 0x597   : > { %v2403_v39 = vpop.xlane.xlu1 %2402  ;;  %v2090_v4 = vunpack.c.l.b16 %v2066_v15 }
 0x598   : > { %v2437_v37 = vsub.f32 %v6833_v29, %v2403_v39 }
 0x599   : > { %v2094_v49 = vpack.c.b16 %v2090_v4, %v2089_v14  ;;  %v3151_v14 = vpop.permute.xlu0 %3150 }
 0x59a   : > { %v2459_v11 = vmul.f32 1.442695, %v2437_v37  ;;  %v4820_v52 = vpop.eup %4819 }
 0x59b   : > { %2492 = vadd.xlane.f32.xlu0 %v2491_v42  ;;  %v2861_v62 = vpop.xlane.xlu2 %2860  ;;  %4304 = vmatmul.msk.bf16.gmra.mxu3 %vm1882_vm5, %v2094_v49  ;;  %v2051_v61 = vmul.f32 %v4820_v52, %v6934_v38 }
 0x59c   : > { %4821 = vpow2.f32 %v2459_v11  ;;  %v2907_v55 = vsub.f32 %v6849_v26, %v2861_v62  ;;  %v3304_v62 = vsel %vm1735_vm1, %v6739_v41, 0 }
 0x59d   : > { %v2067_v37 = vpack.c.bf16 %v2051_v61, %v2051_v61 }
 0x59e   : > { %v2923_v60 = vmul.f32 1.442695, %v2907_v55 }
 0x59f   : > { %v2008_v2 = vpop.xlane.xlu1 %2007 }
 0x5a0   : > { %4823 = vpow2.f32 %v2923_v60 }
 0x5a1   : > { %4825 = vrcp.f32 %v2008_v2 }
 0x5a2   : > { %v7078_v29 = vpop.eup %4821 }
 0x5a3   : > { %3354 = vmax.xlane.f32.xlu0 %v3353_v28  ;;  %v2870_v21 = vpop.xlane.xlu2 %2869  ;;  %v2497_v3 = vsel %vm1882_vm5, %v7078_v29, 0.0 }
 0x5a4   : > { %v2910_v26 = vsub.f32 %v6884_v47, %v2870_v21  ;;  %2498 = vadd.xlane.f32.xlu2 %v2497_v3  ;;  %v2168_v47 = vunpack.c.l.b16 %v2067_v37  ;;  %v7118_v37 = vpop.f32.mrf.mxu2 }
 0x5a6   : > { %v7086_v15 = vpop.eup %4823  ;;  %v2929_v39 = vmul.f32 1.442695, %v2910_v26 }
 0x5a7   : > { %v4826_v4 = vpop.eup %4825  ;;  %v2955_v42 = vsel %vm1882_vm5, %v7086_v15, 0.0 }
 0x5a8   : > { %v2052_v49 = vmul.f32 %v4826_v4, %v6949_v35  ;;  %4827 = vpow2.f32 %v2929_v39 }
 0x5aa   : > { %v2068_v11 = vpack.c.bf16 %v2052_v49, %v2052_v49  ;;  %v3356_v49 = vsel %vm1882_vm5, %v7118_v37, -inf }
 0x5ab   : > { %2956 = vadd.xlane.f32.xlu0 %v2955_v42  ;;  %4313 = vmatmul.msk.bf16.vlgmr.msrb.gmra.mxu3 %vm1735_vm1, %v6643_v12  ;;  %v3301_v12 = vsel %vm1735_vm1, %v6753_v51, 0  ;;  %v3298_v51 = vsel %vm1735_vm1, %v6664_v13, 0  ;;  %v3295_v13 = vsel %vm1735_vm1, %v6640_v33, 0 }
 0x5ac   : > { %v2169_v38 = vunpack.c.l.b16 %v2068_v11  ;;  %3310 = vmatpush.bf16.xpose.msrb.mxu3 %v3304_v62  ;;  %v7095_v55 = vpop.xlane.xlu2 %2019 }
 0x5ae   : > { %v2176_v60 = vpack.c.b16 %v2169_v38, %v2168_v47  ;;  %v2406_v2 = vpop.xlane.xlu0 %2405  ;;  %v7097_v35 = vpop.eup %4827 }
 0x5af   : > { %v2438_v52 = vsub.f32 %v6839_v9, %v2406_v2  ;;  %v2964_v41 = vsel %vm1882_vm5, %v7097_v35, 0.0 }
 0x5b0   : > { %4305 = vmatmul.msk.bf16.vlgmr.msra.gmra.mxu1 %vm1882_vm5, %v2176_v60 }
 0x5b1   : > { %v2461_v28 = vmul.f32 1.442695, %v2438_v52  ;;  %3172 = vmatpush.bf16.msra.mxu1 %v3151_v14 }
 0x5b3   : > { %4829 = vpow2.f32 %v2461_v28  ;;  %2965 = vadd.xlane.f32.xlu0 %v2964_v41 }
 0x5b4   : > { %3311 = vmatpush.bf16.xpose.msrb.mxu3 %v3301_v12  ;;  %v2876_v21 = vpop.xlane.xlu2 %2875 }
 0x5b5   : > { %3173 = vmatpush.bf16.msra.mxu1 %v7055_v6  ;;  %v2912_v26 = vsub.f32 %v6912_v36, %v2876_v21  ;;  %v7116_v6 = vpop.xlane.xlu1 %2022 }
 0x5b6   : > { %v2864_v3 = vpop.xlane.xlu0 %2863 }
 0x5b7   : > { %v2908_v61 = vsub.f32 %v6859_v17, %v2864_v3  ;;  %v2933_v17 = vmul.f32 1.442695, %v2912_v26 }
 0x5b9   : > { %v7107_v9 = vpop.eup %4829  ;;  %v2925_v14 = vmul.f32 1.442695, %v2908_v61 }
 0x5ba   : > { %v2500_v39 = vsel %vm1882_vm5, %v7107_v9, 0.0 }
 0x5bb   : > { %4831 = vpow2.f32 %v2925_v14  ;;  %2501 = vadd.xlane.f32.xlu1 %v2500_v39  ;;  %4314 = vmatmul.msk.bf16.gmra.mxu3 %vm1735_vm1, %v6675_v18 }
 0x5bc   : > { %3312 = vmatpush.bf16.xpose.msrb.mxu3 %v3298_v51  ;;  %4833 = vpow2.f32 %v2933_v17  ;;  %v3340_v52 = vpop.xlane.xlu2 %3339 }
 0x5bd   : > { %v2879_v18 = vpop.xlane.xlu1 %2878 }
 0x5be   : > { %v2011_v4 = vpop.xlane.xlu0 %2010  ;;  %v2913_v38 = vsub.f32 %v6918_v57, %v2879_v18 }
 0x5bf   : > { %4835 = vrcp.f32 %v2011_v4 }
 0x5c0   : > { %v2935_v33 = vmul.f32 1.442695, %v2913_v38 }
 0x5c1   : > { %v7120_v36 = vpop.eup %4831 }
 0x5c2   : > { %v2958_v11 = vsel %vm1882_vm5, %v7120_v36, 0.0  ;;  %v7128_v62 = vpop.eup %4833 }
 0x5c3   : > { %3357 = vmax.xlane.f32.xlu1 %v3356_v49  ;;  %2959 = vadd.xlane.f32.xlu2 %v2958_v11  ;;  %v2970_v2 = vsel %vm1882_vm5, %v7128_v62, 0.0 }
 0x5c4   : > { %3313 = vmatpush.bf16.xpose.msrb.mxu3 %v3295_v13 }
 0x5c5   : > { %v4836_v41 = vpop.eup %4835 }
 0x5c6   : > { %v2867_v42 = vpop.xlane.xlu0 %2866  ;;  %v2053_v57 = vmul.f32 %v4836_v41, %v6991_v10 }
 0x5c7   : > { %v2909_v47 = vsub.f32 %v6871_v8, %v2867_v42  ;;  %v3384_v8 = vsub.f32 %v6951_v34, %v3340_v52 }
 0x5c8   : > { %v2069_v26 = vpack.c.bf16 %v2053_v57, %v2053_v57 }
 0x5c9   : > { %v2927_v60 = vmul.f32 1.442695, %v2909_v47  ;;  %v3401_v61 = vmul.f32 1.442695, %v3384_v8  ;;  %v2484_v8 = vpop.xlane.xlu1 %2483 }
 0x5ca   : > { %v2170_v34 = vunpack.c.l.b16 %v2069_v26 }
 0x5cb   : > { %4837 = vpow2.f32 %v2927_v60  ;;  %2971 = vadd.xlane.f32.xlu1 %v2970_v2  ;;  %4315 = vmatmul.msk.bf16.gmra.mxu3 %vm1735_vm1, %v6731_v48  ;;  %v7158_v60 = vpop.f32.mrf.mxu3 }
 0x5ce   : > { %v2014_v28 = vpop.xlane.xlu0 %2013 }
 0x5cf   : > { %4839 = vrcp.f32 %v2014_v28 }
 0x5d0   : > { %4841 = vpow2.f32 %v2935_v33 }
 0x5d1   : > { %v7136_v12 = vpop.eup %4837 }
 0x5d2   : > { %v2961_v21 = vsel %vm1882_vm5, %v7136_v12, 0.0 }
 0x5d3   : > { %2962 = vadd.xlane.f32.xlu2 %v2961_v21 }
 0x5d5   : > { %v4840_v3 = vpop.eup %4839 }
 0x5d6   : > { %v2054_v48 = vmul.f32 %v4840_v3, %v7013_v59  ;;  %v2017_v14 = vpop.xlane.xlu0 %2016  ;;  %v7143_v39 = vpop.eup %4841 }
 0x5d7   : > { %4843 = vrcp.f32 %v2017_v14  ;;  %v2973_v10 = vsel %vm1882_vm5, %v7143_v39, 0.0 }
 0x5d8   : > { %4845 = vrcp.f32 %v7095_v55  ;;  %v2070_v51 = vpack.c.bf16 %v2054_v48, %v2054_v48 }
 0x5d9   : > { %4847 = vpow2.f32 %v3401_v61  ;;  %v7169_v61 = vpop.f32.mrf.mxu3 }
 0x5da   : > { %v2171_v17 = vunpack.c.l.b16 %v2070_v51 }
 0x5db   : > { %2974 = vadd.xlane.f32.xlu2 %v2973_v10  ;;  %4316 = vmatmul.msk.bf16.gmra.mxu3 %vm1735_vm1, %v6747_v16 }
 0x5dc   : > { %v2177_v4 = vpack.c.b16 %v2171_v17, %v2170_v34 }
 0x5dd   : > { %v4844_v49 = vpop.eup %4843 }
 0x5de   : > { %v4846_v59 = vpop.eup %4845  ;;  %4306 = vmatmul.msk.bf16.gmra.mxu1 %vm1882_vm5, %v2177_v4  ;;  %v2873_v11 = vpop.xlane.xlu0 %2872  ;;  %v2055_v18 = vmul.f32 %v4844_v49, %v7020_v50 }
 0x5df   : > { %v7151_v13 = vpop.eup %4847  ;;  %v2911_v55 = vsub.f32 %v6899_v31, %v2873_v11  ;;  %v2056_v47 = vmul.f32 %v4846_v59, %v6967_v53 }
 0x5e0   : > { %v3434_v38 = vsel %vm1882_vm5, %v7151_v13, 0.0  ;;  %v2071_v16 = vpack.c.bf16 %v2055_v18, %v2055_v18 }
 0x5e1   : > { %v2931_v42 = vmul.f32 1.442695, %v2911_v55  ;;  %v2072_v2 = vpack.c.bf16 %v2056_v47, %v2056_v47  ;;  %v7175_v49 = vpop.f32.mrf.mxu3 }
 0x5e2   : > { %v2172_v52 = vunpack.c.l.b16 %v2071_v16 }
 0x5e3   : > { %4849 = vpow2.f32 %v2931_v42  ;;  %3435 = vadd.xlane.f32.xlu2 %v3434_v38  ;;  %v2173_v31 = vunpack.c.l.b16 %v2072_v2 }
 0x5e5   : > { %v2178_v50 = vpack.c.b16 %v2173_v31, %v2172_v52 }
 0x5e6   : > { %v2026_v33 = vpop.xlane.xlu0 %2025 }
 0x5e7   : > { %4851 = vrcp.f32 %v2026_v33 }
 0x5e8   : > { %4853 = vrcp.f32 %v7116_v6  ;;  %v2487_v6 = vpop.xlane.xlu2 %2486 }
 0x5e9   : > { %v7160_v28 = vpop.eup %4849  ;;  %4855 = vrcp.f32 %v2484_v8  ;;  %v7187_v31 = vpop.f32.mrf.mxu3 }
 0x5ea   : > { %v2967_v53 = vsel %vm1882_vm5, %v7160_v28, 0.0 }
 0x5eb   : > { %2968 = vadd.xlane.f32.xlu0 %v2967_v53  ;;  %4329 = vmatmul.msk.bf16.vlgmr.msra.gmra.mxu3 %vm1735_vm1, %v6725_v20 }
 0x5ed   : > { %v4852_v41 = vpop.eup %4851 }
 0x5ee   : > { %4307 = vmatmul.msk.bf16.gmra.mxu1 %vm1882_vm5, %v2178_v50  ;;  %v2882_v57 = vpop.xlane.xlu0 %2881  ;;  %v4854_v21 = vpop.eup %4853  ;;  %v2058_v26 = vmul.f32 %v4852_v41, %v7037_v0 }
 0x5ef   : > { %v2914_v3 = vsub.f32 %v6926_v40, %v2882_v57  ;;  %v2057_v14 = vmul.f32 %v4854_v21, %v6958_v58  ;;  %v4856_v17 = vpop.eup %4855  ;;  %v7893_v58 = vld [vmem:[#allocation20_spill] sm:$0xff]  ;;  %v7894_v21 = vld [vmem:[#allocation25_spill] sm:$0xff] }
 0x5f0   : > { %v2074_v20 = vpack.c.bf16 %v2058_v26, %v2058_v26  ;;  %v2544_v59 = vmul.f32 %v4856_v17, %v6981_v7  ;;  %v7178_v11 = vpop.xlane.xlu2 %3342 }
 0x5f1   : > { %v2937_v48 = vmul.f32 1.442695, %v2914_v3  ;;  %v2073_v51 = vpack.c.bf16 %v2057_v14, %v2057_v14 }
 0x5f2   : > { %v2175_v10 = vunpack.c.l.b16 %v2074_v20  ;;  %v2560_v42 = vpack.c.bf16 %v2544_v59, %v2544_v59 }
 0x5f3   : > { %4857 = vpow2.f32 %v2937_v48  ;;  %v2174_v40 = vunpack.c.l.b16 %v2073_v51 }
 0x5f4   : > { %v2584_v33 = vunpack.c.l.b16 %v2560_v42 }
 0x5f5   : > { %v2179_v55 = vpack.c.b16 %v2175_v10, %v2174_v40 }
 0x5f6   : > { %v2481_v34 = vpop.xlane.xlu0 %2480 }
 0x5f7   : > { %4859 = vrcp.f32 %v2481_v34 }
 0x5f8   : > { %4861 = vrcp.f32 %v2487_v6  ;;  %v7189_v53 = vpop.xlane.xlu2 %3345 }
 0x5f9   : > { %v7173_v4 = vpop.eup %4857 }
 0x5fa   : > { %v2976_v0 = vsel %vm1882_vm5, %v7173_v4, 0.0 }
 0x5fb   : > { %2977 = vadd.xlane.f32.xlu0 %v2976_v0  ;;  %4330 = vmatmul.msk.bf16.gmra.mxu3 %vm1735_vm1, %v7893_v58  ;;  %v7200_v3 = vpop.f32.mrf.mxu3  ;;  %v7895_v58 = vld [vmem:[#allocation21_spill] sm:$0xff] }
 0x5fd   : > { %v4860_v18 = vpop.eup %4859 }
 0x5fe   : > { %v2543_v47 = vmul.f32 %v4860_v18, %v7049_v45  ;;  %4308 = vmatmul.msk.bf16.gmra.mxu1 %vm1882_vm5, %v2179_v55  ;;  %v3337_v38 = vpop.xlane.xlu0 %3336  ;;  %v4862_v45 = vpop.eup %4861 }
 0x5ff   : > { %v3383_v16 = vsub.f32 %v6938_v1, %v3337_v38  ;;  %v2545_v1 = vmul.f32 %v4862_v45, %v7005_v19 }
 0x600   : > { %v2559_v7 = vpack.c.bf16 %v2543_v47, %v2543_v47  ;;  %v2496_v48 = vpop.xlane.xlu2 %2495 }
 0x601   : > { %v3399_v2 = vmul.f32 1.442695, %v3383_v16  ;;  %v2561_v26 = vpack.c.bf16 %v2545_v1, %v2545_v1 }
 0x602   : > { %v2583_v52 = vunpack.c.l.b16 %v2559_v7  ;;  %v7214_v7 = vpop.xlane.xlu1 %3348 }
 0x603   : > { %4863 = vpow2.f32 %v3399_v2  ;;  %v2585_v51 = vunpack.c.l.b16 %v2561_v26  ;;  %v7203_v10 = vpop.f32.mrf.mxu3 }
 0x604   : > { %v2591_v50 = vpack.c.b16 %v2584_v33, %v2583_v52 }
 0x606   : > { %4317 = vmatmul.msk.bf16.vlgmr.msra.gmra.mxu0 %vm1882_vm5, %v2591_v50  ;;  %v2490_v41 = vpop.xlane.xlu0 %2489 }
 0x607   : > { %3575 = vmatpush.bf16.msra.mxu0 %v7063_v44  ;;  %4865 = vrcp.f32 %v2490_v41 }
 0x608   : > { %v7210_v18 = vpop.xlane.xlu2 %3351 }
 0x609   : > { %v7193_v8 = vpop.eup %4863 }
 0x60a   : > { %v3431_v57 = vsel %vm1882_vm5, %v7193_v8, 0.0 }
 0x60b   : > { %3432 = vadd.xlane.f32.xlu1 %v3431_v57  ;;  %4331 = vmatmul.msk.bf16.gmra.mxu3 %vm1735_vm1, %v7894_v21 }
 0x60d   : > { %v4866_v6 = vpop.eup %4865 }
 0x60e   : > { %v2546_v14 = vmul.f32 %v4866_v6, %v7061_v46  ;;  %v2493_v44 = vpop.xlane.xlu0 %2492 }
 0x60f   : > { %4867 = vrcp.f32 %v2493_v44 }
 0x610   : > { %v2562_v20 = vpack.c.bf16 %v2546_v14, %v2546_v14  ;;  %4869 = vrcp.f32 %v2496_v48 }
 0x612   : > { %v2586_v19 = vunpack.c.l.b16 %v2562_v20 }
 0x614   : > { %v2592_v34 = vpack.c.b16 %v2586_v19, %v2585_v51 }
 0x615   : > { %v4868_v17 = vpop.eup %4867 }
 0x616   : > { %4318 = vmatmul.msk.bf16.gmra.mxu0 %vm1882_vm5, %v2592_v34  ;;  %v4870_v40 = vpop.eup %4869  ;;  %v2547_v59 = vmul.f32 %v4868_v17, %v7069_v24  ;;  %v7221_v33 = vpop.xlane.xlu0 %3354 }
 0x617   : > { %v2548_v0 = vmul.f32 %v4870_v40, %v7028_v63  ;;  %v2499_v2 = vpop.xlane.xlu2 %2498  ;;  %v7897_v63 = vld [vmem:[#allocation22_spill] sm:$0xff] }
 0x618   : > { %v2563_v46 = vpack.c.bf16 %v2547_v59, %v2547_v59  ;;  %4871 = vrcp.f32 %v2499_v2 }
 0x619   : > { %v2564_v55 = vpack.c.bf16 %v2548_v0, %v2548_v0 }
 0x61a   : > { %v2587_v47 = vunpack.c.l.b16 %v2563_v46  ;;  %v7898_v46 = vld [vmem:[#allocation17_spill] sm:$0xff] }
 0x61b   : > { %4332 = vmatmul.msk.bf16.gmra.mxu3 %vm1735_vm1, %v7895_v58  ;;  %v2588_v38 = vunpack.c.l.b16 %v2564_v55 }
 0x61d   : > { %v2593_v16 = vpack.c.b16 %v2588_v38, %v2587_v47 }
 0x61e   : > { %v7212_v42 = vpop.f32.mrf.mxu3  ;;  %v4872_v41 = vpop.eup %4871 }
 0x61f   : > { %7896 = vst [vmem:[#allocation16_spill] sm:$0xff] %v7212_v42  ;;  %v2549_v1 = vmul.f32 %v4872_v41, %v7078_v29  ;;  %v2957_v6 = vpop.xlane.xlu0 %2956 }
 0x621   : > { %v2565_v21 = vpack.c.bf16 %v2549_v1, %v2549_v1 }
 0x623   : > { %v2589_v51 = vunpack.c.l.b16 %v2565_v21 }
 0x626   : > { %4319 = vmatmul.msk.bf16.gmra.mxu0 %vm1882_vm5, %v2593_v16  ;;  %v7217_v24 = vpop.f32.mrf.mxu3 }
 0x627   : > { %v2966_v55 = vpop.xlane.xlu0 %2965 }
 0x62b   : > { %4345 = vmatmul.msk.bf16.vlgmr.msrb.gmra.mxu3 %vm1735_vm1, %v7897_v63 }
 0x62e   : > { %v2502_v52 = vpop.xlane.xlu1 %2501  ;;  %v7223_v50 = vpop.f32.mrf.mxu3 }
 0x62f   : > { %4873 = vrcp.f32 %v2502_v52  ;;  %v2407_v45 = vsel %vm1882_vm5, %v7223_v50, -inf }
 0x630   : > { %2408 = vmax.xlane.f32.xlu0 %v2407_v45 }
 0x635   : > { %v4874_v57 = vpop.eup %4873 }
 0x636   : > { %v2550_v26 = vmul.f32 %v4874_v57, %v7107_v9  ;;  %v2960_v48 = vpop.xlane.xlu2 %2959  ;;  %v7229_v14 = vpop.f32.mrf.mxu3 }
 0x637   : > { %4875 = vrcp.f32 %v2960_v48  ;;  %v2410_v20 = vsel %vm1882_vm5, %v7229_v14, -inf }
 0x638   : > { %v2566_v44 = vpack.c.bf16 %v2550_v26, %v2550_v26  ;;  %4877 = vrcp.f32 %v2957_v6  ;;  %2411 = vmax.xlane.f32.xlu1 %v2410_v20 }
 0x63a   : > { %v2590_v19 = vunpack.c.l.b16 %v2566_v44 }
 0x63b   : > { %4346 = vmatmul.msk.bf16.gmra.mxu3 %vm1735_vm1, %v6945_v23 }
 0x63c   : > { %v2594_v29 = vpack.c.b16 %v2590_v19, %v2589_v51 }
 0x63d   : > { %v4876_v34 = vpop.eup %4875 }
 0x63e   : > { %4320 = vmatmul.msk.bf16.gmra.mxu0 %vm1882_vm5, %v2594_v29  ;;  %v4878_v9 = vpop.eup %4877  ;;  %v7236_v17 = vpop.f32.mrf.mxu3  ;;  %v3020_v40 = vmul.f32 %v4876_v34, %v7120_v36 }
 0x63f   : > { %v2413_v59 = vsel %vm1882_vm5, %v7236_v17, -inf  ;;  %v3019_v0 = vmul.f32 %v4878_v9, %v7086_v15  ;;  %v7250_v15 = vpop.xlane.xlu1 %3357 }
 0x640   : > { %2414 = vmax.xlane.f32.xlu1 %v2413_v59  ;;  %v3036_v58 = vpack.c.bf16 %v3020_v40, %v3020_v40 }
 0x641   : > { %v3035_v23 = vpack.c.bf16 %v3019_v0, %v3019_v0 }
 0x642   : > { %v3060_v16 = vunpack.c.l.b16 %v3036_v58 }
 0x643   : > { %v3059_v2 = vunpack.c.l.b16 %v3035_v23 }
 0x644   : > { %3551 = vrot.lane.b32.xlu0 %v7898_v46, %s5256_s17 }
 0x645   : > { %v3067_v63 = vpack.c.b16 %v3060_v16, %v3059_v2 }
 0x646   : > { %v2963_v47 = vpop.xlane.xlu2 %2962  ;;  %v7244_v38 = vpop.f32.mrf.mxu3 }
 0x647   : > { %4879 = vrcp.f32 %v2963_v47  ;;  %v2416_v36 = vsel %vm1882_vm5, %v7244_v38, -inf  ;;  %v2972_v26 = vpop.xlane.xlu1 %2971 }
 0x648   : > { %4881 = vrcp.f32 %v2966_v55  ;;  %2417 = vmax.xlane.f32.xlu2 %v2416_v36 }
 0x649   : > { %4883 = vrcp.f32 %v2972_v26 }
 0x64b   : > { %4347 = vmatmul.msk.bf16.gmra.mxu3 %vm1735_vm1, %v6943_v30 }
 0x64d   : > { %v4880_v52 = vpop.eup %4879 }
 0x64e   : > { %4333 = vmatmul.msk.bf16.vlgmr.msrb.gmra.mxu0 %vm1882_vm5, %v3067_v63  ;;  %v4882_v41 = vpop.eup %4881  ;;  %v7253_v45 = vpop.f32.mrf.mxu3  ;;  %v3021_v1 = vmul.f32 %v4880_v52, %v7136_v12 }
 0x64f   : > { %v3022_v57 = vmul.f32 %v4882_v41, %v7097_v35  ;;  %v4884_v35 = vpop.eup %4883  ;;  %v2975_v40 = vpop.xlane.xlu2 %2974  ;;  %v2419_v47 = vsel %vm1882_vm5, %v7253_v45, -inf }
 0x650   : > { %v3037_v21 = vpack.c.bf16 %v3021_v1, %v3021_v1  ;;  %v3024_v29 = vmul.f32 %v4884_v35, %v7128_v62 }
 0x651   : > { %v3038_v6 = vpack.c.bf16 %v3022_v57, %v3022_v57 }
 0x652   : > { %v3061_v44 = vunpack.c.l.b16 %v3037_v21  ;;  %v3040_v9 = vpack.c.bf16 %v3024_v29, %v3024_v29  ;;  %v3387_v29 = vsub.f32 %v6993_v27, %v7214_v7 }
 0x653   : > { %v3062_v20 = vunpack.c.l.b16 %v3038_v6 }
 0x654   : > { %v3064_v46 = vunpack.c.l.b16 %v3040_v9 }
 0x655   : > { %v3068_v51 = vpack.c.b16 %v3062_v20, %v3061_v44 }
 0x656   : > { %v7257_v48 = vpop.f32.mrf.mxu3 }
 0x657   : > { %v2422_v30 = vsel %vm1882_vm5, %v7257_v48, -inf }
 0x658   : > { %2423 = vmax.xlane.f32.xlu2 %v2422_v30 }
 0x65b   : > { %4348 = vmatmul.msk.bf16.gmra.mxu3 %vm1735_vm1, %v6960_v5 }
 0x65e   : > { %4334 = vmatmul.msk.bf16.gmra.mxu0 %vm1882_vm5, %v3068_v51  ;;  %v2969_v12 = vpop.xlane.xlu0 %2968  ;;  %v7264_v19 = vpop.f32.mrf.mxu3 }
 0x65f   : > { %4885 = vrcp.f32 %v2969_v12  ;;  %v2425_v52 = vsel %vm1882_vm5, %v7264_v19, -inf }
 0x660   : > { %4887 = vrcp.f32 %v2975_v40 }
 0x665   : > { %v4886_v34 = vpop.eup %4885 }
 0x666   : > { %v3023_v59 = vmul.f32 %v4886_v34, %v7160_v28  ;;  %v7268_v0 = vpop.f32.mrf.mxu3  ;;  %v4888_v16 = vpop.eup %4887 }
 0x667   : > { %v2428_v5 = vsel %vm1882_vm5, %v7268_v0, -inf  ;;  %v3025_v2 = vmul.f32 %v4888_v16, %v7143_v39 }
 0x668   : > { %v3039_v58 = vpack.c.bf16 %v3023_v59, %v3023_v59  ;;  %2429 = vmax.xlane.f32.xlu2 %v2428_v5 }
 0x669   : > { %v3041_v41 = vpack.c.bf16 %v3025_v2, %v3025_v2 }
 0x66a   : > { %v3063_v23 = vunpack.c.l.b16 %v3039_v58 }
 0x66b   : > { %v3065_v26 = vunpack.c.l.b16 %v3041_v41 }
 0x66c   : > { %v3069_v55 = vpack.c.b16 %v3064_v46, %v3063_v23 }
 0x66e   : > { %4335 = vmatmul.msk.bf16.gmra.mxu0 %vm1882_vm5, %v3069_v55  ;;  %v2978_v62 = vpop.xlane.xlu0 %2977  ;;  %2420 = vmax.xlane.f32.xlu0 %v2419_v47  ;;  %v7275_v28 = vpop.f32.mrf.mxu3 }
 0x66f   : > { %4889 = vrcp.f32 %v2978_v62  ;;  %v2883_v36 = vsel %vm1882_vm5, %v7275_v28, -inf }
 0x670   : > { %2884 = vmax.xlane.f32.xlu2 %v2883_v36 }
 0x675   : > { %v4890_v63 = vpop.eup %4889 }
 0x676   : > { %v3026_v1 = vmul.f32 %v4890_v63, %v7173_v4  ;;  %2426 = vmax.xlane.f32.xlu0 %v2425_v52  ;;  %v7283_v57 = vpop.f32.mrf.mxu3  ;;  %v3386_v63 = vsub.f32 %v6977_v25, %v7189_v53 }
 0x677   : > { %v2886_v6 = vsel %vm1882_vm5, %v7283_v57, -inf }
 0x678   : > { %v3042_v21 = vpack.c.bf16 %v3026_v1, %v3026_v1  ;;  %2887 = vmax.xlane.f32.xlu1 %v2886_v6  ;;  %v3405_v1 = vmul.f32 1.442695, %v3386_v63  ;;  %v7899_v63 = vld [vmem:[#allocation18_spill] sm:$0xff] }
 0x67a   : > { %v3066_v44 = vunpack.c.l.b16 %v3042_v21 }
 0x67c   : > { %v3070_v30 = vpack.c.b16 %v3066_v44, %v3065_v26 }
 0x67e   : > { %4336 = vmatmul.msk.bf16.gmra.mxu0 %vm1882_vm5, %v3070_v30  ;;  %v7288_v39 = vpop.f32.mrf.mxu3  ;;  %v7322_v16 = vpop.xlane.xlu1 %3432 }
 0x67f   : > { %v2889_v20 = vsel %vm1882_vm5, %v7288_v39, -inf }
 0x680   : > { %2890 = vmax.xlane.f32.xlu1 %v2889_v20 }
 0x683   : > { %v7292_v4 = vpop.f32.mrf.mxu0 }
 0x686   : > { %v7294_v51 = vpop.f32.mrf.mxu3 }
 0x687   : > { %v2892_v12 = vsel %vm1882_vm5, %v7294_v51, -inf }
 0x688   : > { %2893 = vmax.xlane.f32.xlu2 %v2892_v12 }
 0x68b   : > { %v7298_v35 = vpop.f32.mrf.mxu0 }
 0x68e   : > { %v7302_v34 = vpop.f32.mrf.mxu3 }
 0x68f   : > { %v2895_v9 = vsel %vm1882_vm5, %v7302_v34, -inf }
 0x690   : > { %2896 = vmax.xlane.f32.xlu2 %v2895_v9 }
 0x693   : > { %v7306_v40 = vpop.f32.mrf.mxu0 }
 0x696   : > { %v7308_v59 = vpop.f32.mrf.mxu3 }
 0x697   : > { %v2898_v58 = vsel %vm1882_vm5, %v7308_v59, -inf }
 0x698   : > { %2899 = vmax.xlane.f32.xlu0 %v2898_v58 }
 0x69b   : > { %v7312_v5 = vpop.f32.mrf.mxu0 }
 0x69e   : > { %v7316_v23 = vpop.f32.mrf.mxu3 }
 0x69f   : > { %v2901_v55 = vsel %vm1882_vm5, %v7316_v23, -inf }
 0x6a0   : > { %2902 = vmax.xlane.f32.xlu1 %v2901_v55 }
 0x6a3   : > { %v7320_v47 = vpop.f32.mrf.mxu0  ;;  %v2409_v62 = vpop.xlane.xlu0 %2408 }
 0x6a4   : > { %v2439_v36 = vsub.f32 %v7223_v50, %v2409_v62 }
 0x6a6   : > { %v2463_v2 = vmul.f32 1.442695, %v2439_v36  ;;  %v7327_v52 = vpop.f32.mrf.mxu3 }
 0x6a7   : > { %v2904_v41 = vsel %vm1882_vm5, %v7327_v52, -inf }
 0x6a8   : > { %4891 = vpow2.f32 %v2463_v2  ;;  %2905 = vmax.xlane.f32.xlu2 %v2904_v41  ;;  %v7900_v41 = vld [vmem:[#allocation19_spill] sm:$0xff] }
 0x6a9   : > { %4893 = vpow2.f32 %v3405_v1  ;;  %v7366_v1 = vpop.xlane.xlu2 %3435 }
 0x6ab   : > { %v7331_v21 = vpop.f32.mrf.mxu0  ;;  %v2412_v26 = vpop.xlane.xlu1 %2411 }
 0x6ac   : > { %v2440_v50 = vsub.f32 %v7229_v14, %v2412_v26 }
 0x6ae   : > { %v7336_v44 = vpop.eup %4891  ;;  %v2465_v25 = vmul.f32 1.442695, %v2440_v50  ;;  %v7338_v53 = vpop.f32.mrf.mxu3 }
 0x6af   : > { %v2503_v30 = vsel %vm1882_vm5, %v7336_v44, 0.0  ;;  %v3359_v20 = vsel %vm1882_vm5, %v7338_v53, -inf  ;;  %v7344_v12 = vpop.eup %4893 }
 0x6b0   : > { %4895 = vpow2.f32 %v2465_v25  ;;  %3360 = vmax.xlane.f32.xlu0 %v3359_v20  ;;  %2504 = vadd.xlane.f32.xlu2 %v2503_v30  ;;  %v3440_v14 = vsel %vm1882_vm5, %v7344_v12, 0.0  ;;  %v3385_v20 = vsub.f32 %v6965_v54, %v7178_v11 }
 0x6b2   : > { %v3403_v2 = vmul.f32 1.442695, %v3385_v20  ;;  %v3407_v20 = vmul.f32 1.442695, %v3387_v29 }
 0x6b6   : > { %v3552_v9 = vpop.permute.xlu0 %3551  ;;  %v7346_v58 = vpop.eup %4895 }
 0x6b7   : > { %3576 = vmatpush.bf16.msra.mxu0 %v3552_v9  ;;  %v2506_v55 = vsel %vm1882_vm5, %v7346_v58, 0.0  ;;  %v7368_v50 = vpop.f32.mrf.mxu3 }
 0x6b8   : > { %3441 = vadd.xlane.f32.xlu0 %v3440_v14  ;;  %2507 = vadd.xlane.f32.xlu1 %v2506_v55 }
 0x6bb   : > { %v7352_v62 = vpop.f32.mrf.mxu0  ;;  %v2418_v25 = vpop.xlane.xlu2 %2417 }
 0x6bf   : > { %v7373_v14 = vpop.f32.mrf.mxu3 }
 0x6c3   : > { %v7354_v36 = vpop.f32.mrf.mxu0 }
 0x6c7   : > { %v7382_v11 = vpop.f32.mrf.mxu3 }
 0x6c8   : > { %3549 = vrot.lane.b32.xlu2 %v7899_v63, %s5256_s17  ;;  %v2415_v63 = vpop.xlane.xlu1 %2414  ;;  %v3368_v7 = vsel %vm1882_vm5, %v7382_v11, -inf }
 0x6cb   : > { %v2424_v6 = vpop.xlane.xlu2 %2423 }
 0x6cf   : > { %v7394_v29 = vpop.f32.mrf.mxu3 }
 0x6d0   : > { %3144 = vrot.lane.b32.xlu2 %v6285_v22, %s5254_s11 }
 0x6d1   : > { %3146 = vrot.lane.b32.xlu1 %v6441_v43, %s5254_s11 }
 0x6d8   : > { %3547 = vrot.lane.b32.xlu2 %v7900_v41, %s5256_s17  ;;  %v2441_v41 = vsub.f32 %v7236_v17, %v2415_v63  ;;  %v2442_v17 = vsub.f32 %v7244_v38, %v2418_v25 }
 0x6da   : > { %v2467_v42 = vmul.f32 1.442695, %v2441_v41  ;;  %v2469_v27 = vmul.f32 1.442695, %v2442_v17  ;;  %v3362_v41 = vsel %vm1882_vm5, %v7368_v50, -inf }
 0x6e1   : > { %v2421_v26 = vpop.xlane.xlu0 %2420 }
 0x6e9   : > { %v2427_v30 = vpop.xlane.xlu0 %2426 }
 0x6ea   : > { %v2445_v9 = vsub.f32 %v7264_v19, %v2427_v30  ;;  %v2430_v19 = vpop.xlane.xlu2 %2429 }
 0x6ec   : > { %v2475_v55 = vmul.f32 1.442695, %v2445_v9 }
 0x6ee   : > { %4897 = vpow2.f32 %v2475_v55 }
 0x6ef   : > { %4899 = vpow2.f32 %v3403_v2  ;;  %v2446_v2 = vsub.f32 %v7268_v0, %v2430_v19 }
 0x6f0   : > { %4901 = vpow2.f32 %v2467_v42  ;;  %v2443_v42 = vsub.f32 %v7253_v45, %v2421_v26 }
 0x6f1   : > { %4903 = vpow2.f32 %v3407_v20  ;;  %v2477_v63 = vmul.f32 1.442695, %v2446_v2  ;;  %v2444_v2 = vsub.f32 %v7257_v48, %v2424_v6 }
 0x6f2   : > { %4905 = vpow2.f32 %v2469_v27  ;;  %v7401_v25 = vpop.xlane.xlu2 %2884  ;;  %v2471_v19 = vmul.f32 1.442695, %v2443_v42 }
 0x6f3   : > { %4907 = vpow2.f32 %v2477_v63  ;;  %v2473_v63 = vmul.f32 1.442695, %v2444_v2 }
 0x6f4   : > { %v7376_v46 = vpop.eup %4897  ;;  %4909 = vpow2.f32 %v2471_v19 }
 0x6f5   : > { %v2521_v54 = vsel %vm1882_vm5, %v7376_v46, 0.0  ;;  %v7384_v30 = vpop.eup %4899 }
 0x6f6   : > { %2522 = vadd.xlane.f32.xlu0 %v2521_v54  ;;  %v3437_v9 = vsel %vm1882_vm5, %v7384_v30, 0.0  ;;  %v7392_v55 = vpop.eup %4901  ;;  %v3389_v54 = vsub.f32 %v7076_v32, %v7221_v33 }
 0x6f7   : > { %v2509_v38 = vsel %vm1882_vm5, %v7392_v55, 0.0  ;;  %v7399_v0 = vpop.eup %4903 }
 0x6f8   : > { %v3443_v45 = vsel %vm1882_vm5, %v7399_v0, 0.0  ;;  %v7409_v26 = vpop.eup %4905  ;;  %v3411_v17 = vmul.f32 1.442695, %v3389_v54 }
 0x6f9   : > { %v7411_v20 = vpop.eup %4907  ;;  %v2512_v27 = vsel %vm1882_vm5, %v7409_v26, 0.0 }
 0x6fa   : > { %v2524_v33 = vsel %vm1882_vm5, %v7411_v20, 0.0  ;;  %4911 = vpow2.f32 %v3411_v17  ;;  %v7423_v6 = vpop.eup %4909 }
 0x6fb   : > { %3438 = vadd.xlane.f32.xlu1 %v3437_v9  ;;  %v2888_v9 = vpop.xlane.xlu1 %2887  ;;  %v2894_v32 = vpop.xlane.xlu2 %2893  ;;  %4913 = vpow2.f32 %v2473_v63  ;;  %v2515_v54 = vsel %vm1882_vm5, %v7423_v6, 0.0 }
 0x6fc   : > { %v2916_v42 = vsub.f32 %v7283_v57, %v2888_v9  ;;  %v3365_v57 = vsel %vm1882_vm5, %v7373_v14, -inf  ;;  %v3390_v9 = vsub.f32 %v7118_v37, %v7250_v15 }
 0x6fe   : > { %3369 = vmax.xlane.f32.xlu0 %v3368_v7  ;;  %v7416_v7 = vpop.f32.mrf.mxu3 }
 0x6ff   : > { %v3374_v48 = vsel %vm1882_vm5, %v7416_v7, -inf }
 0x700   : > { %v7429_v19 = vpop.eup %4911 }
 0x701   : > { %2510 = vadd.xlane.f32.xlu2 %v2509_v38  ;;  %v3388_v38 = vsub.f32 %v7035_v56, %v7210_v18  ;;  %v3449_v2 = vsel %vm1882_vm5, %v7429_v19, 0.0  ;;  %v7437_v56 = vpop.eup %4913 }
 0x703   : > { %3363 = vmax.xlane.f32.xlu1 %v3362_v41  ;;  %v2941_v41 = vmul.f32 1.442695, %v2916_v42  ;;  %v7433_v17 = vpop.xlane.xlu2 %2896 }
 0x705   : > { %4915 = vpow2.f32 %v2941_v41  ;;  %v2891_v41 = vpop.xlane.xlu1 %2890 }
 0x706   : > { %3444 = vadd.xlane.f32.xlu0 %v3443_v45  ;;  %v3409_v45 = vmul.f32 1.442695, %v3388_v38  ;;  %v3413_v38 = vmul.f32 1.442695, %v3390_v9 }
 0x708   : > { %4917 = vpow2.f32 %v3409_v45 }
 0x709   : > { %2513 = vadd.xlane.f32.xlu2 %v2512_v27  ;;  %v7441_v27 = vpop.f32.mrf.mxu3  ;;  %4919 = vpow2.f32 %v3413_v38 }
 0x70b   : > { %2525 = vadd.xlane.f32.xlu1 %v2524_v33  ;;  %v2900_v18 = vpop.xlane.xlu0 %2899  ;;  %v2518_v33 = vsel %vm1882_vm5, %v7437_v56, 0.0  ;;  %v7445_v63 = vpop.eup %4915 }
 0x70c   : > { %v2920_v42 = vsub.f32 %v7308_v59, %v2900_v18  ;;  %v2982_v37 = vsel %vm1882_vm5, %v7445_v63, 0.0  ;;  %v2915_v59 = vsub.f32 %v7275_v28, %v7401_v25 }
 0x70e   : > { %3375 = vmax.xlane.f32.xlu0 %v3374_v48  ;;  %v3371_v48 = vsel %vm1882_vm5, %v7394_v29, -inf  ;;  %v7453_v15 = vpop.eup %4917  ;;  %v2949_v45 = vmul.f32 1.442695, %v2920_v42 }
 0x70f   : > { %v3446_v18 = vsel %vm1882_vm5, %v7453_v15, 0.0  ;;  %v7466_v25 = vpop.eup %4919 }
 0x710   : > { %4921 = vpow2.f32 %v2949_v45 }
 0x711   : > { %2516 = vadd.xlane.f32.xlu2 %v2515_v54  ;;  %v2918_v54 = vsub.f32 %v7294_v51, %v2894_v32  ;;  %v7459_v9 = vpop.f32.mrf.mxu3  ;;  %v3377_v32 = vsel %vm1882_vm5, %v7441_v27, -inf }
 0x712   : > { %v3380_v28 = vsel %vm1882_vm5, %v7459_v9, -inf }
 0x713   : > { %3366 = vmax.xlane.f32.xlu1 %v3365_v57  ;;  %v2903_v42 = vpop.xlane.xlu1 %2902 }
 0x716   : > { %3450 = vadd.xlane.f32.xlu0 %v3449_v2  ;;  %v2945_v2 = vmul.f32 1.442695, %v2918_v54  ;;  %v2917_v54 = vsub.f32 %v7288_v39, %v2891_v41 }
 0x718   : > { %4923 = vpow2.f32 %v2945_v2 }
 0x719   : > { %2519 = vadd.xlane.f32.xlu2 %v2518_v33  ;;  %v2939_v33 = vmul.f32 1.442695, %v2915_v59  ;;  %4925 = vrcp.f32 %v7366_v1  ;;  %v2943_v59 = vmul.f32 1.442695, %v2917_v54 }
 0x71b   : > { %v2906_v57 = vpop.xlane.xlu2 %2905  ;;  %3372 = vmax.xlane.f32.xlu1 %v3371_v48 }
 0x71c   : > { %v2922_v51 = vsub.f32 %v7327_v52, %v2906_v57  ;;  %v7469_v52 = vpop.eup %4921  ;;  %v3452_v57 = vsel %vm1882_vm5, %v7466_v25, 0.0 }
 0x71d   : > { %v2994_v1 = vsel %vm1882_vm5, %v7469_v52, 0.0 }
 0x71e   : > { %2983 = vadd.xlane.f32.xlu0 %v2982_v37  ;;  %v2953_v38 = vmul.f32 1.442695, %v2922_v51  ;;  %v7475_v37 = vpop.eup %4923 }
 0x71f   : > { %v4926_v45 = vpop.eup %4925  ;;  %v2988_v39 = vsel %vm1882_vm5, %v7475_v37, 0.0 }
 0x721   : > { %3447 = vadd.xlane.f32.xlu2 %v3446_v18 }
 0x723   : > { %3378 = vmax.xlane.f32.xlu1 %v3377_v32  ;;  %v2505_v48 = vpop.xlane.xlu2 %2504 }
 0x724   : > { %4927 = vrcp.f32 %v2505_v48 }
 0x725   : > { %4929 = vpow2.f32 %v2939_v33  ;;  %v2919_v33 = vsub.f32 %v7302_v34, %v7433_v17 }
 0x726   : > { %3381 = vmax.xlane.f32.xlu0 %v3380_v28  ;;  %4931 = vrcp.f32 %v7322_v16 }
 0x727   : > { %4933 = vpow2.f32 %v2953_v38 }
 0x729   : > { %3453 = vadd.xlane.f32.xlu2 %v3452_v57  ;;  %v3496_v57 = vmul.f32 %v4926_v45, %v7151_v13 }
 0x72a   : > { %v4928_v51 = vpop.eup %4927 }
 0x72b   : > { %v2508_v2 = vpop.xlane.xlu1 %2507  ;;  %v3550_v18 = vpop.permute.xlu2 %3549  ;;  %2995 = vadd.xlane.f32.xlu1 %v2994_v1  ;;  %v2551_v48 = vmul.f32 %v4928_v51, %v7336_v44  ;;  %v3512_v51 = vpack.c.bf16 %v3496_v57, %v3496_v57 }
 0x72c   : > { %4935 = vrcp.f32 %v2508_v2  ;;  %3577 = vmatpush.bf16.msra.mxu0 %v3550_v18  ;;  %v7481_v16 = vpop.eup %4929  ;;  %v2947_v2 = vmul.f32 1.442695, %v2919_v33 }
 0x72d   : > { %v4932_v41 = vpop.eup %4931  ;;  %4937 = vpow2.f32 %v2943_v59  ;;  %v2979_v28 = vsel %vm1882_vm5, %v7481_v16, 0.0  ;;  %v2567_v18 = vpack.c.bf16 %v2551_v48, %v2551_v48  ;;  %v3536_v48 = vunpack.c.l.b16 %v3512_v51 }
 0x72e   : > { %2989 = vadd.xlane.f32.xlu0 %v2988_v39  ;;  %v7483_v32 = vpop.eup %4933  ;;  %v3495_v38 = vmul.f32 %v4932_v41, %v7193_v8  ;;  %4939 = vpow2.f32 %v2947_v2  ;;  %v2921_v8 = vsub.f32 %v7316_v23, %v2903_v42  ;;  %v7901_v2 = vld [vmem:[#allocation23_spill] sm:$0xff] }
 0x72f   : > { %v3000_v1 = vsel %vm1882_vm5, %v7483_v32, 0.0  ;;  %v2656_v41 = vunpack.c.l.b16 %v2567_v18 }
 0x730   : > { %v3511_v44 = vpack.c.bf16 %v3495_v38, %v3495_v38 }
 0x731   : > { %2980 = vadd.xlane.f32.xlu2 %v2979_v28 }
 0x732   : > { %v4936_v54 = vpop.eup %4935  ;;  %v3535_v45 = vunpack.c.l.b16 %v3511_v44 }
 0x733   : > { %v2552_v59 = vmul.f32 %v4936_v54, %v7346_v58  ;;  %v3145_v39 = vpop.permute.xlu2 %3144  ;;  %3001 = vadd.xlane.f32.xlu1 %v3000_v1  ;;  %v7495_v34 = vpop.eup %4937  ;;  %v2951_v58 = vmul.f32 1.442695, %v2921_v8 }
 0x734   : > { %v2985_v13 = vsel %vm1882_vm5, %v7495_v34, 0.0  ;;  %v3361_v1 = vpop.xlane.xlu0 %3360  ;;  %v7501_v38 = vpop.eup %4939  ;;  %v3543_v57 = vpack.c.b16 %v3536_v48, %v3535_v45 }
 0x735   : > { %v2568_v17 = vpack.c.bf16 %v2552_v59, %v2552_v59  ;;  %4941 = vpow2.f32 %v2951_v58  ;;  %v3391_v23 = vsub.f32 %v7338_v53, %v3361_v1  ;;  %v2991_v42 = vsel %vm1882_vm5, %v7501_v38, 0.0 }
 0x737   : > { %v2657_v28 = vunpack.c.l.b16 %v2568_v17  ;;  %v3415_v18 = vmul.f32 1.442695, %v3391_v23 }
 0x739   : > { %v2664_v33 = vpack.c.b16 %v2657_v28, %v2656_v41  ;;  %2986 = vadd.xlane.f32.xlu2 %v2985_v13  ;;  %4943 = vpow2.f32 %v3415_v18  ;;  %v7902_v28 = vld [vmem:[#allocation24_spill] sm:$0xff] }
 0x73b   : > { %4321 = vmatmul.msk.bf16.vlgmr.msrb.gmra.mxu1 %vm1882_vm5, %v2664_v33  ;;  %v3548_v54 = vpop.permute.xlu2 %3547  ;;  %v7509_v44 = vpop.eup %4941 }
 0x73c   : > { %3578 = vmatpush.bf16.msra.mxu0 %v3548_v54  ;;  %v2997_v17 = vsel %vm1882_vm5, %v7509_v44, 0.0  ;;  %v3442_v8 = vpop.xlane.xlu0 %3441 }
 0x73d   : > { %4945 = vrcp.f32 %v3442_v8 }
 0x73f   : > { %4349 = vmatmul.msk.bf16.vlgmr.msra.gmra.mxu0 %vm1882_vm5, %v3543_v57  ;;  %v7515_v53 = vpop.eup %4943 }
 0x740   : > { %v3455_v51 = vsel %vm1882_vm5, %v7515_v53, 0.0 }
 0x741   : > { %2992 = vadd.xlane.f32.xlu2 %v2991_v42 }
 0x742   : > { %3626 = vrot.lane.b32.xlu0 %v7901_v2, %s5256_s17 }
 0x743   : > { %v3147_v59 = vpop.permute.xlu1 %3146  ;;  %v4946_v13 = vpop.eup %4945 }
 0x744   : > { %3174 = vmatpush.bf16.msra.mxu1 %v3147_v59  ;;  %v3498_v33 = vmul.f32 %v4946_v13, %v7344_v12 }
 0x746   : > { %v3514_v58 = vpack.c.bf16 %v3498_v33, %v3498_v33 }
 0x748   : > { %3175 = vmatpush.bf16.msra.mxu1 %v3145_v39  ;;  %v3538_v18 = vunpack.c.l.b16 %v3514_v58 }
 0x749   : > { %2998 = vadd.xlane.f32.xlu2 %v2997_v17 }
 0x74a   : > { %3620 = vrot.lane.b32.xlu0 %v6285_v22, %s5256_s17 }
 0x751   : > { %3456 = vadd.xlane.f32.xlu2 %v3455_v51 }
 0x769   : > { %v7519_v41 = vpop.xlane.xlu0 %2522  ;;  %3624 = vrot.lane.b32.xlu2 %v7902_v28, %s5256_s17 }
 0x76e   : > { %v3439_v39 = vpop.xlane.xlu1 %3438 }
 0x76f   : > { %4947 = vrcp.f32 %v3439_v39 }
 0x771   : > { %v3370_v45 = vpop.xlane.xlu0 %3369 }
 0x772   : > { %v3394_v28 = vsub.f32 %v7382_v11, %v3370_v45 }
 0x774   : > { %v2511_v22 = vpop.xlane.xlu2 %2510 }
 0x775   : > { %v4948_v48 = vpop.eup %4947  ;;  %4949 = vrcp.f32 %v2511_v22  ;;  %v3421_v22 = vmul.f32 1.442695, %v3394_v28 }
 0x776   : > { %v3497_v54 = vmul.f32 %v4948_v48, %v7384_v30  ;;  %v3364_v1 = vpop.xlane.xlu1 %3363 }
 0x777   : > { %v3392_v57 = vsub.f32 %v7368_v50, %v3364_v1 }
 0x778   : > { %v3513_v23 = vpack.c.bf16 %v3497_v54, %v3497_v54 }
 0x779   : > { %v3417_v42 = vmul.f32 1.442695, %v3392_v57  ;;  %v3445_v2 = vpop.xlane.xlu0 %3444 }
 0x77a   : > { %v3537_v59 = vunpack.c.l.b16 %v3513_v23  ;;  %v7534_v23 = vpop.f32.mrf.mxu0 }
 0x77b   : > { %4951 = vpow2.f32 %v3417_v42  ;;  %v4950_v8 = vpop.eup %4949 }
 0x77c   : > { %v2514_v17 = vpop.xlane.xlu2 %2513  ;;  %v3544_v51 = vpack.c.b16 %v3538_v18, %v3537_v59  ;;  %v2553_v30 = vmul.f32 %v4950_v8, %v7392_v55 }
 0x77d   : > { %4953 = vrcp.f32 %v2514_v17 }
 0x77e   : > { %v2526_v12 = vpop.xlane.xlu1 %2525  ;;  %4350 = vmatmul.msk.bf16.gmra.mxu0 %vm1882_vm5, %v3544_v51  ;;  %v2569_v48 = vpack.c.bf16 %v2553_v30, %v2553_v30 }
 0x780   : > { %v2658_v55 = vunpack.c.l.b16 %v2569_v48 }
 0x781   : > { %v7529_v39 = vpop.eup %4951  ;;  %v3376_v33 = vpop.xlane.xlu0 %3375 }
 0x782   : > { %v3458_v50 = vsel %vm1882_vm5, %v7529_v39, 0.0  ;;  %v3396_v42 = vsub.f32 %v7416_v7, %v3376_v33  ;;  %v7546_v7 = vpop.f32.mrf.mxu0 }
 0x783   : > { %v4954_v13 = vpop.eup %4953  ;;  %3459 = vadd.xlane.f32.xlu1 %v3458_v50 }
 0x784   : > { %v2554_v58 = vmul.f32 %v4954_v13, %v7409_v26  ;;  %v2517_v54 = vpop.xlane.xlu2 %2516  ;;  %v3425_v51 = vmul.f32 1.442695, %v3396_v42 }
 0x785   : > { %4955 = vrcp.f32 %v2517_v54 }
 0x786   : > { %v2570_v1 = vpack.c.bf16 %v2554_v58, %v2554_v58  ;;  %v3367_v57 = vpop.xlane.xlu1 %3366  ;;  %4957 = vpow2.f32 %v3421_v22 }
 0x787   : > { %v3393_v11 = vsub.f32 %v7373_v14, %v3367_v57 }
 0x788   : > { %v2659_v45 = vunpack.c.l.b16 %v2570_v1 }
 0x789   : > { %v3419_v18 = vmul.f32 1.442695, %v3393_v11  ;;  %v3451_v8 = vpop.xlane.xlu0 %3450 }
 0x78a   : > { %v2665_v59 = vpack.c.b16 %v2659_v45, %v2658_v55 }
 0x78b   : > { %4959 = vpow2.f32 %v3419_v18  ;;  %v4956_v26 = vpop.eup %4955 }
 0x78c   : > { %4322 = vmatmul.msk.bf16.gmra.mxu1 %vm1882_vm5, %v2665_v59  ;;  %v2520_v17 = vpop.xlane.xlu2 %2519  ;;  %v7539_v28 = vpop.eup %4957  ;;  %v2555_v14 = vmul.f32 %v4956_v26, %v7423_v6 }
 0x78d   : > { %4961 = vrcp.f32 %v2520_v17  ;;  %v3464_v13 = vsel %vm1882_vm5, %v7539_v28, 0.0 }
 0x78e   : > { %v7541_v30 = vpop.xlane.xlu1 %3372  ;;  %4963 = vrcp.f32 %v3445_v2  ;;  %v2571_v48 = vpack.c.bf16 %v2555_v14, %v2555_v14 }
 0x78f   : > { %4965 = vpow2.f32 %v3425_v51  ;;  %v7560_v51 = vpop.f32.mrf.mxu0 }
 0x790   : > { %4967 = vrcp.f32 %v2526_v12  ;;  %v2660_v42 = vunpack.c.l.b16 %v2571_v48 }
 0x791   : > { %v7544_v50 = vpop.eup %4959  ;;  %v2984_v11 = vpop.xlane.xlu0 %2983 }
 0x792   : > { %3465 = vadd.xlane.f32.xlu2 %v3464_v13  ;;  %v3461_v33 = vsel %vm1882_vm5, %v7544_v50, 0.0 }
 0x793   : > { %v4962_v22 = vpop.eup %4961  ;;  %3462 = vadd.xlane.f32.xlu0 %v3461_v33 }
 0x794   : > { %v2556_v2 = vmul.f32 %v4962_v22, %v7437_v56  ;;  %v3448_v58 = vpop.xlane.xlu2 %3447  ;;  %v4964_v6 = vpop.eup %4963 }
 0x795   : > { %4969 = vrcp.f32 %v3448_v58  ;;  %v7553_v57 = vpop.eup %4965  ;;  %v3499_v45 = vmul.f32 %v4964_v6, %v7399_v0 }
 0x796   : > { %v2572_v54 = vpack.c.bf16 %v2556_v2, %v2556_v2  ;;  %v3379_v1 = vpop.xlane.xlu1 %3378  ;;  %4971 = vrcp.f32 %v7519_v41  ;;  %v4968_v59 = vpop.eup %4967  ;;  %v3470_v56 = vsel %vm1882_vm5, %v7553_v57, 0.0 }
 0x797   : > { %v3397_v55 = vsub.f32 %v7441_v27, %v3379_v1  ;;  %v3515_v14 = vpack.c.bf16 %v3499_v45, %v3499_v45  ;;  %v2558_v13 = vmul.f32 %v4968_v59, %v7411_v20 }
 0x798   : > { %v2661_v18 = vunpack.c.l.b16 %v2572_v54 }
 0x799   : > { %v3427_v12 = vmul.f32 1.442695, %v3397_v55  ;;  %v3539_v48 = vunpack.c.l.b16 %v3515_v14  ;;  %v3382_v6 = vpop.xlane.xlu0 %3381  ;;  %v7572_v55 = vpop.f32.mrf.mxu1 }
 0x79a   : > { %v2666_v17 = vpack.c.b16 %v2661_v18, %v2660_v42 }
 0x79b   : > { %v4970_v26 = vpop.eup %4969  ;;  %4973 = vpow2.f32 %v3427_v12  ;;  %3471 = vadd.xlane.f32.xlu0 %v3470_v56 }
 0x79c   : > { %v3500_v41 = vmul.f32 %v4970_v26, %v7453_v15  ;;  %4323 = vmatmul.msk.bf16.gmra.mxu1 %vm1882_vm5, %v2666_v17  ;;  %v3454_v27 = vpop.xlane.xlu2 %3453  ;;  %3622 = vrot.lane.b32.xlu1 %v6441_v43, %s5256_s17  ;;  %v4972_v0 = vpop.eup %4971  ;;  %v2574_v15 = vpack.c.bf16 %v2558_v13, %v2558_v13 }
 0x79d   : > { %4975 = vrcp.f32 %v3454_v27  ;;  %v2557_v22 = vmul.f32 %v4972_v0, %v7376_v46  ;;  %v3111_v46 = vpop.f32.mrf.mxu0 }
 0x79e   : > { %v3516_v33 = vpack.c.bf16 %v3500_v41, %v3500_v41  ;;  %4977 = vrcp.f32 %v3451_v8  ;;  %v2663_v42 = vunpack.c.l.b16 %v2574_v15 }
 0x79f   : > { %v2573_v20 = vpack.c.bf16 %v2557_v22, %v2557_v22 }
 0x7a0   : > { %v3540_v2 = vunpack.c.l.b16 %v3516_v33 }
 0x7a1   : > { %v7568_v58 = vpop.eup %4973  ;;  %v2662_v12 = vunpack.c.l.b16 %v2573_v20  ;;  %v2990_v14 = vpop.xlane.xlu0 %2989 }
 0x7a2   : > { %v3473_v54 = vsel %vm1882_vm5, %v7568_v58, 0.0  ;;  %v3545_v1 = vpack.c.b16 %v3540_v2, %v3539_v48  ;;  %v7578_v13 = vpop.f32.mrf.mxu1 }
 0x7a3   : > { %3474 = vadd.xlane.f32.xlu2 %v3473_v54  ;;  %v4976_v43 = vpop.eup %4975  ;;  %v2667_v17 = vpack.c.b16 %v2663_v42, %v2662_v12 }
 0x7a4   : > { %v2981_v45 = vpop.xlane.xlu2 %2980  ;;  %4351 = vmatmul.msk.bf16.gmra.mxu0 %vm1882_vm5, %v3545_v1  ;;  %v4978_v8 = vpop.eup %4977  ;;  %v3502_v18 = vmul.f32 %v4976_v43, %v7466_v25  ;;  %v7903_v25 = vpack.i.bf16 %v7298_v35, %v7292_v4  ;;  %v3395_v1 = vsub.f32 %v7394_v29, %v7541_v30  ;;  %v7904_v4 = vpack.i.bf16 %v7312_v5, %v7306_v40 }
 0x7a5   : > { %4979 = vrcp.f32 %v2981_v45  ;;  %v3501_v59 = vmul.f32 %v4978_v8, %v7429_v19  ;;  %v3114_v48 = vpop.f32.mrf.mxu0  ;;  %v4543_v29 = vpack.i.bf16 %v7546_v7, %v7534_v23  ;;  %v4558_v23 = vpack.i.bf16 %v3111_v46, %v7560_v51 }
 0x7a6   : > { %4981 = vrcp.f32 %v2984_v11  ;;  %v3518_v56 = vpack.c.bf16 %v3502_v18, %v3502_v18  ;;  %v3423_v35 = vmul.f32 1.442695, %v3395_v1  ;;  %v3398_v18 = vsub.f32 %v7459_v9, %v3382_v6  ;;  %v2996_v9 = vpop.xlane.xlu1 %2995 }
 0x7a7   : > { %v3517_v41 = vpack.c.bf16 %v3501_v59, %v3501_v59 }
 0x7a8   : > { %v3542_v33 = vunpack.c.l.b16 %v3518_v56  ;;  %v3429_v56 = vmul.f32 1.442695, %v3398_v18 }
 0x7a9   : > { %v3541_v19 = vunpack.c.l.b16 %v3517_v41 }
 0x7ab   : > { %v4980_v26 = vpop.eup %4979  ;;  %v3546_v15 = vpack.c.b16 %v3542_v33, %v3541_v19 }
 0x7ac   : > { %v2987_v27 = vpop.xlane.xlu2 %2986  ;;  %4324 = vmatmul.msk.bf16.gmra.mxu1 %vm1882_vm5, %v2667_v17  ;;  %v4982_v0 = vpop.eup %4981  ;;  %v3027_v22 = vmul.f32 %v4980_v26, %v7481_v16 }
 0x7ad   : > { %v3028_v11 = vmul.f32 %v4982_v0, %v7445_v63  ;;  %4983 = vrcp.f32 %v2987_v27  ;;  %v7589_v16 = vpop.f32.mrf.mxu1  ;;  %v3116_v30 = vpop.f32.mrf.mxu0 }
 0x7ae   : > { %v3043_v2 = vpack.c.bf16 %v3027_v22, %v3027_v22  ;;  %4985 = vrcp.f32 %v2990_v14  ;;  %v4573_v0 = vpack.i.bf16 %v3116_v30, %v3114_v48 }
 0x7af   : > { %4539 = vrot.lane.b32.xlu0 %v7903_v25, %s5256_s17  ;;  %v3044_v43 = vpack.c.bf16 %v3028_v11, %v3028_v11  ;;  %4987 = vpow2.f32 %v3423_v35 }
 0x7b0   : > { %v3132_v45 = vunpack.c.l.b16 %v3043_v2  ;;  %4989 = vpow2.f32 %v3429_v56 }
 0x7b1   : > { %v3133_v63 = vunpack.c.l.b16 %v3044_v43 }
 0x7b3   : > { %v3140_v8 = vpack.c.b16 %v3133_v63, %v3132_v45  ;;  %v4984_v42 = vpop.eup %4983  ;;  %v3002_v45 = vpop.xlane.xlu1 %3001 }
 0x7b4   : > { %v3627_v54 = vpop.permute.xlu0 %3626  ;;  %v2993_v20 = vpop.xlane.xlu2 %2992  ;;  %4352 = vmatmul.msk.bf16.gmra.mxu0 %vm1882_vm5, %v3546_v15  ;;  %v3029_v40 = vmul.f32 %v4984_v42, %v7495_v34 }
 0x7b5   : > { %3648 = vmatpush.bf16.msrb.mxu1 %v3627_v54  ;;  %v4986_v59 = vpop.eup %4985  ;;  %v7601_v5 = vpop.f32.mrf.mxu1  ;;  %4991 = vrcp.f32 %v2993_v20 }
 0x7b6   : > { %v3030_v17 = vmul.f32 %v4986_v59, %v7475_v37  ;;  %v7605_v7 = vpop.eup %4987  ;;  %v3045_v26 = vpack.c.bf16 %v3029_v40, %v3029_v40  ;;  %v3119_v14 = vpop.f32.mrf.mxu0  ;;  %4993 = vrcp.f32 %v2996_v9 }
 0x7b7   : > { %4554 = vrot.lane.b32.xlu0 %v7904_v4, %s5256_s17  ;;  %v3467_v34 = vsel %vm1882_vm5, %v7605_v7, 0.0  ;;  %v7610_v51 = vpop.eup %4989 }
 0x7b8   : > { %v3046_v6 = vpack.c.bf16 %v3030_v17, %v3030_v17  ;;  %v3134_v27 = vunpack.c.l.b16 %v3045_v26  ;;  %v3476_v11 = vsel %vm1882_vm5, %v7610_v51, 0.0 }
 0x7ba   : > { %v3135_v37 = vunpack.c.l.b16 %v3046_v6 }
 0x7bb   : > { %4544 = vrot.lane.b32.xlu2 %v4543_v29, %s5254_s11  ;;  %v4992_v22 = vpop.eup %4991 }
 0x7bc   : > { %v2999_v12 = vpop.xlane.xlu2 %2998  ;;  %4337 = vmatmul.msk.bf16.vlgmr.msra.gmra.mxu1 %vm1882_vm5, %v3140_v8  ;;  %v3141_v33 = vpack.c.b16 %v3135_v37, %v3134_v27  ;;  %v4994_v19 = vpop.eup %4993  ;;  %v3031_v15 = vmul.f32 %v4992_v22, %v7501_v38 }
 0x7bd   : > { %v7612_v46 = vpop.f32.mrf.mxu1  ;;  %v3032_v48 = vmul.f32 %v4994_v19, %v7469_v52  ;;  %4995 = vrcp.f32 %v2999_v12 }
 0x7be   : > { %v3121_v2 = vpop.f32.mrf.mxu0  ;;  %v3047_v1 = vpack.c.bf16 %v3031_v15, %v3031_v15  ;;  %4997 = vrcp.f32 %v3002_v45 }
 0x7bf   : > { %v4588_v54 = vpack.i.bf16 %v3121_v2, %v3119_v14  ;;  %v3048_v20 = vpack.c.bf16 %v3032_v48, %v3032_v48  ;;  %v7905_v14 = vpack.i.bf16 %v7331_v21, %v7320_v47 }
 0x7c0   : > { %v3136_v4 = vunpack.c.l.b16 %v3047_v1 }
 0x7c1   : > { %v3137_v35 = vunpack.c.l.b16 %v3048_v20 }
 0x7c3   : > { %4559 = vrot.lane.b32.xlu2 %v4558_v23, %s5254_s11  ;;  %v3142_v29 = vpack.c.b16 %v3137_v35, %v3136_v4  ;;  %v4996_v30 = vpop.eup %4995 }
 0x7c4   : > { %v3457_v41 = vpop.xlane.xlu2 %3456  ;;  %v4998_v38 = vpop.eup %4997  ;;  %v3033_v52 = vmul.f32 %v4996_v30, %v7509_v44 }
 0x7c5   : > { %v7621_v43 = vpop.f32.mrf.mxu1  ;;  %v3034_v42 = vmul.f32 %v4998_v38, %v7483_v32  ;;  %v7906_v32 = vpack.i.bf16 %v7354_v36, %v7352_v62 }
 0x7c6   : > { %3468 = vadd.xlane.f32.xlu1 %v3467_v34  ;;  %v3580_v63 = vpop.f32.mrf.mxu0  ;;  %v3049_v18 = vpack.c.bf16 %v3033_v52, %v3033_v52 }
 0x7c7   : > { %v3050_v40 = vpack.c.bf16 %v3034_v42, %v3034_v42 }
 0x7c8   : > { %v3138_v12 = vunpack.c.l.b16 %v3049_v18 }
 0x7c9   : > { %v3139_v23 = vunpack.c.l.b16 %v3050_v40  ;;  %v4428_v40 = vld [vmem:[#allocation10 + $0x38] sm:$0xff] }
 0x7ca   : > { %3986 = vmatpush.bf16.msrb.mxu2 %v4428_v40 }
 0x7cb   : > { %4574 = vrot.lane.b32.xlu2 %v4573_v0, %s5254_s11  ;;  %v3143_v26 = vpack.c.b16 %v3139_v23, %v3138_v12  ;;  %v3621_v0 = vpop.permute.xlu0 %3620  ;;  %v4427_v23 = vld [vmem:[#allocation10 + $0x30] sm:$0xff] }
 0x7cc   : > { %v3625_v25 = vpop.permute.xlu2 %3624  ;;  %4338 = vmatmul.msk.bf16.gmra.mxu1 %vm1882_vm5, %v3141_v33 }
 0x7cd   : > { %3649 = vmatpush.bf16.msrb.mxu1 %v3625_v25  ;;  %v7624_v8 = vpop.f32.mrf.mxu1 }
 0x7ce   : > { %3477 = vadd.xlane.f32.xlu1 %v3476_v11  ;;  %v3582_v59 = vpop.f32.mrf.mxu0  ;;  %3987 = vmatpush.bf16.msrb.mxu2 %v4427_v23 }
 0x7cf   : > { %v4548_v56 = vpack.i.bf16 %v3582_v59, %v3580_v63 }
 0x7d3   : > { %4589 = vrot.lane.b32.xlu2 %v4588_v54, %s5254_s11 }
 0x7d5   : > { %v7629_v17 = vpop.f32.mrf.mxu1 }
 0x7dc   : > { %4339 = vmatmul.msk.bf16.gmra.mxu1 %vm1882_vm5, %v3142_v29 }
 0x7dd   : > { %v2701_v44 = vpop.f32.mrf.mxu1 }
 0x7e5   : > { %v2703_v9 = vpop.f32.mrf.mxu1 }
 0x7e6   : > { %v4598_v27 = vpack.i.bf16 %v2703_v9, %v2701_v44 }
 0x7e7   : > { %4549 = vrot.lane.b32.xlu1 %v4548_v56, %s5255_s14 }
 0x7ec   : > { %4340 = vmatmul.msk.bf16.gmra.mxu1 %vm1882_vm5, %v3143_v26 }
 0x7ef   : > { %4569 = vrot.lane.b32.xlu1 %v7905_v14, %s5256_s17 }
 0x7f6   : > { %v3460_v34 = vpop.xlane.xlu1 %3459 }
 0x7f7   : > { %4584 = vrot.lane.b32.xlu1 %v7906_v32, %s5256_s17  ;;  %4999 = vrcp.f32 %v3460_v34  ;;  %v4425_v32 = vld [vmem:[#allocation10 + $0x20] sm:$0xff] }
 0x7f8   : > { %5001 = vrcp.f32 %v3457_v41 }
 0x7fb   : > { %v3585_v6 = vpop.f32.mrf.mxu0 }
 0x7fd   : > { %v5000_v22 = vpop.eup %4999 }
 0x7fe   : > { %v5002_v47 = vpop.eup %5001  ;;  %v3504_v21 = vmul.f32 %v5000_v22, %v7529_v39 }
 0x7ff   : > { %4599 = vrot.lane.b32.xlu1 %v4598_v27, %s5256_s17  ;;  %v3503_v62 = vmul.f32 %v5002_v47, %v7515_v53 }
 0x800   : > { %v3520_v19 = vpack.c.bf16 %v3504_v21, %v3504_v21  ;;  %v4422_v21 = vld [vmem:[#allocation10 + $0x8] sm:$0xff] }
 0x801   : > { %v3519_v2 = vpack.c.bf16 %v3503_v62, %v3503_v62 }
 0x802   : > { %v3609_v41 = vunpack.c.l.b16 %v3520_v19 }
 0x803   : > { %v3587_v37 = vpop.f32.mrf.mxu0  ;;  %v3608_v54 = vunpack.c.l.b16 %v3519_v2 }
 0x804   : > { %v4563_v33 = vpack.i.bf16 %v3587_v37, %v3585_v6  ;;  %v4424_v6 = vld [vmem:[#allocation10 + $0x18] sm:$0xff]  ;;  %v4423_v37 = vld [vmem:[#allocation10 + $0x10] sm:$0xff] }
 0x805   : > { %v3466_v36 = vpop.xlane.xlu2 %3465  ;;  %v3616_v45 = vpack.c.b16 %v3609_v41, %v3608_v54 }
 0x806   : > { %4564 = vrot.lane.b32.xlu0 %v4563_v33, %s5255_s14  ;;  %v3463_v11 = vpop.xlane.xlu0 %3462  ;;  %5003 = vrcp.f32 %v3466_v36 }
 0x807   : > { %5005 = vrcp.f32 %v3463_v11 }
 0x809   : > { %v2706_v25 = vpop.f32.mrf.mxu1 }
 0x80c   : > { %v5004_v20 = vpop.eup %5003 }
 0x80d   : > { %v5006_v39 = vpop.eup %5005  ;;  %v3506_v53 = vmul.f32 %v5004_v20, %v7539_v28 }
 0x80e   : > { %v3623_v15 = vpop.permute.xlu1 %3622  ;;  %v3505_v4 = vmul.f32 %v5006_v39, %v7544_v50  ;;  %v4426_v50 = vld [vmem:[#allocation10 + $0x28] sm:$0xff]  ;;  %v3472_v26 = vpop.xlane.xlu0 %3471 }
 0x80f   : > { %3650 = vmatpush.bf16.msrb.mxu1 %v3623_v15  ;;  %v3522_v63 = vpack.c.bf16 %v3506_v53, %v3506_v53  ;;  %3988 = vmatpush.bf16.msrb.mxu2 %v4426_v50  ;;  %5007 = vrcp.f32 %v3472_v26  ;;  %v4421_v15 = vld [vmem:[#allocation10] sm:$0xff] }
 0x810   : > { %v3521_v29 = vpack.c.bf16 %v3505_v4, %v3505_v4 }
 0x811   : > { %v2708_v48 = vpop.f32.mrf.mxu1  ;;  %v3611_v30 = vunpack.c.l.b16 %v3522_v63 }
 0x812   : > { %v4613_v1 = vpack.i.bf16 %v2708_v48, %v2706_v25  ;;  %v3610_v38 = vunpack.c.l.b16 %v3521_v29 }
 0x813   : > { %3651 = vmatpush.bf16.msrb.mxu1 %v3621_v0  ;;  %3989 = vmatpush.bf16.msrb.mxu2 %v4425_v32 }
 0x814   : > { %4614 = vrot.lane.b32.xlu1 %v4613_v1, %s5256_s17  ;;  %v3617_v59 = vpack.c.b16 %v3611_v30, %v3610_v38 }
 0x815   : > { %v5008_v0 = vpop.eup %5007 }
 0x816   : > { %4353 = vmatmul.msk.bf16.vlgmr.msrb.gmra.mxu1 %vm1882_vm5, %v3616_v45  ;;  %v3508_v47 = vmul.f32 %v5008_v0, %v7553_v57  ;;  %v3475_v62 = vpop.xlane.xlu2 %3474 }
 0x817   : > { %3990 = vmatpush.bf16.msrb.mxu2 %v4424_v6 }
 0x818   : > { %v3524_v36 = vpack.c.bf16 %v3508_v47, %v3508_v47 }
 0x819   : > { %v2711_v35 = vpop.f32.mrf.mxu1 }
 0x81a   : > { %v3613_v57 = vunpack.c.l.b16 %v3524_v36 }
 0x81b   : > { %3991 = vmatpush.bf16.msrb.mxu2 %v4423_v37 }
 0x81f   : > { %3992 = vmatpush.bf16.msrb.mxu2 %v4422_v21 }
 0x821   : > { %v2713_v52 = vpop.f32.mrf.mxu1  ;;  %v3590_v42 = vpop.f32.mrf.mxu0 }
 0x822   : > { %v4628_v18 = vpack.i.bf16 %v2713_v52, %v2711_v35  ;;  %v4540_v63 = vpop.permute.xlu0 %4539 }
 0x823   : > { %3993 = vmatpush.bf16.msrb.mxu2 %v4421_v15  ;;  %v4542_v52 = vunpack.i.h.bf16 %v4540_v63 }
 0x824   : > { %4629 = vrot.lane.b32.xlu1 %v4628_v18, %s5256_s17 }
 0x826   : > { %4354 = vmatmul.msk.bf16.gmra.mxu1 %vm1882_vm5, %v3617_v59  ;;  %v4545_v59 = vpop.permute.xlu2 %4544 }
 0x829   : > { %v2716_v56 = vpop.f32.mrf.mxu1  ;;  %v3592_v12 = vpop.f32.mrf.mxu0 }
 0x82a   : > { %v4578_v28 = vpack.i.bf16 %v3592_v12, %v3590_v42  ;;  %v4541_v42 = vunpack.i.l.bf16 %v4540_v63  ;;  %v4546_v12 = vunpack.i.l.bf16 %v4545_v59 }
 0x82c   : > { %4579 = vrot.lane.b32.xlu0 %v4578_v28, %s5255_s14 }
 0x82e   : > { %v4560_v47 = vpop.permute.xlu2 %4559 }
 0x82f   : > { %v4561_v36 = vunpack.i.l.bf16 %v4560_v47 }
 0x831   : > { %v2718_v14 = vpop.f32.mrf.mxu1  ;;  %v3595_v44 = vpop.f32.mrf.mxu0 }
 0x832   : > { %v4643_v9 = vpack.i.bf16 %v2718_v14, %v2716_v56  ;;  %v3866_v56 = vsel %vm1735_vm1, %v7169_v61, %v4542_v52 }
 0x834   : > { %4644 = vrot.lane.b32.xlu1 %v4643_v9, %s5256_s17 }
 0x839   : > { %v3469_v34 = vpop.xlane.xlu1 %3468  ;;  %v3177_v27 = vpop.f32.mrf.mxu1 }
 0x83a   : > { %5009 = vrcp.f32 %v3469_v34  ;;  %v3597_v33 = vpop.f32.mrf.mxu0 }
 0x83b   : > { %v4593_v22 = vpack.i.bf16 %v3597_v33, %v3595_v44 }
 0x83d   : > { %4594 = vrot.lane.b32.xlu0 %v4593_v22, %s5255_s14 }
 0x840   : > { %v5010_v25 = vpop.eup %5009 }
 0x841   : > { %v3507_v19 = vmul.f32 %v5010_v25, %v7605_v7  ;;  %v3179_v11 = vpop.f32.mrf.mxu1  ;;  %v3478_v2 = vpop.xlane.xlu1 %3477 }
 0x842   : > { %v4603_v41 = vpack.i.bf16 %v3179_v11, %v3177_v27  ;;  %5011 = vrcp.f32 %v3478_v2  ;;  %v4555_v27 = vpop.permute.xlu0 %4554 }
 0x843   : > { %v3523_v48 = vpack.c.bf16 %v3507_v19, %v3507_v19  ;;  %5013 = vrcp.f32 %v3475_v62  ;;  %v4557_v33 = vunpack.i.h.bf16 %v4555_v27  ;;  %v4556_v22 = vunpack.i.l.bf16 %v4555_v27 }
 0x844   : > { %4604 = vrot.lane.b32.xlu2 %v4603_v41, %s5254_s11  ;;  %v4562_v62 = vunpack.i.h.bf16 %v4560_v47 }
 0x845   : > { %v3612_v54 = vunpack.c.l.b16 %v3523_v48  ;;  %v3868_v21 = vsel %vm1735_vm1, %v7187_v31, %v4557_v33  ;;  %v3867_v25 = vsel %vm1735_vm1, %v7175_v49, %v4556_v22  ;;  %v4575_v49 = vpop.permute.xlu2 %4574 }
 0x846   : > { %v3883_v15 = vsel %vm1882_vm5, %v3867_v25, %v4561_v36  ;;  %v3884_v41 = vsel %vm1882_vm5, %v3868_v21, %v4562_v62  ;;  %v4576_v63 = vunpack.i.l.bf16 %v4575_v49 }
 0x847   : > { %v3618_v1 = vpack.c.b16 %v3613_v57, %v3612_v54 }
 0x848   : > { %v5012_v20 = vpop.eup %5011 }
 0x849   : > { %v3182_v45 = vpop.f32.mrf.mxu1  ;;  %4355 = vmatmul.msk.bf16.gmra.mxu1 %vm1882_vm5, %v3618_v1  ;;  %v5014_v39 = vpop.eup %5013  ;;  %v3510_v7 = vmul.f32 %v5012_v20, %v7610_v51  ;;  %v3865_v51 = vsel %vm1735_vm1, %v7158_v60, %v4541_v42 }
 0x84a   : > { %v3509_v53 = vmul.f32 %v5014_v39, %v7568_v58  ;;  %v4547_v58 = vunpack.i.h.bf16 %v4545_v59  ;;  %v3881_v14 = vsel %vm1882_vm5, %v3865_v51, %v4546_v12 }
 0x84b   : > { %v3526_v4 = vpack.c.bf16 %v3510_v7, %v3510_v7 }
 0x84c   : > { %v3525_v35 = vpack.c.bf16 %v3509_v53, %v3509_v53  ;;  %v3882_v44 = vsel %vm1882_vm5, %v3866_v56, %v4547_v58 }
 0x84d   : > { %v3615_v38 = vunpack.c.l.b16 %v3526_v4  ;;  %v4590_v12 = vpop.permute.xlu2 %4589 }
 0x84e   : > { %v3614_v18 = vunpack.c.l.b16 %v3525_v35  ;;  %v4577_v35 = vunpack.i.h.bf16 %v4575_v49 }
 0x850   : > { %v3619_v40 = vpack.c.b16 %v3615_v38, %v3614_v18 }
 0x851   : > { %v3184_v29 = vpop.f32.mrf.mxu1 }
 0x852   : > { %v4618_v30 = vpack.i.bf16 %v3184_v29, %v3182_v45 }
 0x854   : > { %4619 = vrot.lane.b32.xlu2 %v4618_v30, %s5254_s11 }
 0x859   : > { %v4550_v28 = vpop.permute.xlu1 %4549  ;;  %v3187_v23 = vpop.f32.mrf.mxu1  ;;  %4356 = vmatmul.msk.bf16.gmra.mxu1 %vm1882_vm5, %v3619_v40 }
 0x85a   : > { %v4552_v50 = vunpack.i.h.bf16 %v4550_v28  ;;  %v4551_v26 = vunpack.i.l.bf16 %v4550_v28 }
 0x85c   : > { %v3898_v32 = vsel %vm3897_vm6, %v3881_v14, %v4551_v26  ;;  %v3899_v61 = vsel %vm3897_vm6, %v3882_v44, %v4552_v50  ;;  %v7907_v50 = vld [vmem:[#allocation16_spill] sm:$0xff]  ;;  %v4592_v14 = vunpack.i.h.bf16 %v4590_v12  ;;  %v4591_v44 = vunpack.i.l.bf16 %v4590_v12 }
 0x85d   : > { %v3914_v9 = vpack.c.bf16 %v3899_v61, %v3898_v32 }
 0x85f   : > { %3994 = vmatmul.bf16.vlgmr.msrb.gmra.mxu2 %v3914_v9 }
 0x861   : > { %v3189_v60 = vpop.f32.mrf.mxu1  ;;  %v4570_v31 = vpop.permute.xlu1 %4569 }
 0x862   : > { %v4633_v6 = vpack.i.bf16 %v3189_v60, %v3187_v23  ;;  %v4572_v20 = vunpack.i.h.bf16 %v4570_v31  ;;  %v4571_v45 = vunpack.i.l.bf16 %v4570_v31 }
 0x864   : > { %4634 = vrot.lane.b32.xlu2 %v4633_v6, %s5254_s11  ;;  %v3870_v53 = vsel %vm1735_vm1, %v7203_v10, %v4572_v20  ;;  %v3869_v4 = vsel %vm1735_vm1, %v7200_v3, %v4571_v45 }
 0x865   : > { %v3885_v52 = vsel %vm1882_vm5, %v3869_v4, %v4576_v63  ;;  %v3886_v42 = vsel %vm1882_vm5, %v3870_v53, %v4577_v35 }
 0x869   : > { %v3192_v34 = vpop.f32.mrf.mxu1  ;;  %v4585_v56 = vpop.permute.xlu1 %4584 }
 0x86a   : > { %v4587_v3 = vunpack.i.h.bf16 %v4585_v56  ;;  %v4586_v51 = vunpack.i.l.bf16 %v4585_v56 }
 0x86c   : > { %v3872_v23 = vsel %vm1735_vm1, %v7217_v24, %v4587_v3  ;;  %v3871_v26 = vsel %vm1735_vm1, %v7907_v50, %v4586_v51 }
 0x86d   : > { %v3887_v60 = vsel %vm1882_vm5, %v3871_v26, %v4591_v44  ;;  %v3888_v6 = vsel %vm1882_vm5, %v3872_v23, %v4592_v14 }
 0x871   : > { %v3194_v37 = vpop.f32.mrf.mxu1 }
 0x872   : > { %v4648_v0 = vpack.i.bf16 %v3194_v37, %v3192_v34 }
 0x874   : > { %4649 = vrot.lane.b32.xlu2 %v4648_v0, %s5254_s11  ;;  %s4052_s11 = scalar_lea.sflag [#allocation4], %s5419_s15 }
 0x878   : > { %v4565_v19 = vpop.permute.xlu0 %4564 }
 0x879   : > { %v4567_v11 = vunpack.i.h.bf16 %v4565_v19  ;;  %v4566_v2 = vunpack.i.l.bf16 %v4565_v19 }
 0x87b   : > { %v3900_v48 = vsel %vm3897_vm6, %v3883_v15, %v4566_v2  ;;  %v3901_v57 = vsel %vm3897_vm6, %v3884_v41, %v4567_v11  ;;  %v4600_v11 = vpop.permute.xlu1 %4599 }
 0x87c   : > { %v3915_v54 = vpack.c.bf16 %v3901_v57, %v3900_v48  ;;  %v4602_v15 = vunpack.i.h.bf16 %v4600_v11  ;;  %v4601_v41 = vunpack.i.l.bf16 %v4600_v11 }
 0x87e   : > { %3999 = vmatmul.bf16.gmra.mxu2 %v3915_v54  ;;  %v3873_v31 = vsel %vm1735_vm1, %v7572_v55, %v4601_v41 }
 0x886   : > { %v4615_v35 = vpop.permute.xlu1 %4614 }
 0x893   : > { %v3653_v1 = vpop.f32.mrf.mxu1 }
 0x89b   : > { %v3655_v39 = vpop.f32.mrf.mxu1 }
 0x89c   : > { %v4608_v7 = vpack.i.bf16 %v3655_v39, %v3653_v1  ;;  %v3874_v1 = vsel %vm1735_vm1, %v7578_v13, %v4602_v15  ;;  %v4616_v13 = vunpack.i.l.bf16 %v4615_v35 }
 0x89e   : > { %4609 = vrot.lane.b32.xlu0 %v4608_v7, %s5255_s14  ;;  %v4580_v29 = vpop.permute.xlu0 %4579  ;;  %v4605_v2 = vpop.permute.xlu2 %4604 }
 0x89f   : > { %v4582_v30 = vunpack.i.h.bf16 %v4580_v29  ;;  %v4581_v38 = vunpack.i.l.bf16 %v4580_v29  ;;  %v4607_v48 = vunpack.i.h.bf16 %v4605_v2  ;;  %v4606_v57 = vunpack.i.l.bf16 %v4605_v2 }
 0x8a0   : > { %v4617_v29 = vunpack.i.h.bf16 %v4615_v35 }
 0x8a1   : > { %v3902_v18 = vsel %vm3897_vm6, %v3885_v52, %v4581_v38  ;;  %v3903_v59 = vsel %vm3897_vm6, %v3886_v42, %v4582_v30  ;;  %v3889_v49 = vsel %vm1882_vm5, %v3873_v31, %v4606_v57  ;;  %v3890_v39 = vsel %vm1882_vm5, %v3874_v1, %v4607_v48 }
 0x8a2   : > { %v3916_v40 = vpack.c.bf16 %v3903_v59, %v3902_v18  ;;  %v3876_v52 = vsel %vm1735_vm1, %v7601_v5, %v4617_v29  ;;  %v3875_v42 = vsel %vm1735_vm1, %v7589_v16, %v4616_v13  ;;  %v4630_v16 = vpop.permute.xlu1 %4629 }
 0x8a3   : > { %v3658_v10 = vpop.f32.mrf.mxu1  ;;  %v4632_v23 = vunpack.i.h.bf16 %v4630_v16  ;;  %v4631_v50 = vunpack.i.l.bf16 %v4630_v16 }
 0x8a4   : > { %4004 = vmatmul.bf16.gmra.mxu2 %v3916_v40 }
 0x8ab   : > { %v3660_v58 = vpop.f32.mrf.mxu1 }
 0x8ac   : > { %v4623_v28 = vpack.i.bf16 %v3660_v58, %v3658_v10 }
 0x8ae   : > { %4624 = vrot.lane.b32.xlu0 %v4623_v28, %s5255_s14  ;;  %v4620_v63 = vpop.permute.xlu2 %4619 }
 0x8af   : > { %v4595_v32 = vpop.permute.xlu0 %4594  ;;  %v4622_v30 = vunpack.i.h.bf16 %v4620_v63  ;;  %v4621_v55 = vunpack.i.l.bf16 %v4620_v63 }
 0x8b0   : > { %v4597_v61 = vunpack.i.h.bf16 %v4595_v32  ;;  %v4596_v9 = vunpack.i.l.bf16 %v4595_v32 }
 0x8b1   : > { %v3892_v40 = vsel %vm1882_vm5, %v3876_v52, %v4622_v30  ;;  %v3891_v10 = vsel %vm1882_vm5, %v3875_v42, %v4621_v55 }
 0x8b2   : > { %v3904_v34 = vsel %vm3897_vm6, %v3887_v60, %v4596_v9  ;;  %v3905_v27 = vsel %vm3897_vm6, %v3888_v6, %v4597_v61  ;;  %v3878_v61 = vsel %vm1735_vm1, %v7621_v43, %v4632_v23  ;;  %v3877_v9 = vsel %vm1735_vm1, %v7612_v46, %v4631_v50 }
 0x8b3   : > { %v3917_v24 = vpack.c.bf16 %v3905_v27, %v3904_v34 }
 0x8b5   : > { %4009 = vmatmul.bf16.gmra.mxu2 %v3917_v24 }
 0x8be   : > { %v4635_v28 = vpop.permute.xlu2 %4634 }
 0x8bf   : > { %v4637_v14 = vunpack.i.h.bf16 %v4635_v28  ;;  %v4636_v44 = vunpack.i.l.bf16 %v4635_v28 }
 0x8c1   : > { %v3894_v34 = vsel %vm1882_vm5, %v3878_v61, %v4637_v14  ;;  %v3893_v27 = vsel %vm1882_vm5, %v3877_v9, %v4636_v44 }
 0x8c6   : > { %v3663_v37 = vpop.f32.mrf.mxu1 }
 0x8ce   : > { %v3665_v0 = vpop.f32.mrf.mxu1 }
 0x8cf   : > { %v4638_v33 = vpack.i.bf16 %v3665_v0, %v3663_v37 }
 0x8d1   : > { %4639 = vrot.lane.b32.xlu0 %v4638_v33, %s5255_s14  ;;  %v4645_v33 = vpop.permute.xlu1 %4644 }
 0x8d2   : > { %v4646_v43 = vunpack.i.l.bf16 %v4645_v33 }
 0x8d6   : > { %v3668_v22 = vpop.f32.mrf.mxu1 }
 0x8de   : > { %v3670_v47 = vpop.f32.mrf.mxu1 }
 0x8df   : > { %v4653_v21 = vpack.i.bf16 %v3670_v47, %v3668_v22  ;;  %v4650_v22 = vpop.permute.xlu2 %4649  ;;  %v4647_v47 = vunpack.i.h.bf16 %v4645_v33 }
 0x8e0   : > { %v4651_v46 = vunpack.i.l.bf16 %v4650_v22 }
 0x8e1   : > { %4654 = vrot.lane.b32.xlu0 %v4653_v21, %s5255_s14  ;;  %v4652_v21 = vunpack.i.h.bf16 %v4650_v22  ;;  %s5181_s14 = sshra.s32 %s4068_s29, 4  ;;  %s5182_s14 = int_to_ptr.hbm [resolvable:$true] %s5181_s14 }
 0x8e2   : > { %v3995_v25 = vpop.f32.mrf.mxu2  ;;  %s5183_s17 = scalar_lea.hbm %s5182_s14, 128  ;;  %p5188_p9 = scmp.lt.s32.totalorder %s5182_s14, %s7792_s7 }
 0x8e3   : > { %4035 = vst [vmem:[%s7701_s22] sm:$0xff] %v3995_v25  ;;  %p5184_p1 = scmp.ne.s32.totalorder %s5182_s14, %s5183_s17  ;;  %p5189_p10 = scmp.lt.s32.totalorder %s5187_s20, %s5183_s17 }
 0x8e5   : > { %p5185_p4 = pnand %p5184_p1, %p5389_p5  ;;  %p5190_p2 = por %p5189_p10, %p5188_p9 }
 0x8e7   : > { %p5186_p8 = pneg %p5185_p4 }
 0x8e9   : > { %p5191_p11 = pnand %p5190_p2, %p5186_p8 }
 0x8ea   : > { %v3997_v62 = vpop.f32.mrf.mxu2 }
 0x8eb   : > { %4036 = vst [vmem:[%s7701_s22 + $0x8] sm:$0xff] %v3997_v62  ;;  %v3880_v62 = vsel %vm1735_vm1, %v7629_v17, %v4647_v47 }
 0x8ec   : > { %v3896_v2 = vsel %vm1882_vm5, %v3880_v62, %v4652_v21 }
 0x901   : > { %v4000_v36 = vpop.f32.mrf.mxu2 }
 0x902   : > { %4037 = vst [vmem:[%s7701_s22 + $0x10] sm:$0xff] %v4000_v36  ;;  %v3879_v36 = vsel %vm1735_vm1, %v7624_v8, %v4646_v43 }
 0x903   : > { %v3895_v15 = vsel %vm1882_vm5, %v3879_v36, %v4651_v46 }
 0x909   : > { %v4002_v19 = vpop.f32.mrf.mxu2 }
 0x90a   : > { %4038 = vst [vmem:[%s7701_s22 + $0x18] sm:$0xff] %v4002_v19 }
 0x910   : > { %v4610_v54 = vpop.permute.xlu0 %4609 }
 0x911   : > { %v4612_v20 = vunpack.i.h.bf16 %v4610_v54  ;;  %v4611_v45 = vunpack.i.l.bf16 %v4610_v54 }
 0x913   : > { %v3906_v7 = vsel %vm3897_vm6, %v3889_v49, %v4611_v45  ;;  %v3907_v53 = vsel %vm3897_vm6, %v3890_v39, %v4612_v20 }
 0x914   : > { %v3918_v4 = vpack.c.bf16 %v3907_v53, %v3906_v7 }
 0x916   : > { %4014 = vmatmul.bf16.gmra.mxu2 %v3918_v4 }
 0x920   : > { %v4625_v38 = vpop.permute.xlu0 %4624 }
 0x921   : > { %v4627_v18 = vunpack.i.h.bf16 %v4625_v38  ;;  %v4626_v59 = vunpack.i.l.bf16 %v4625_v38 }
 0x923   : > { %v3908_v56 = vsel %vm3897_vm6, %v3891_v10, %v4626_v59  ;;  %v3909_v3 = vsel %vm3897_vm6, %v3892_v40, %v4627_v18 }
 0x924   : > { %v3919_v51 = vpack.c.bf16 %v3909_v3, %v3908_v56 }
 0x926   : > { %4019 = vmatmul.bf16.gmra.mxu2 %v3919_v51 }
 0x927   : > { %v4005_v58 = vpop.f32.mrf.mxu2 }
 0x928   : > { %4039 = vst [vmem:[%s7701_s22 + $0x20] sm:$0xff] %v4005_v58 }
 0x92f   : > { %v4007_v12 = vpop.f32.mrf.mxu2 }
 0x930   : > { %4040 = vst [vmem:[%s7701_s22 + $0x28] sm:$0xff] %v4007_v12 }
 0x938   : > { %v4010_v5 = vpop.f32.mrf.mxu2 }
 0x939   : > { %4041 = vst [vmem:[%s7701_s22 + $0x30] sm:$0xff] %v4010_v5 }
 0x940   : > { %v4012_v26 = vpop.f32.mrf.mxu2 }
 0x941   : > { %4042 = vst [vmem:[%s7701_s22 + $0x38] sm:$0xff] %v4012_v26 }
 0x943   : > { %v4640_v32 = vpop.permute.xlu0 %4639 }
 0x944   : > { %v4642_v60 = vunpack.i.h.bf16 %v4640_v32  ;;  %v4641_v6 = vunpack.i.l.bf16 %v4640_v32 }
 0x946   : > { %v3910_v24 = vsel %vm3897_vm6, %v3893_v27, %v4641_v6  ;;  %v3911_v37 = vsel %vm3897_vm6, %v3894_v34, %v4642_v60 }
 0x947   : > { %v3920_v0 = vpack.c.bf16 %v3911_v37, %v3910_v24 }
 0x949   : > { %4024 = vmatmul.bf16.gmra.mxu2 %v3920_v0 }
 0x953   : > { %v4655_v25 = vpop.permute.xlu0 %4654 }
 0x954   : > { %v4657_v19 = vunpack.i.h.bf16 %v4655_v25  ;;  %v4656_v11 = vunpack.i.l.bf16 %v4655_v25 }
 0x956   : > { %v3912_v41 = vsel %vm3897_vm6, %v3895_v15, %v4656_v11  ;;  %v3913_v48 = vsel %vm3897_vm6, %v3896_v2, %v4657_v19 }
 0x957   : > { %v3921_v57 = vpack.c.bf16 %v3913_v48, %v3912_v41 }
 0x959   : > { %4029 = vmatmul.bf16.gmra.mxu2 %v3921_v57 }
 0x999   : > { %v4015_v17 = vpop.f32.mrf.mxu2 }
 0x99a   : > { %4043 = vst [vmem:[%s7701_s22 + $0x40] sm:$0xff] %v4015_v17 }
 0x9a1   : > { %v4017_v8 = vpop.f32.mrf.mxu2 }
 0x9a2   : > { %4044 = vst [vmem:[%s7701_s22 + $0x48] sm:$0xff] %v4017_v8 }
 0x9a9   : > { %v4020_v54 = vpop.f32.mrf.mxu2 }
 0x9aa   : > { %4045 = vst [vmem:[%s7701_s22 + $0x50] sm:$0xff] %v4020_v54 }
 0x9b1   : > { %v4022_v1 = vpop.f32.mrf.mxu2 }
 0x9b2   : > { %4046 = vst [vmem:[%s7701_s22 + $0x58] sm:$0xff] %v4022_v1 }
 0x9cc   : > { %v4025_v31 = vpop.f32.mrf.mxu2 }
 0x9cd   : > { %4047 = vst [vmem:[%s7701_s22 + $0x60] sm:$0xff] %v4025_v31 }
 0x9d4   : > { %v4027_v20 = vpop.f32.mrf.mxu2 }
 0x9d5   : > { %4048 = vst [vmem:[%s7701_s22 + $0x68] sm:$0xff] %v4027_v20 }
 0x9dc   : > { %v4030_v45 = vpop.f32.mrf.mxu2 }
 0x9dd   : > { %4049 = vst [vmem:[%s7701_s22 + $0x70] sm:$0xff] %v4030_v45 }
 0x9e4   : > { %v4032_v49 = vpop.f32.mrf.mxu2 }
 0x9e5   : > { %4050 = vst [vmem:[%s7701_s22 + $0x78] sm:$0xff] %v4032_v49 }
 0x9e6   : > { %5194 = shalt.err (!%p5191_p11)
}
 0x9e7   : > { %s5257_s15 = smov 128   ;;  %s5258_s22 = smov 8  }
 0x9e8   : > { %4457 = dma.vmem_to_hbm [thread:$0]  (%p5389_p5), %s4066_s21, 2048, %s4068_s29, %s4052_s11, %s5257_s15, %s5257_s15, %s5258_s22  }
 0x9e9 PF: > { %s4082_s1 = sand.u32 1, %s5229_s24   ;;  %p7908_p12 = scmp.ge.s32.totalorder %s5241_s27, 2 }
 0x9ea   : > { %s4083_s18 = scalar_lea.sflag [#allocation4], %s4082_s1 }
 0x9eb   : > { %p4477_p13 = pnand %p7908_p12, %p5334_p6 }
 0x9ed   : > { %p4478_p0 = pneg %p4477_p13 }
 0x9ef   : > { %5224 = dma.done.wait (%p4478_p0), %s4083_s18, 2048  }
 0x9f0   : > { %5226 = vsyncadd (%p4478_p0), %s4083_s18, 4294965248  ;;  %p22_p3 = scmp.ge.s32.totalorder %s5376_s10, 4   ;;  %s7909_s24 = smov %s5233_s25 }
 0x9f1   : > { %s7910_s25 = smov %s5237_s26  ;;  %s7911_s26 = smov %s5385_s9 }
 0x9f2   : > { %s7912_s27 = smov %s5376_s10  ;;  %24 = sbr.rel (!%p22_p3) target bundleno = 9 (0x9), region = 109 }
 0x9f7   :  { %4089 = vsyncpa [#allocation3], 1 }
 0x9f8   :  { %4091 = vsyncpa [#allocation3 + $0x1], 1 }
 0x9f9   :  { %4092 = vsyncpa [#allocation6], 1 }
 0x9fa   :  { %4093 = vsyncpa [#allocation9], 1 }
 0x9fb   :  { %4094 = vsyncpa [#allocation4], 1 }
 0x9fc   :  { %4096 = vsyncpa [#allocation4 + $0x1], 1 }

</bundles_post_ra>
